<compile_context>
chip_gen: v7x
topology: tpu7x:2x2x1
jax: 0.10.0
libtpu: 0.0.40
codegen_flags: <defaults>
</compile_context>

<pallas_src>
import numpy as np
import jax
import jax.numpy as jnp
from jax.experimental import pallas as pl
from jax.experimental.pallas import tpu as pltpu

SuperNetSetting = [
    [4, 8, 12, 16], [4, 8, 12, 16], [4, 8, 12, 16], [4, 8, 12, 16],
    [4, 8, 12, 16], [4, 8, 12, 16], [4, 8, 12, 16],
    [4, 8, 12, 16, 20, 24, 28, 32], [4, 8, 12, 16, 20, 24, 28, 32],
    [4, 8, 12, 16, 20, 24, 28, 32], [4, 8, 12, 16, 20, 24, 28, 32],
    [4, 8, 12, 16, 20, 24, 28, 32], [4, 8, 12, 16, 20, 24, 28, 32],
    [4, 8, 12, 16, 20, 24, 28, 32, 36, 40, 44, 48, 52, 56, 60, 64],
    [4, 8, 12, 16, 20, 24, 28, 32, 36, 40, 44, 48, 52, 56, 60, 64],
    [4, 8, 12, 16, 20, 24, 28, 32, 36, 40, 44, 48, 52, 56, 60, 64],
    [4, 8, 12, 16, 20, 24, 28, 32, 36, 40, 44, 48, 52, 56, 60, 64],
    [4, 8, 12, 16, 20, 24, 28, 32, 36, 40, 44, 48, 52, 56, 60, 64],
    [4, 8, 12, 16, 20, 24, 28, 32, 36, 40, 44, 48, 52, 56, 60, 64],
    [4, 8, 12, 16, 20, 24, 28, 32, 36, 40, 44, 48, 52, 56, 60, 64],
]

BN_EPS = 1e-5
TARGET_ROWS = 512                     # aim for >=512-row conv tiles per grid step
VMEM_LIMIT = 48 * 1024 * 1024         # v7x-safe; raise toward ~100 MiB on v5e/v6e
FUSED_VMEM_BUDGET = 24 * 1024 * 1024  # max resident VMEM for the fused path


def _ceil_div(a, b):
    return -(-a // b)


# ----------------------------- kernel bodies --------------------------------


def _conv_tile(x_ref, w_ref, taps, rows, Ho, Wo):
    """Conv for one tile as a sum of shifted-slice MXU matmuls.

    x_ref: (nb, s*s*Hr, Wr, Cin) bf16 -- stride phases stacked along the H axis
    w_ref: (kh*kw, Cin, C_out)   bf16
    Returns (rows, C_out) f32, rows = nb*Ho*Wo.
    """
    xb = x_ref[...]
    w = w_ref[...]
    acc = jnp.zeros((rows, w.shape[-1]), jnp.float32)
    for t, roff, coff in taps:                         # static Python loop (<= 9)
        xs = xb[:, roff:roff + Ho, coff:coff + Wo, :]  # (nb, Ho, Wo, Cin)
        xs = xs.reshape(rows, xs.shape[-1])            # (rows, Cin)
        acc = acc + jnp.dot(xs, w[t], preferred_element_type=jnp.float32)
    return acc


def _accumulate_stats(stats_ref, acc):
    """Single (2, C) sum / sum-of-squares update per grid step."""
    upd = jnp.concatenate(
        [jnp.sum(acc, axis=0, keepdims=True),
         jnp.sum(acc * acc, axis=0, keepdims=True)], axis=0)

    @pl.when(pl.program_id(0) == 0)
    def _():
        stats_ref[...] = jnp.zeros_like(stats_ref)

    stats_ref[...] += upd


def _make_fused_kernel(taps, rows, Ho, Wo, inv_m):
    """Single-pass conv + batch stats + in-place BN*mask normalization."""

    def kernel(x_ref, w_ref, mask_ref, o_ref, stats_ref):
        g = pl.program_id(0)
        acc = _conv_tile(x_ref, w_ref, taps, rows, Ho, Wo)
        _accumulate_stats(stats_ref, acc)
        o_ref[g] = acc                        # raw conv stays resident in VMEM

        @pl.when(g == pl.num_programs(0) - 1)
        def _():
            # NOTE: one-pass E[x^2]-mean^2 variance (f32 sums); can lose accuracy
            # if |mean| >> std.  Fine for conv activations (zero-ish mean).
            mean = stats_ref[0:1, :] * inv_m
            var = jnp.maximum(stats_ref[1:2, :] * inv_m - mean * mean, 0.0)
            scale = mask_ref[...] * jax.lax.rsqrt(var + BN_EPS)       # (1, C)
            shift = -mean * scale
            o_ref[...] = o_ref[...] * scale[None] + shift[None]

    return kernel


def _make_conv_stats_kernel(taps, rows, Ho, Wo):
    """Two-pass fallback, pass 1: conv (bf16 intermediate) + batch stats."""

    def kernel(x_ref, w_ref, conv_ref, stats_ref):
        acc = _conv_tile(x_ref, w_ref, taps, rows, Ho, Wo)
        _accumulate_stats(stats_ref, acc)
        conv_ref[0] = acc.astype(conv_ref.dtype)     # bf16: halves HBM traffic

    return kernel


def _normalize_kernel(conv_ref, ss_ref, o_ref):
    """Two-pass fallback, pass 2: out = conv * scale + shift."""
    scale = ss_ref[0:1, :]
    shift = ss_ref[1:2, :]
    o_ref[...] = conv_ref[...].astype(jnp.float32) * scale[None] + shift[None]


# ----------------------------- wrapper ---------------------------------------


def sample_conv_bn(x_nchw, conv_weight, alpha, masks, *, stride=1, padding=1,
                   force_two_pass=False):
    """Forward of SampleConvBN (lenth=None branch; conv bias is a BN no-op).

    x_nchw:      (N, C_in, H, W)        f32
    conv_weight: (C_out, C_in, kh, kw)  f32 (PyTorch OIHW)
    alpha:       (n_opts,)              f32 mixing weights
    masks:       (n_opts, C_out)        f32 channel masks
    returns:     (N, C_out, Ho, Wo)     f32
    """
    N, C_in, H, W = x_nchw.shape
    C_out, _, kh, kw = conv_weight.shape
    s = stride
    Ho = (H + 2 * padding - kh) // s + 1
    Wo = (W + 2 * padding - kw) // s + 1
    Hr = Ho + (kh - 1) // s
    Wr = Wo + (kw - 1) // s

    rows_per_img = Ho * Wo
    nb = max(1, min(N, _ceil_div(TARGET_ROWS, rows_per_img)))
    G = _ceil_div(N, nb)
    Npad = G * nb
    rows = nb * rows_per_img

    # --- host prep: NHWC + spatial pad + stride-phase split, bf16 ------------
    # For stride s, phase (p, q) holds x_pad[p::s, q::s]; tap (i, j) then reads
    # a contiguous (Ho, Wo) window at offset (i//s, j//s) of phase (i%s, j%s).
    # Phases are stacked along the H axis so all in-kernel slices are static.
    x_nhwc = jnp.transpose(x_nchw, (0, 2, 3, 1)).astype(jnp.bfloat16)
    xp = jnp.pad(x_nhwc, ((0, Npad - N), (padding, padding),
                          (padding, padding), (0, 0)))
    xp = xp[:, :min(s * Hr, xp.shape[1]), :min(s * Wr, xp.shape[2]), :]
    xp = jnp.pad(xp, ((0, 0), (0, s * Hr - xp.shape[1]),
                      (0, s * Wr - xp.shape[2]), (0, 0)))
    xp = xp.reshape(Npad, Hr, s, Wr, s, C_in)
    xp = xp.transpose(0, 2, 4, 1, 3, 5).reshape(Npad, s * s * Hr, Wr, C_in)

    taps = []
    for i in range(kh):
        for j in range(kw):
            pidx = (i % s) * s + (j % s)
            taps.append((i * kw + j, pidx * Hr + i // s, j // s))

    w_taps = jnp.transpose(conv_weight, (2, 3, 1, 0)).reshape(
        kh * kw, C_in, C_out).astype(jnp.bfloat16)

    mixed_mask = (alpha @ masks).astype(jnp.float32).reshape(1, C_out)
    inv_m = 1.0 / float(N * Ho * Wo)   # true count; zero-padded batch rows add 0

    x_spec = pl.BlockSpec((nb, s * s * Hr, Wr, C_in), lambda g: (g, 0, 0, 0))
    w_spec = pl.BlockSpec((kh * kw, C_in, C_out), lambda g: (0, 0, 0))
    # TODO(synk): v7x -- add a leading "parallel" core axis with per-core partial
    # stats (combined before normalization) to use both TensorCores.
    params_seq = pltpu.CompilerParams(dimension_semantics=("arbitrary",),
                                      vmem_limit_bytes=VMEM_LIMIT)

    resident = (2 * G * rows * C_out * 4                 # revisited f32 output
                + 2 * nb * s * s * Hr * Wr * C_in * 2    # double-buffered input
                + 2 * kh * kw * C_in * C_out * 2
                + rows * C_out * 4)
    use_fused = (not force_two_pass) and resident <= FUSED_VMEM_BUDGET

    if use_fused:
        # Single pass: activation crosses HBM once (the final normalized write).
        out_flat = pl.pallas_call(
            _make_fused_kernel(taps, rows, Ho, Wo, inv_m),
            out_shape=jax.ShapeDtypeStruct((G, rows, C_out), jnp.float32),
            grid=(G,),
            in_specs=[x_spec, w_spec,
                      pl.BlockSpec((1, C_out), lambda g: (0, 0))],
            out_specs=pl.BlockSpec((G, rows, C_out), lambda g: (0, 0, 0)),
            scratch_shapes=[pltpu.VMEM((2, C_out), jnp.float32)],
            compiler_params=params_seq,
        )(xp, w_taps, mixed_mask)
    else:
        # Two-pass fallback for shapes whose conv does not fit VMEM.
        conv_flat, stats = pl.pallas_call(
            _make_conv_stats_kernel(taps, rows, Ho, Wo),
            out_shape=(jax.ShapeDtypeStruct((G, rows, C_out), jnp.bfloat16),
                       jax.ShapeDtypeStruct((2, C_out), jnp.float32)),
            grid=(G,),
            in_specs=[x_spec, w_spec],
            out_specs=(pl.BlockSpec((1, rows, C_out), lambda g: (g, 0, 0)),
                       pl.BlockSpec((2, C_out), lambda g: (0, 0))),
            compiler_params=params_seq,
        )(xp, w_taps)

        mean = stats[0] * inv_m
        var = jnp.maximum(stats[1] * inv_m - mean * mean, 0.0)
        scale = mixed_mask[0] * jax.lax.rsqrt(var + BN_EPS)
        shift = -mean * scale
        ss = jnp.stack([scale, shift]).astype(jnp.float32)

        out_flat = pl.pallas_call(
            _normalize_kernel,
            out_shape=jax.ShapeDtypeStruct((G, rows, C_out), jnp.float32),
            grid=(G,),
            in_specs=[pl.BlockSpec((1, rows, C_out), lambda g: (g, 0, 0)),
                      pl.BlockSpec((2, C_out), lambda g: (0, 0))],
            out_specs=pl.BlockSpec((1, rows, C_out), lambda g: (g, 0, 0)),
            compiler_params=pltpu.CompilerParams(
                dimension_semantics=("parallel",),
                vmem_limit_bytes=VMEM_LIMIT),
        )(conv_flat, ss)

    # TODO(synk): keep NHWC end-to-end in a full network to drop this final
    # layout-change HBM pass (the module contract here is NCHW).
    out = out_flat.reshape(Npad, Ho, Wo, C_out)[:N].transpose(0, 3, 1, 2)
    return out


sample_conv_bn_jit = jax.jit(
    sample_conv_bn, static_argnames=("stride", "padding", "force_two_pass"))


# ----------------------------- reference / test ------------------------------


def _reference(x, w, alpha, masks, stride, padding):
    conv = jax.lax.conv_general_dilated(
        x, w, window_strides=(stride, stride),
        padding=((padding, padding), (padding, padding)),
        dimension_numbers=("NCHW", "OIHW", "NCHW"),
        precision=jax.lax.Precision.HIGHEST)
    mean = conv.mean(axis=(0, 2, 3), keepdims=True)
    var = conv.var(axis=(0, 2, 3), keepdims=True)    # biased, as in F.batch_norm
    bn = (conv - mean) * jax.lax.rsqrt(var + BN_EPS)
    mixed = (alpha[:, None] * masks).sum(axis=0)     # (C_out,)
    return bn * mixed[None, :, None, None]


def _run_case(layer_id, n, in_planes, hw, stride, padding, force_two_pass, key):
    setting = SuperNetSetting[layer_id]
    out_planes = setting[-1]
    kx, kw_, ka = jax.random.split(key, 3)
    x = jax.random.normal(kx, (n, in_planes, hw, hw), dtype=jnp.float32)
    w = jax.random.normal(kw_, (out_planes, in_planes, 3, 3),
                          dtype=jnp.float32) * 0.1
    alpha = jax.nn.softmax(
        jax.random.normal(ka, (len(setting),), dtype=jnp.float32))
    masks_np = np.zeros((len(setting), out_planes), dtype=np.float32)
    for i, ch in enumerate(setting):
        masks_np[i, :ch] = 1.0
    masks = jnp.asarray(masks_np)

    out = sample_conv_bn_jit(x, w, alpha, masks, stride=stride, padding=padding,
                             force_two_pass=force_two_pass)
    out = jax.block_until_ready(out)
    ref = _reference(x, w, alpha, masks, stride, padding)
    assert out.shape == ref.shape
    np.testing.assert_allclose(np.asarray(out), np.asarray(ref),
                               rtol=2e-2, atol=2e-2)


if __name__ == "__main__":
    key = jax.random.PRNGKey(0)
    k1, k2, k3, k4 = jax.random.split(key, 4)
    # layer 0: Cin=4 -> Cout=16, 16x16, stride 1, fused single-pass path.
    _run_case(0, 2, 4, 16, 1, 1, False, k1)
    # layer 13: Cin=32 -> Cout=64, 32x32, stride 1, fused path with 2 grid
    # steps -> exercises the cross-step stats accumulation + resident block.
    _run_case(13, 2, 32, 32, 1, 1, False, k2)
    # same config, forced two-pass fallback (bf16 HBM intermediate).
    _run_case(13, 2, 32, 32, 1, 1, True, k3)
    # layer 7: Cin=16 -> Cout=32, 16x16, stride 2 -> phase-split path, fused.
    _run_case(7, 2, 16, 16, 2, 1, False, k4)
    print("KERNEL_OK")
</pallas_src>

<mosaic_0001>
module attributes {stable_mosaic.version = 11 : i64} {
  func.func @kernel(%arg0: i32, %arg1: memref<2x18x18x4xbf16, #tpu.memory_space<vmem>>, %arg2: memref<9x4x16xbf16, #tpu.memory_space<vmem>>, %arg3: memref<1x16xf32, #tpu.memory_space<vmem>>, %arg4: memref<1x512x16xf32, #tpu.memory_space<vmem>>, %arg5: memref<2x16xf32, #tpu.memory_space<vmem>>) attributes {dimension_semantics = [#tpu.dimension_semantics<arbitrary>], iteration_bounds = array<i64: 1>, scalar_prefetch = 0 : i64, scratch_operands = 1 : i64, tpu.core_type = #tpu.core_type<tc>, window_params = [{transform_indices = @transform_0, window_bounds = array<i64: 2, 18, 18, 4>}, {pipeline_mode = #tpu.pipeline_mode<synchronous>, transform_indices = @transform_1, window_bounds = array<i64: 9, 4, 16>}, {pipeline_mode = #tpu.pipeline_mode<synchronous>, transform_indices = @transform_2, window_bounds = array<i64: 1, 16>}, {pipeline_mode = #tpu.pipeline_mode<synchronous>, transform_indices = @transform_3, window_bounds = array<i64: 1, 512, 16>}]} {
    %c0 = arith.constant 0 : index
    %c0_0 = arith.constant 0 : index
    %c0_1 = arith.constant 0 : index
    %c0_2 = arith.constant 0 : index
    %0 = vector.load %arg1[%c0, %c0_0, %c0_1, %c0_2] : memref<2x18x18x4xbf16, #tpu.memory_space<vmem>>, vector<2x18x18x4xbf16>
    %c0_3 = arith.constant 0 : index
    %c0_4 = arith.constant 0 : index
    %c0_5 = arith.constant 0 : index
    %1 = vector.load %arg2[%c0_3, %c0_4, %c0_5] : memref<9x4x16xbf16, #tpu.memory_space<vmem>>, vector<9x4x16xbf16>
    %cst = arith.constant 0.000000e+00 : f32
    %2 = vector.broadcast %cst : f32 to vector<512x16xf32>
    %3 = vector.extract_strided_slice %0 {offsets = [0, 0, 0, 0], sizes = [2, 16, 16, 4], strides = [1, 1, 1, 1]} : vector<2x18x18x4xbf16> to vector<2x16x16x4xbf16>
    %4 = vector.shape_cast %3 : vector<2x16x16x4xbf16> to vector<512x4xbf16>
    %5 = vector.extract_strided_slice %1 {offsets = [0, 0, 0], sizes = [1, 4, 16], strides = [1, 1, 1]} : vector<9x4x16xbf16> to vector<1x4x16xbf16>
    %6 = vector.shape_cast %5 : vector<1x4x16xbf16> to vector<4x16xbf16>
    %cst_6 = arith.constant dense<0.000000e+00> : vector<512x16xf32>
    %7 = tpu.matmul %4, %6, %cst_6 {dimension_numbers = #tpu.dot_dimension_numbers<[1], [0], [0], [1], [0, 0, 1, 1], [], []>} : vector<512x4xbf16>, vector<4x16xbf16>, vector<512x16xf32> -> vector<512x16xf32>
    %8 = arith.addf %2, %7 : vector<512x16xf32>
    %9 = vector.extract_strided_slice %0 {offsets = [0, 0, 1, 0], sizes = [2, 16, 16, 4], strides = [1, 1, 1, 1]} : vector<2x18x18x4xbf16> to vector<2x16x16x4xbf16>
    %10 = vector.shape_cast %9 : vector<2x16x16x4xbf16> to vector<512x4xbf16>
    %11 = vector.extract_strided_slice %1 {offsets = [1, 0, 0], sizes = [1, 4, 16], strides = [1, 1, 1]} : vector<9x4x16xbf16> to vector<1x4x16xbf16>
    %12 = vector.shape_cast %11 : vector<1x4x16xbf16> to vector<4x16xbf16>
    %cst_7 = arith.constant dense<0.000000e+00> : vector<512x16xf32>
    %13 = tpu.matmul %10, %12, %cst_7 {dimension_numbers = #tpu.dot_dimension_numbers<[1], [0], [0], [1], [0, 0, 1, 1], [], []>} : vector<512x4xbf16>, vector<4x16xbf16>, vector<512x16xf32> -> vector<512x16xf32>
    %14 = arith.addf %8, %13 : vector<512x16xf32>
    %15 = vector.extract_strided_slice %0 {offsets = [0, 0, 2, 0], sizes = [2, 16, 16, 4], strides = [1, 1, 1, 1]} : vector<2x18x18x4xbf16> to vector<2x16x16x4xbf16>
    %16 = vector.shape_cast %15 : vector<2x16x16x4xbf16> to vector<512x4xbf16>
    %17 = vector.extract_strided_slice %1 {offsets = [2, 0, 0], sizes = [1, 4, 16], strides = [1, 1, 1]} : vector<9x4x16xbf16> to vector<1x4x16xbf16>
    %18 = vector.shape_cast %17 : vector<1x4x16xbf16> to vector<4x16xbf16>
    %cst_8 = arith.constant dense<0.000000e+00> : vector<512x16xf32>
    %19 = tpu.matmul %16, %18, %cst_8 {dimension_numbers = #tpu.dot_dimension_numbers<[1], [0], [0], [1], [0, 0, 1, 1], [], []>} : vector<512x4xbf16>, vector<4x16xbf16>, vector<512x16xf32> -> vector<512x16xf32>
    %20 = arith.addf %14, %19 : vector<512x16xf32>
    %21 = vector.extract_strided_slice %0 {offsets = [0, 1, 0, 0], sizes = [2, 16, 16, 4], strides = [1, 1, 1, 1]} : vector<2x18x18x4xbf16> to vector<2x16x16x4xbf16>
    %22 = vector.shape_cast %21 : vector<2x16x16x4xbf16> to vector<512x4xbf16>
    %23 = vector.extract_strided_slice %1 {offsets = [3, 0, 0], sizes = [1, 4, 16], strides = [1, 1, 1]} : vector<9x4x16xbf16> to vector<1x4x16xbf16>
    %24 = vector.shape_cast %23 : vector<1x4x16xbf16> to vector<4x16xbf16>
    %cst_9 = arith.constant dense<0.000000e+00> : vector<512x16xf32>
    %25 = tpu.matmul %22, %24, %cst_9 {dimension_numbers = #tpu.dot_dimension_numbers<[1], [0], [0], [1], [0, 0, 1, 1], [], []>} : vector<512x4xbf16>, vector<4x16xbf16>, vector<512x16xf32> -> vector<512x16xf32>
    %26 = arith.addf %20, %25 : vector<512x16xf32>
    %27 = vector.extract_strided_slice %0 {offsets = [0, 1, 1, 0], sizes = [2, 16, 16, 4], strides = [1, 1, 1, 1]} : vector<2x18x18x4xbf16> to vector<2x16x16x4xbf16>
    %28 = vector.shape_cast %27 : vector<2x16x16x4xbf16> to vector<512x4xbf16>
    %29 = vector.extract_strided_slice %1 {offsets = [4, 0, 0], sizes = [1, 4, 16], strides = [1, 1, 1]} : vector<9x4x16xbf16> to vector<1x4x16xbf16>
    %30 = vector.shape_cast %29 : vector<1x4x16xbf16> to vector<4x16xbf16>
    %cst_10 = arith.constant dense<0.000000e+00> : vector<512x16xf32>
    %31 = tpu.matmul %28, %30, %cst_10 {dimension_numbers = #tpu.dot_dimension_numbers<[1], [0], [0], [1], [0, 0, 1, 1], [], []>} : vector<512x4xbf16>, vector<4x16xbf16>, vector<512x16xf32> -> vector<512x16xf32>
    %32 = arith.addf %26, %31 : vector<512x16xf32>
    %33 = vector.extract_strided_slice %0 {offsets = [0, 1, 2, 0], sizes = [2, 16, 16, 4], strides = [1, 1, 1, 1]} : vector<2x18x18x4xbf16> to vector<2x16x16x4xbf16>
    %34 = vector.shape_cast %33 : vector<2x16x16x4xbf16> to vector<512x4xbf16>
    %35 = vector.extract_strided_slice %1 {offsets = [5, 0, 0], sizes = [1, 4, 16], strides = [1, 1, 1]} : vector<9x4x16xbf16> to vector<1x4x16xbf16>
    %36 = vector.shape_cast %35 : vector<1x4x16xbf16> to vector<4x16xbf16>
    %cst_11 = arith.constant dense<0.000000e+00> : vector<512x16xf32>
    %37 = tpu.matmul %34, %36, %cst_11 {dimension_numbers = #tpu.dot_dimension_numbers<[1], [0], [0], [1], [0, 0, 1, 1], [], []>} : vector<512x4xbf16>, vector<4x16xbf16>, vector<512x16xf32> -> vector<512x16xf32>
    %38 = arith.addf %32, %37 : vector<512x16xf32>
    %39 = vector.extract_strided_slice %0 {offsets = [0, 2, 0, 0], sizes = [2, 16, 16, 4], strides = [1, 1, 1, 1]} : vector<2x18x18x4xbf16> to vector<2x16x16x4xbf16>
    %40 = vector.shape_cast %39 : vector<2x16x16x4xbf16> to vector<512x4xbf16>
    %41 = vector.extract_strided_slice %1 {offsets = [6, 0, 0], sizes = [1, 4, 16], strides = [1, 1, 1]} : vector<9x4x16xbf16> to vector<1x4x16xbf16>
    %42 = vector.shape_cast %41 : vector<1x4x16xbf16> to vector<4x16xbf16>
    %cst_12 = arith.constant dense<0.000000e+00> : vector<512x16xf32>
    %43 = tpu.matmul %40, %42, %cst_12 {dimension_numbers = #tpu.dot_dimension_numbers<[1], [0], [0], [1], [0, 0, 1, 1], [], []>} : vector<512x4xbf16>, vector<4x16xbf16>, vector<512x16xf32> -> vector<512x16xf32>
    %44 = arith.addf %38, %43 : vector<512x16xf32>
    %45 = vector.extract_strided_slice %0 {offsets = [0, 2, 1, 0], sizes = [2, 16, 16, 4], strides = [1, 1, 1, 1]} : vector<2x18x18x4xbf16> to vector<2x16x16x4xbf16>
    %46 = vector.shape_cast %45 : vector<2x16x16x4xbf16> to vector<512x4xbf16>
    %47 = vector.extract_strided_slice %1 {offsets = [7, 0, 0], sizes = [1, 4, 16], strides = [1, 1, 1]} : vector<9x4x16xbf16> to vector<1x4x16xbf16>
    %48 = vector.shape_cast %47 : vector<1x4x16xbf16> to vector<4x16xbf16>
    %cst_13 = arith.constant dense<0.000000e+00> : vector<512x16xf32>
    %49 = tpu.matmul %46, %48, %cst_13 {dimension_numbers = #tpu.dot_dimension_numbers<[1], [0], [0], [1], [0, 0, 1, 1], [], []>} : vector<512x4xbf16>, vector<4x16xbf16>, vector<512x16xf32> -> vector<512x16xf32>
    %50 = arith.addf %44, %49 : vector<512x16xf32>
    %51 = vector.extract_strided_slice %0 {offsets = [0, 2, 2, 0], sizes = [2, 16, 16, 4], strides = [1, 1, 1, 1]} : vector<2x18x18x4xbf16> to vector<2x16x16x4xbf16>
    %52 = vector.shape_cast %51 : vector<2x16x16x4xbf16> to vector<512x4xbf16>
    %53 = vector.extract_strided_slice %1 {offsets = [8, 0, 0], sizes = [1, 4, 16], strides = [1, 1, 1]} : vector<9x4x16xbf16> to vector<1x4x16xbf16>
    %54 = vector.shape_cast %53 : vector<1x4x16xbf16> to vector<4x16xbf16>
    %cst_14 = arith.constant dense<0.000000e+00> : vector<512x16xf32>
    %55 = tpu.matmul %52, %54, %cst_14 {dimension_numbers = #tpu.dot_dimension_numbers<[1], [0], [0], [1], [0, 0, 1, 1], [], []>} : vector<512x4xbf16>, vector<4x16xbf16>, vector<512x16xf32> -> vector<512x16xf32>
    %56 = arith.addf %50, %55 : vector<512x16xf32>
    %cst_15 = arith.constant dense<0.000000e+00> : vector<16xf32>
    %57 = vector.multi_reduction <add>, %56, %cst_15 [0] : vector<512x16xf32> to vector<16xf32>
    %58 = vector.shape_cast %57 : vector<16xf32> to vector<1x16xf32>
    %59 = arith.mulf %56, %56 : vector<512x16xf32>
    %cst_16 = arith.constant dense<0.000000e+00> : vector<16xf32>
    %60 = vector.multi_reduction <add>, %59, %cst_16 [0] : vector<512x16xf32> to vector<16xf32>
    %61 = vector.shape_cast %60 : vector<16xf32> to vector<1x16xf32>
    %62 = tpu.concatenate %58, %61 in 0 : vector<1x16xf32>, vector<1x16xf32> -> vector<2x16xf32>
    %c0_i32 = arith.constant 0 : i32
    %63 = arith.cmpi eq, %arg0, %c0_i32 : i32
    %64 = arith.extui %63 : i1 to i32
    %c0_i32_17 = arith.constant 0 : i32
    %65 = arith.cmpi ne, %64, %c0_i32_17 : i32
    scf.if %65 {
      %cst_26 = arith.constant 0.000000e+00 : f32
      %76 = vector.broadcast %cst_26 : f32 to vector<2x16xf32>
      %c0_27 = arith.constant 0 : index
      %c0_28 = arith.constant 0 : index
      %77 = vector.load %arg5[%c0_27, %c0_28] : memref<2x16xf32, #tpu.memory_space<vmem>>, vector<2x16xf32>
      tpu.vector_store %arg5[%c0_27, %c0_28], %76 {strides = array<i32>} : memref<2x16xf32, #tpu.memory_space<vmem>>, vector<2x16xf32>,
    } else {
    }
    %c0_18 = arith.constant 0 : index
    %c0_19 = arith.constant 0 : index
    %66 = vector.load %arg5[%c0_18, %c0_19] : memref<2x16xf32, #tpu.memory_space<vmem>>, vector<2x16xf32>
    %67 = arith.addf %66, %62 : vector<2x16xf32>
    %c0_20 = arith.constant 0 : index
    %c0_21 = arith.constant 0 : index
    %68 = vector.load %arg5[%c0_20, %c0_21] : memref<2x16xf32, #tpu.memory_space<vmem>>, vector<2x16xf32>
    tpu.vector_store %arg5[%c0_20, %c0_21], %67 {strides = array<i32>} : memref<2x16xf32, #tpu.memory_space<vmem>>, vector<2x16xf32>,
    %69 = arith.index_cast %arg0 : i32 to index
    %c0_22 = arith.constant 0 : index
    %c0_23 = arith.constant 0 : index
    %70 = vector.load %arg4[%69, %c0_22, %c0_23] : memref<1x512x16xf32, #tpu.memory_space<vmem>>, vector<1x512x16xf32>
    %71 = vector.shape_cast %70 : vector<1x512x16xf32> to vector<512x16xf32>
    %72 = vector.shape_cast %56 : vector<512x16xf32> to vector<1x512x16xf32>
    tpu.vector_store %arg4[%69, %c0_22, %c0_23], %72 {strides = array<i32>} : memref<1x512x16xf32, #tpu.memory_space<vmem>>, vector<1x512x16xf32>,
    %c0_i32_24 = arith.constant 0 : i32
    %73 = arith.cmpi eq, %arg0, %c0_i32_24 : i32
    %74 = arith.extui %73 : i1 to i32
    %c0_i32_25 = arith.constant 0 : i32
    %75 = arith.cmpi ne, %74, %c0_i32_25 : i32
    scf.if %75 {
      %c0_26 = arith.constant 0 : index
      %c0_27 = arith.constant 0 : index
      %76 = vector.load %arg5[%c0_26, %c0_27] : memref<2x16xf32, #tpu.memory_space<vmem>>, vector<1x16xf32>
      %cst_28 = arith.constant 0.001953125 : f32
      %77 = vector.broadcast %cst_28 : f32 to vector<1x16xf32>
      %78 = arith.mulf %76, %77 : vector<1x16xf32>
      %c1 = arith.constant 1 : index
      %c0_29 = arith.constant 0 : index
      %79 = vector.load %arg5[%c1, %c0_29] : memref<2x16xf32, #tpu.memory_space<vmem>>, vector<1x16xf32>
      %cst_30 = arith.constant 0.001953125 : f32
      %80 = vector.broadcast %cst_30 : f32 to vector<1x16xf32>
      %81 = arith.mulf %79, %80 : vector<1x16xf32>
      %82 = arith.mulf %78, %78 : vector<1x16xf32>
      %83 = arith.subf %81, %82 : vector<1x16xf32>
      %cst_31 = arith.constant 0.000000e+00 : f32
      %84 = vector.broadcast %cst_31 : f32 to vector<1x16xf32>
      %85 = arith.maximumf %83, %84 : vector<1x16xf32>
      %c0_32 = arith.constant 0 : index
      %c0_33 = arith.constant 0 : index
      %86 = vector.load %arg3[%c0_32, %c0_33] : memref<1x16xf32, #tpu.memory_space<vmem>>, vector<1x16xf32>
      %cst_34 = arith.constant 9.99999974E-6 : f32
      %87 = vector.broadcast %cst_34 : f32 to vector<1x16xf32>
      %88 = arith.addf %85, %87 : vector<1x16xf32>
      %89 = math.rsqrt %88 : vector<1x16xf32>
      %90 = arith.mulf %86, %89 : vector<1x16xf32>
      %cst_35 = arith.constant 0.000000e+00 : f32
      %91 = vector.broadcast %cst_35 : f32 to vector<1x16xf32>
      %92 = arith.subf %91, %78 : vector<1x16xf32>
      %93 = arith.mulf %92, %90 : vector<1x16xf32>
      %c0_36 = arith.constant 0 : index
      %c0_37 = arith.constant 0 : index
      %c0_38 = arith.constant 0 : index
      %94 = vector.load %arg4[%c0_36, %c0_37, %c0_38] : memref<1x512x16xf32, #tpu.memory_space<vmem>>, vector<1x512x16xf32>
      %95 = vector.shape_cast %90 : vector<1x16xf32> to vector<1x1x16xf32>
      %96 = vector.broadcast %95 : vector<1x1x16xf32> to vector<1x512x16xf32>
      %97 = arith.mulf %94, %96 : vector<1x512x16xf32>
      %98 = vector.shape_cast %93 : vector<1x16xf32> to vector<1x1x16xf32>
      %99 = vector.broadcast %98 : vector<1x1x16xf32> to vector<1x512x16xf32>
      %100 = arith.addf %97, %99 : vector<1x512x16xf32>
      %c0_39 = arith.constant 0 : index
      %c0_40 = arith.constant 0 : index
      %c0_41 = arith.constant 0 : index
      %101 = vector.load %arg4[%c0_39, %c0_40, %c0_41] : memref<1x512x16xf32, #tpu.memory_space<vmem>>, vector<1x512x16xf32>
      tpu.vector_store %arg4[%c0_39, %c0_40, %c0_41], %100 {strides = array<i32>} : memref<1x512x16xf32, #tpu.memory_space<vmem>>, vector<1x512x16xf32>,
    } else {
    }
    return
  }
  func.func @transform_0(%arg0: i32) -> (i32, i32, i32, i32) {
    %c0_i32 = arith.constant 0 : i32
    %c0_i32_0 = arith.constant 0 : i32
    %c0_i32_1 = arith.constant 0 : i32
    %c0_i32_2 = arith.constant 0 : i32
    return %arg0, %c0_i32, %c0_i32_0, %c0_i32_1 : i32, i32, i32, i32
  }
  func.func @transform_1(%arg0: i32) -> (i32, i32, i32) {
    %c0_i32 = arith.constant 0 : i32
    %c0_i32_0 = arith.constant 0 : i32
    %c0_i32_1 = arith.constant 0 : i32
    %c0_i32_2 = arith.constant 0 : i32
    return %c0_i32, %c0_i32_0, %c0_i32_1 : i32, i32, i32
  }
  func.func @transform_2(%arg0: i32) -> (i32, i32) {
    %c0_i32 = arith.constant 0 : i32
    %c0_i32_0 = arith.constant 0 : i32
    %c0_i32_1 = arith.constant 0 : i32
    return %c0_i32, %c0_i32_0 : i32, i32
  }
  func.func @transform_3(%arg0: i32) -> (i32, i32, i32) {
    %c0_i32 = arith.constant 0 : i32
    %c0_i32_0 = arith.constant 0 : i32
    %c0_i32_1 = arith.constant 0 : i32
    %c0_i32_2 = arith.constant 0 : i32
    return %c0_i32, %c0_i32_0, %c0_i32_1 : i32, i32, i32
  }
}

</mosaic_0001>

<bundles_post_ra>
// kernel: sample_conv_bn.1
= control target key start
LH: loop header
LB: loop body
LE: loop exit
PB: predicated region body
PF: predicated region fallthrough
CT: control target
= control target key end

     0   :  { %vm1096_vm0 = vcmask 1041408   ;;  %vm132_vm1 = vsmask.f32 3328  ;;  %vm133_vm2 = vsmask.f32 7440  ;;  %vm999_vm4 = vcmask 31744   ;;  %s11105_s1 = inlined_call_operand.vmem [shape: bf16[9,4,16], index: 1, kind: input, shape index: {}]   ;;  %s11106_s0 = inlined_call_operand.vmem [shape: bf16[2,18,18,4], index: 0, kind: input, shape index: {}]   ;;  %s11107_s3 = inlined_call_operand.vmem [shape: f32[1,512,16], index: 3, kind: output, shape index: {}]   ;;  %s11108_s2 = inlined_call_operand.vmem [shape: f32[1,16], index: 2, kind: input, shape index: {}]  }
   0x1   :  { %v124_v0 = vld [vmem:[%s11105_s1 + $0x2] sm:$0x3]  ;;  %v127_v1 = vld [vmem:[%s11105_s1 + $0x8] sm:$0x3]  ;;  %v16_v5 = vld [vmem:[%s11106_s0 + $0x4] sm:$0xf] }
   0x2   :  { %v15_v2 = vld [vmem:[%s11106_s0] sm:$0xf]  ;;  %7620 = vmatprep.subr.msk.bf16.mxu1 %vm1096_vm0, %v124_v0  ;;  %7624 = vmatprep.subr.msk.bf16.mxu0 %vm1096_vm0, %v127_v1  ;;  %v1098_v3 = vsel %vm1096_vm0, %v124_v0, 0  ;;  %v7752_v4 = vsel %vm1096_vm0, %v127_v1, 0  ;;  %v17_v6 = vld [vmem:[%s11106_s0 + $0x8] sm:$0x1]  ;;  %vm7796_vm3 = vmor %vm132_vm1, %vm133_vm2 }
   0x3   :  { %11231 = vst [vmem:[#allocation3_spill] sm:$0xff] %v7752_v4  ;;  %6513 = vmatpush3.bf16.msra.mxu1 %v1098_v3  ;;  %6777 = vmatpush3.bf16.msra.mxu0 %v7752_v4  ;;  %v136_v7 = vshrl.u32 %v15_v2, 16  ;;  %v139_v8 = vshll.u32 %v15_v2, 16  ;;  %v145_v9 = vshll.u32 %v16_v5, 16  ;;  %v149_v10 = vshrl.u32 %v16_v5, 16 }
   0x4   :  { %v123_v11 = vld [vmem:[%s11105_s1] sm:$0x3]  ;;  %v155_v12 = vshll.u32 %v17_v6, 16  ;;  %v7768_v13 = vld [vmem:[%s11106_s0 + $0xc] sm:$0xf]  ;;  %vm1969_vm5 = vcmask 1042432  }
   0x5   :  { %7621 = vmatprep.subr.msk.bf16.mxu1 %vm1096_vm0, %v123_v11  ;;  %v7773_v14 = vld [vmem:[%s11106_s0 + $0x10] sm:$0xf]  ;;  %v138_v15 = vrot.slane %v136_v7, 4  ;;  %v141_v16 = vrot.slane %v139_v8, 5  ;;  %v147_v17 = vrot.slane %v145_v9, 5  ;;  %v151_v18 = vrot.slane %v149_v10, 4 }
   0x6   :  { %v7778_v19 = vld [vmem:[%s11106_s0 + $0x14] sm:$0x1]  ;;  %v157_v20 = vrot.slane %v155_v12, 5  ;;  %v160_v21 = vshrl.u32 %v7768_v13, 16  ;;  %v163_v22 = vshll.u32 %v7768_v13, 16  ;;  %v169_v23 = vshll.u32 %v7773_v14, 16 }
   0x7   :  { %v128_v24 = vld [vmem:[%s11105_s1 + $0xa] sm:$0x3]  ;;  %v142_v25 = vor.u32 %v141_v16, %v138_v15  ;;  %v152_v26 = vor.u32 %v151_v18, %v147_v17  ;;  %v173_v27 = vshrl.u32 %v7773_v14, 16  ;;  %v179_v28 = vshll.u32 %v7778_v19, 16  ;;  %v7792_v29 = vld [vmem:[%s11106_s0 + $0x18] sm:$0xf] }
   0x8   :  { %7626 = vmatprep.subr.msk.bf16.mxu0 %vm1096_vm0, %v128_v24  ;;  %v162_v31 = vrot.slane %v160_v21, 4  ;;  %v165_v32 = vrot.slane %v163_v22, 5  ;;  %v171_v33 = vrot.slane %v169_v23, 5  ;;  %v7803_v38 = vld [vmem:[%s11106_s0 + $0x1c] sm:$0xf]  ;;  %v1646_v41 = vsel %vm1096_vm0, %v123_v11, 0 }
   0x9   :  { %v143_v34 = vrot.slane %v142_v25, 4  ;;  %v153_v35 = vrot.slane %v152_v26, 4  ;;  %v175_v36 = vrot.slane %v173_v27, 4  ;;  %v181_v37 = vrot.slane %v179_v28, 5  ;;  %v7810_v42 = vld [vmem:[%s11106_s0 + $0x20] sm:$0x1] }
   0xa   :  { %v166_v39 = vor.u32 %v165_v32, %v162_v31  ;;  %v184_v43 = vshrl.u32 %v7792_v29, 16  ;;  %v187_v47 = vshll.u32 %v7792_v29, 16  ;;  %v193_v51 = vshll.u32 %v7803_v38, 16  ;;  %v7824_v56 = vld [vmem:[%s11106_s0 + $0x24] sm:$0xf] }
   0xb   :  { %v148_v44 = vsel %vm7796_vm3, %v143_v34, %v147_v17  ;;  %v158_v45 = vsel %vm7796_vm3, %v153_v35, %v157_v20  ;;  %v176_v46 = vor.u32 %v175_v36, %v171_v33  ;;  %v197_v54 = vshrl.u32 %v7803_v38, 16  ;;  %v7834_v61 = vld [vmem:[%s11106_s0 + $0x28] sm:$0xf]  ;;  %v7841_v2 = vld [vmem:[%s11106_s0 + $0x2c] sm:$0x1] }
   0xc   :  { %v5783_v48 = vcombine.low %v148_v44, %v158_v45  ;;  %v167_v49 = vrot.slane %v166_v39, 4  ;;  %v186_v50 = vrot.slane %v184_v43, 4  ;;  %v189_v53 = vrot.slane %v187_v47, 5  ;;  %v7846_v3 = vld [vmem:[%s11106_s0 + $0x30] sm:$0xf] }
   0xd   :  { %v177_v52 = vrot.slane %v176_v46, 4  ;;  %v203_v55 = vshll.u32 %v7810_v42, 16  ;;  %v195_v58 = vrot.slane %v193_v51, 5  ;;  %v199_v0 = vrot.slane %v197_v54, 4  ;;  %v7859_v18 = vld [vmem:[%s11106_s0 + $0x34] sm:$0xf] }
   0xe   :  { %6514 = vmatprep.mubr.msk.bf16.mxu1 %vm999_vm4, %v5783_v48  ;;  %v172_v57 = vsel %vm7796_vm3, %v167_v49, %v171_v33  ;;  %v190_v63 = vor.u32 %v189_v53, %v186_v50  ;;  %v3561_v6 = vsel %vm1096_vm0, %v128_v24, 0  ;;  %v208_v7 = vshrl.u32 %v7824_v56, 16  ;;  %v7867_v25 = vld [vmem:[%s11106_s0 + $0x38] sm:$0x1]  ;;  %v7873_v32 = vld [vmem:[%s11106_s0 + $0x3c] sm:$0xf] }
   0xf   :  { %v182_v62 = vsel %vm7796_vm3, %v177_v52, %v181_v37  ;;  %v205_v1 = vrot.slane %v203_v55, 5  ;;  %v211_v8 = vshll.u32 %v7824_v56, 16  ;;  %v200_v10 = vor.u32 %v199_v0, %v195_v58  ;;  %v7885_v44 = vld [vmem:[%s11106_s0 + $0x40] sm:$0xf]  ;;  %v7897_v52 = vld [vmem:[%s11106_s0 + $0x44] sm:$0x1] }
  0x10   :  { %v5784_v5 = vcombine.low %v172_v57, %v182_v62  ;;  %v191_v9 = vrot.slane %v190_v63, 4  ;;  %v217_v11 = vshll.u32 %v7834_v61, 16  ;;  %v221_v12 = vshrl.u32 %v7834_v61, 16  ;;  %v7903_v54 = vld [vmem:[%s11106_s0 + $0x48] sm:$0xf] }
  0x11   :  { %v210_v15 = vrot.slane %v208_v7, 4  ;;  %v213_v16 = vrot.slane %v211_v8, 5  ;;  %v227_v17 = vshll.u32 %v7841_v2, 16  ;;  %v232_v20 = vshrl.u32 %v7846_v3, 16  ;;  %v7914_v7 = vld [vmem:[%s11106_s0 + $0x4c] sm:$0xf] }
  0x12   :  { %6778 = vmatprep.mubr.msk.bf16.mxu0 %vm999_vm4, %v5784_v5  ;;  %6515 = vmatmul.mubr.msk.bf16.vlgmr.msra.gmra.mrb[0].mxu1 %vm999_vm4, %v5784_v5  ;;  %v196_v21 = vsel %vm7796_vm3, %v191_v9, %v195_v58  ;;  %v201_v22 = vrot.slane %v200_v10, 4  ;;  %v219_v23 = vrot.slane %v217_v11, 5  ;;  %v223_v24 = vrot.slane %v221_v12, 4  ;;  %v8100_v60 = vld [vmem:[%s11106_s0 + $0x94] sm:$0xf] }
  0x13   :  { %6579 = vmatpush3.bf16.msra.mxu1 %v1646_v41  ;;  %v214_v26 = vor.u32 %v213_v16, %v210_v15  ;;  %v229_v27 = vrot.slane %v227_v17, 5  ;;  %v234_v28 = vrot.slane %v232_v20, 4  ;;  %v235_v31 = vshll.u32 %v7846_v3, 16  ;;  %v7927_v16 = vld [vmem:[%s11106_s0 + $0x50] sm:$0x1] }
  0x14   :  { %v206_v33 = vsel %vm7796_vm3, %v201_v22, %v205_v1  ;;  %v224_v34 = vor.u32 %v223_v24, %v219_v23  ;;  %v241_v35 = vshll.u32 %v7859_v18, 16  ;;  %v245_v36 = vshrl.u32 %v7859_v18, 16  ;;  %v7933_v20 = vld [vmem:[%s11106_s0 + $0x54] sm:$0xf] }
  0x15   :  { %v7879_v37 = vcombine.low %v196_v21, %v206_v33  ;;  %v215_v39 = vrot.slane %v214_v26, 4  ;;  %v237_v41 = vrot.slane %v235_v31, 5  ;;  %v251_v43 = vshll.u32 %v7867_v25, 16  ;;  %v7943_v33 = vld [vmem:[%s11106_s0 + $0x58] sm:$0xf] }
  0x16   :  { %v225_v45 = vrot.slane %v224_v34, 4  ;;  %v243_v46 = vrot.slane %v241_v35, 5  ;;  %v247_v47 = vrot.slane %v245_v36, 4  ;;  %v256_v48 = vshrl.u32 %v7873_v32, 16 }
  0x17   :  { %11234 = vst [vmem:[#allocation4_spill] sm:$0xff] %v7879_v37  ;;  %6779 = vmatmul.mubr.msk.bf16.vlgmr.msra.gmra.mrb[0].mxu0 %vm999_vm4, %v7879_v37  ;;  %6518 = vmatprep.mubr.msk.bf16.mxu1 %vm999_vm4, %v7879_v37  ;;  %v220_v49 = vsel %vm7796_vm3, %v215_v39, %v219_v23  ;;  %v238_v50 = vor.u32 %v237_v41, %v234_v28  ;;  %v253_v51 = vrot.slane %v251_v43, 5  ;;  %v259_v53 = vshll.u32 %v7873_v32, 16 }
  0x18   :  { %6843 = vmatpush3.bf16.msra.mxu0 %v3561_v6  ;;  %v230_v55 = vsel %vm7796_vm3, %v225_v45, %v229_v27  ;;  %v248_v57 = vor.u32 %v247_v47, %v243_v46  ;;  %v258_v58 = vrot.slane %v256_v48, 4  ;;  %v265_v62 = vshll.u32 %v7885_v44, 16 }
  0x19   :  { %v7908_v63 = vcombine.low %v220_v49, %v230_v55  ;;  %v239_v0 = vrot.slane %v238_v50, 4  ;;  %v261_v1 = vrot.slane %v259_v53, 5  ;;  %v269_v5 = vshrl.u32 %v7885_v44, 16  ;;  %v7964_v53 = vld [vmem:[%s11106_s0 + $0x60] sm:$0xf] }
  0x1a   :  { %v249_v8 = vrot.slane %v248_v57, 4  ;;  %v267_v6 = vrot.slane %v265_v62, 5  ;;  %v275_v9 = vshll.u32 %v7897_v52, 16  ;;  %v280_v10 = vshrl.u32 %v7903_v54, 16 }
  0x1b   :  { %11235 = vst [vmem:[#allocation5_spill] sm:$0xff] %v7908_v63  ;;  %6782 = vmatprep.mubr.msk.bf16.mxu0 %vm999_vm4, %v7908_v63  ;;  %6519 = vmatmul.mubr.msk.bf16.gmra.mrb[4].mxu1 %vm999_vm4, %v7908_v63  ;;  %v244_v11 = vsel %vm7796_vm3, %v239_v0, %v243_v46  ;;  %v262_v12 = vor.u32 %v261_v1, %v258_v58  ;;  %v271_v15 = vrot.slane %v269_v5, 4  ;;  %v283_v17 = vshll.u32 %v7903_v54, 16  ;;  %v7957_v46 = vld [vmem:[%s11106_s0 + $0x5c] sm:$0x1] }
  0x1c   :  { %v254_v21 = vsel %vm7796_vm3, %v249_v8, %v253_v51  ;;  %v277_v22 = vrot.slane %v275_v9, 5  ;;  %v282_v23 = vrot.slane %v280_v10, 4  ;;  %v289_v24 = vshll.u32 %v7914_v7, 16  ;;  %v7972_v0 = vld [vmem:[%s11106_s0 + $0x64] sm:$0xf] }
  0x1d   :  { %v7938_v26 = vcombine.low %v244_v11, %v254_v21  ;;  %v263_v27 = vrot.slane %v262_v12, 4  ;;  %v272_v28 = vor.u32 %v271_v15, %v267_v6  ;;  %v285_v31 = vrot.slane %v283_v17, 5  ;;  %v7982_v12 = vld [vmem:[%s11106_s0 + $0x68] sm:$0x1] }
  0x1e   :  { %v291_v34 = vrot.slane %v289_v24, 5  ;;  %v293_v35 = vshrl.u32 %v7914_v7, 16  ;;  %v299_v36 = vshll.u32 %v7927_v16, 16  ;;  %v304_v39 = vshrl.u32 %v7933_v20, 16 }
  0x1f   :  { %11236 = vst [vmem:[#allocation6_spill] sm:$0xff] %v7938_v26  ;;  %6783 = vmatmul.mubr.msk.bf16.gmra.mrb[4].mxu0 %vm999_vm4, %v7938_v26  ;;  %6522 = vmatprep.mubr.msk.bf16.mxu1 %vm999_vm4, %v7938_v26  ;;  %v268_v41 = vsel %vm7796_vm3, %v263_v27, %v267_v6  ;;  %v273_v43 = vrot.slane %v272_v28, 4  ;;  %v286_v45 = vor.u32 %v285_v31, %v282_v23  ;;  %v307_v47 = vshll.u32 %v7933_v20, 16 }
  0x20   :  { %v295_v48 = vrot.slane %v293_v35, 4  ;;  %v301_v49 = vrot.slane %v299_v36, 5  ;;  %v306_v50 = vrot.slane %v304_v39, 4  ;;  %v313_v51 = vshll.u32 %v7943_v33, 16 }
  0x21   :  { %v278_v55 = vsel %vm7796_vm3, %v273_v43, %v277_v22  ;;  %v287_v57 = vrot.slane %v286_v45, 4  ;;  %v309_v58 = vrot.slane %v307_v47, 5  ;;  %v317_v62 = vshrl.u32 %v7943_v33, 16  ;;  %v8003_v43 = vld [vmem:[%s11106_s0 + $0x70] sm:$0xf] }
  0x22   :  { %v7974_v1 = vcombine.low %v268_v41, %v278_v55  ;;  %v296_v5 = vor.u32 %v295_v48, %v291_v34  ;;  %v315_v8 = vrot.slane %v313_v51, 5  ;;  %v323_v6 = vshll.u32 %v7957_v46, 16 }
  0x23   :  { %v292_v9 = vsel %vm7796_vm3, %v287_v57, %v291_v34  ;;  %v310_v10 = vor.u32 %v309_v58, %v306_v50  ;;  %v319_v11 = vrot.slane %v317_v62, 4  ;;  %v328_v15 = vshrl.u32 %v7964_v53, 16  ;;  %v7995_v34 = vld [vmem:[%s11106_s0 + $0x6c] sm:$0xf] }
  0x24   :  { %11237 = vst [vmem:[#allocation7_spill] sm:$0xff] %v7974_v1  ;;  %6786 = vmatprep.mubr.msk.bf16.mxu0 %vm999_vm4, %v7974_v1  ;;  %6523 = vmatmul.mubr.msk.bf16.gmra.mrb[8].mxu1 %vm999_vm4, %v7974_v1  ;;  %v297_v17 = vrot.slane %v296_v5, 4  ;;  %v325_v21 = vrot.slane %v323_v6, 5  ;;  %v331_v22 = vshll.u32 %v7964_v53, 16  ;;  %v337_v23 = vshll.u32 %v7972_v0, 16 }
  0x25   :  { %v311_v24 = vrot.slane %v310_v10, 4  ;;  %v320_v27 = vor.u32 %v319_v11, %v315_v8  ;;  %v330_v28 = vrot.slane %v328_v15, 4  ;;  %v341_v31 = vshrl.u32 %v7972_v0, 16  ;;  %v8032_v10 = vld [vmem:[%s11105_s1 + $0xc] sm:$0x3] }
  0x26   :  { %v302_v35 = vsel %vm7796_vm3, %v297_v17, %v301_v49  ;;  %v333_v36 = vrot.slane %v331_v22, 5  ;;  %v339_v39 = vrot.slane %v337_v23, 5  ;;  %v347_v41 = vshll.u32 %v7982_v12, 16  ;;  %v8012_v49 = vld [vmem:[%s11106_s0 + $0x74] sm:$0x1]  ;;  %7627 = vmatprep.subr.msk.bf16.mxu0 %vm1096_vm0, %v8032_v10 }
  0x27   :  { %v8005_v45 = vcombine.low %v292_v9, %v302_v35  ;;  %v316_v47 = vsel %vm7796_vm3, %v311_v24, %v315_v8  ;;  %v321_v48 = vrot.slane %v320_v27, 4  ;;  %v343_v50 = vrot.slane %v341_v31, 4  ;;  %v8027_v9 = vld [vmem:[%s11106_s0 + $0x78] sm:$0xf]  ;;  %v8039_v22 = vld [vmem:[%s11106_s0 + $0x7c] sm:$0xf] }
  0x28   :  { %v334_v51 = vor.u32 %v333_v36, %v330_v28  ;;  %v349_v55 = vrot.slane %v347_v41, 5  ;;  %v352_v57 = vshrl.u32 %v7995_v34, 16  ;;  %v355_v58 = vshll.u32 %v7995_v34, 16  ;;  %v8053_v36 = vld [vmem:[%s11106_s0 + $0x80] sm:$0x1] }
  0x29   :  { %11238 = vst [vmem:[#allocation8_spill] sm:$0xff] %v8005_v45  ;;  %6787 = vmatmul.mubr.msk.bf16.gmra.mrb[8].mxu0 %vm999_vm4, %v8005_v45  ;;  %6526 = vmatprep.mubr.msk.bf16.mxu1 %vm999_vm4, %v8005_v45  ;;  %v326_v62 = vsel %vm7796_vm3, %v321_v48, %v325_v21  ;;  %v344_v5 = vor.u32 %v343_v50, %v339_v39  ;;  %v361_v8 = vshll.u32 %v8003_v43, 16  ;;  %v365_v6 = vshrl.u32 %v8003_v43, 16 }
  0x2a   :  { %v8034_v11 = vcombine.low %v316_v47, %v326_v62  ;;  %v335_v15 = vrot.slane %v334_v51, 4  ;;  %v354_v17 = vrot.slane %v352_v57, 4  ;;  %v357_v21 = vrot.slane %v355_v58, 5 }
  0x2b   :  { %v345_v23 = vrot.slane %v344_v5, 4  ;;  %v363_v24 = vrot.slane %v361_v8, 5  ;;  %v367_v27 = vrot.slane %v365_v6, 4  ;;  %v371_v28 = vshll.u32 %v8012_v49, 16  ;;  %v8070_v6 = vld [vmem:[%s11106_s0 + $0x88] sm:$0xf] }
  0x2c   :  { %11239 = vst [vmem:[#allocation9_spill] sm:$0xff] %v8034_v11  ;;  %6790 = vmatprep.mubr.msk.bf16.mxu0 %vm999_vm4, %v8034_v11  ;;  %6527 = vmatmul.mubr.msk.bf16.gmra.mrb[12].mxu1 %vm999_vm4, %v8034_v11  ;;  %v340_v31 = vsel %vm7796_vm3, %v335_v15, %v339_v39  ;;  %v358_v35 = vor.u32 %v357_v21, %v354_v17  ;;  %v376_v41 = vshrl.u32 %v8027_v9, 16  ;;  %v379_v47 = vshll.u32 %v8027_v9, 16  ;;  %v8063_v39 = vld [vmem:[%s11106_s0 + $0x84] sm:$0xf] }
  0x2d   :  { %v350_v48 = vsel %vm7796_vm3, %v345_v23, %v349_v55  ;;  %v368_v50 = vor.u32 %v367_v27, %v363_v24  ;;  %v373_v51 = vrot.slane %v371_v28, 5  ;;  %v385_v57 = vshll.u32 %v8039_v22, 16  ;;  %v8081_v28 = vld [vmem:[%s11106_s0 + $0x8c] sm:$0x1] }
  0x2e   :  { %v8065_v58 = vcombine.low %v340_v31, %v350_v48  ;;  %v359_v62 = vrot.slane %v358_v35, 4  ;;  %v378_v5 = vrot.slane %v376_v41, 4  ;;  %v381_v8 = vrot.slane %v379_v47, 5 }
  0x2f   :  { %v369_v55 = vrot.slane %v368_v50, 4  ;;  %v387_v15 = vrot.slane %v385_v57, 5  ;;  %v389_v17 = vshrl.u32 %v8039_v22, 16  ;;  %v395_v21 = vshll.u32 %v8053_v36, 16  ;;  %v8093_v50 = vld [vmem:[%s11106_s0 + $0x90] sm:$0xf] }
  0x30   :  { %11240 = vst [vmem:[#allocation10_spill] sm:$0xff] %v8065_v58  ;;  %6530 = vmatprep.mubr.msk.bf16.mxu1 %vm999_vm4, %v8065_v58  ;;  %v364_v23 = vsel %vm7796_vm3, %v359_v62, %v363_v24  ;;  %v382_v27 = vor.u32 %v381_v8, %v378_v5  ;;  %v400_v31 = vshrl.u32 %v8063_v39, 16  ;;  %v403_v35 = vshll.u32 %v8063_v39, 16 }
  0x31   :  { %6791 = vmatmul.mubr.msk.bf16.gmra.mrb[12].mxu0 %vm999_vm4, %v8065_v58  ;;  %v374_v41 = vsel %vm7796_vm3, %v369_v55, %v373_v51  ;;  %v391_v47 = vrot.slane %v389_v17, 4  ;;  %v397_v48 = vrot.slane %v395_v21, 5  ;;  %v409_v24 = vshll.u32 %v8070_v6, 16 }
  0x32   :  { %v8095_v57 = vcombine.low %v364_v23, %v374_v41  ;;  %v383_v62 = vrot.slane %v382_v27, 4  ;;  %v402_v5 = vrot.slane %v400_v31, 4  ;;  %v405_v8 = vrot.slane %v403_v35, 5  ;;  %v8113_v31 = vld [vmem:[%s11106_s0 + $0x98] sm:$0x1] }
  0x33   :  { %v392_v51 = vor.u32 %v391_v47, %v387_v15  ;;  %v411_v55 = vrot.slane %v409_v24, 5  ;;  %v413_v17 = vshrl.u32 %v8070_v6, 16  ;;  %v419_v21 = vshll.u32 %v8081_v28, 16 }
  0x34   :  { %11241 = vst [vmem:[#allocation11_spill] sm:$0xff] %v8095_v57  ;;  %6794 = vmatprep.mubr.msk.bf16.mxu0 %vm999_vm4, %v8095_v57  ;;  %6531 = vmatmul.mubr.msk.bf16.gmra.mrb[16].mxu1 %vm999_vm4, %v8095_v57  ;;  %v388_v23 = vsel %vm7796_vm3, %v383_v62, %v387_v15  ;;  %v406_v27 = vor.u32 %v405_v8, %v402_v5  ;;  %v424_v35 = vshrl.u32 %v8093_v50, 16  ;;  %v427_v41 = vshll.u32 %v8093_v50, 16  ;;  %v8122_v62 = vld [vmem:[%s11106_s0 + $0x9c] sm:$0xf] }
  0x35   :  { %v393_v47 = vrot.slane %v392_v51, 4  ;;  %v415_v24 = vrot.slane %v413_v17, 4  ;;  %v421_v59 = vrot.slane %v419_v21, 5  ;;  %v433_v40 = vshll.u32 %v8100_v60, 16  ;;  %v8130_v17 = vld [vmem:[%s11106_s0 + $0xa0] sm:$0xf] }
  0x36   :  { %v407_v4 = vrot.slane %v406_v27, 4  ;;  %v426_v57 = vrot.slane %v424_v35, 4  ;;  %v429_v58 = vrot.slane %v427_v41, 5  ;;  %v437_v15 = vshrl.u32 %v8100_v60, 16  ;;  %11242 = vst [vmem:[#allocation12_spill] sm:$0xff] %v8130_v17 }
  0x37   :  { %v398_v5 = vsel %vm7796_vm3, %v393_v47, %v397_v48  ;;  %v416_v8 = vor.u32 %v415_v24, %v411_v55  ;;  %v435_v11 = vrot.slane %v433_v40, 5  ;;  %v443_v51 = vshll.u32 %v8113_v31, 16  ;;  %v8139_v48 = vld [vmem:[%s11106_s0 + $0xa4] sm:$0x1] }
  0x38   :  { %v8132_v21 = vcombine.low %v388_v23, %v398_v5  ;;  %v412_v27 = vsel %vm7796_vm3, %v407_v4, %v411_v55  ;;  %v430_v35 = vor.u32 %v429_v58, %v426_v57  ;;  %v439_v41 = vrot.slane %v437_v15, 4  ;;  %11244 = vst [vmem:[#allocation14_spill] sm:$0xff] %v8139_v48  ;;  %v8152_v23 = vld [vmem:[%s11106_s0 + $0xa8] sm:$0xf] }
  0x39   :  { %v417_v40 = vrot.slane %v416_v8, 4  ;;  %v445_v47 = vrot.slane %v443_v51, 5  ;;  %v448_v24 = vshrl.u32 %v8122_v62, 16  ;;  %v451_v45 = vshll.u32 %v8122_v62, 16  ;;  %11245 = vst [vmem:[#allocation15_spill] sm:$0xff] %v8152_v23 }
  0x3a   :  { %11243 = vst [vmem:[#allocation13_spill] sm:$0xff] %v8132_v21  ;;  %6795 = vmatmul.mubr.msk.bf16.gmra.mrb[16].mxu0 %vm999_vm4, %v8132_v21  ;;  %6534 = vmatprep.mubr.msk.bf16.mxu1 %vm999_vm4, %v8132_v21  ;;  %v431_v4 = vrot.slane %v430_v35, 4  ;;  %v440_v58 = vor.u32 %v439_v41, %v435_v11  ;;  %v457_v57 = vshll.u32 %v8130_v17, 16  ;;  %v461_v55 = vshrl.u32 %v8130_v17, 16  ;;  %v8160_v35 = vld [vmem:[%s11106_s0 + $0xac] sm:$0xf] }
  0x3b   :  { %v422_v15 = vsel %vm7796_vm3, %v417_v40, %v421_v59  ;;  %v450_v5 = vrot.slane %v448_v24, 4  ;;  %v453_v8 = vrot.slane %v451_v45, 5  ;;  %v467_v51 = vshll.u32 %v8139_v48, 16  ;;  %11246 = vst [vmem:[#allocation16_spill] sm:$0xff] %v8160_v35  ;;  %v8169_v59 = vld [vmem:[%s11106_s0 + $0xb0] sm:$0x1] }
  0x3c   :  { %v8162_v41 = vcombine.low %v412_v27, %v422_v15  ;;  %v436_v21 = vsel %vm7796_vm3, %v431_v4, %v435_v11  ;;  %v441_v1 = vrot.slane %v440_v58, 4  ;;  %v459_v26 = vrot.slane %v457_v57, 5  ;;  %11248 = vst [vmem:[#allocation18_spill] sm:$0xff] %v8169_v59  ;;  %v8184_v4 = vld [vmem:[%s11106_s0 + $0xb4] sm:$0xf] }
  0x3d   :  { %v454_v63 = vor.u32 %v453_v8, %v450_v5  ;;  %v463_v37 = vrot.slane %v461_v55, 4  ;;  %v469_v17 = vrot.slane %v467_v51, 5  ;;  %v472_v45 = vshrl.u32 %v8152_v23, 16  ;;  %11249 = vst [vmem:[#allocation19_spill] sm:$0xff] %v8184_v4 }
  0x3e   :  { %11247 = vst [vmem:[#allocation17_spill] sm:$0xff] %v8162_v41  ;;  %6798 = vmatprep.mubr.msk.bf16.mxu0 %vm999_vm4, %v8162_v41  ;;  %6535 = vmatmul.mubr.msk.bf16.gmra.mrb[20].mxu1 %vm999_vm4, %v8162_v41  ;;  %v446_v11 = vsel %vm7796_vm3, %v441_v1, %v445_v47  ;;  %v475_v27 = vshll.u32 %v8152_v23, 16  ;;  %v481_v40 = vshll.u32 %v8160_v35, 16  ;;  %v485_v24 = vshrl.u32 %v8160_v35, 16  ;;  %v8191_v1 = vld [vmem:[%s11106_s0 + $0xb8] sm:$0xf] }
  0x3f   :  { %v8186_v58 = vcombine.low %v436_v21, %v446_v11  ;;  %v455_v57 = vrot.slane %v454_v63, 4  ;;  %v464_v55 = vor.u32 %v463_v37, %v459_v26  ;;  %v474_v15 = vrot.slane %v472_v45, 4  ;;  %11251 = vst [vmem:[#allocation21_spill] sm:$0xff] %v8191_v1 }
  0x40   :  { %v477_v47 = vrot.slane %v475_v27, 5  ;;  %v483_v5 = vrot.slane %v481_v40, 5  ;;  %v487_v8 = vrot.slane %v485_v24, 4  ;;  %v491_v51 = vshll.u32 %v8169_v59, 16  ;;  %v8205_v24 = vld [vmem:[%s11106_s0 + $0xbc] sm:$0x1] }
  0x41   :  { %11250 = vst [vmem:[#allocation20_spill] sm:$0xff] %v8186_v58  ;;  %6538 = vmatprep.mubr.msk.bf16.mxu1 %vm999_vm4, %v8186_v58  ;;  %v460_v21 = vsel %vm7796_vm3, %v455_v57, %v459_v26  ;;  %v465_v11 = vrot.slane %v464_v55, 4  ;;  %v496_v37 = vshrl.u32 %v8184_v4, 16  ;;  %v499_v63 = vshll.u32 %v8184_v4, 16  ;;  %11252 = vst [vmem:[#allocation22_spill] sm:$0xff] %v8205_v24 }
  0x42   :  { %6799 = vmatmul.mubr.msk.bf16.gmra.mrb[20].mxu0 %vm999_vm4, %v8186_v58  ;;  %v478_v45 = vor.u32 %v477_v47, %v474_v15  ;;  %v488_v27 = vor.u32 %v487_v8, %v483_v5  ;;  %v493_v40 = vrot.slane %v491_v51, 5  ;;  %v505_v41 = vshll.u32 %v8191_v1, 16  ;;  %v8211_v26 = vld [vmem:[%s11106_s0 + $0xc0] sm:$0xf]  ;;  %v8219_v47 = vld [vmem:[%s11106_s0 + $0xc4] sm:$0xf] }
  0x43   :  { %11253 = vst [vmem:[#allocation23_spill] sm:$0xff] %v8211_v26  ;;  %v470_v57 = vsel %vm7796_vm3, %v465_v11, %v469_v17  ;;  %v498_v55 = vrot.slane %v496_v37, 4  ;;  %v501_v58 = vrot.slane %v499_v63, 5  ;;  %v509_v15 = vshrl.u32 %v8191_v1, 16  ;;  %11254 = vst [vmem:[#allocation24_spill] sm:$0xff] %v8219_v47 }
  0x44   :  { %v8221_v8 = vcombine.low %v460_v21, %v470_v57  ;;  %v479_v51 = vrot.slane %v478_v45, 4  ;;  %v489_v4 = vrot.slane %v488_v27, 4  ;;  %v507_v59 = vrot.slane %v505_v41, 5  ;;  %v8236_v41 = vld [vmem:[%s11106_s0 + $0xc8] sm:$0x1] }
  0x45   :  { %v502_v35 = vor.u32 %v501_v58, %v498_v55  ;;  %v511_v23 = vrot.slane %v509_v15, 4  ;;  %v515_v48 = vshll.u32 %v8205_v24, 16  ;;  %v3117_v17 = vshrl.u32 %v8211_v26, 16  ;;  %11256 = vst [vmem:[#allocation26_spill] sm:$0xff] %v8236_v41  ;;  %v69_v63 = vld [vmem:[%s11106_s0 + $0xd8] sm:$0xf] }
  0x46   :  { %11255 = vst [vmem:[#allocation25_spill] sm:$0xff] %v8221_v8  ;;  %6802 = vmatprep.mubr.msk.bf16.mxu0 %vm999_vm4, %v8221_v8  ;;  %6539 = vmatmul.mubr.msk.bf16.gmra.mrb[24].mxu1 %vm999_vm4, %v8221_v8  ;;  %v484_v11 = vsel %vm7796_vm3, %v479_v51, %v483_v5  ;;  %v494_v21 = vsel %vm7796_vm3, %v489_v4, %v493_v40  ;;  %v3120_v58 = vshll.u32 %v8211_v26, 16  ;;  %v3126_v37 = vshll.u32 %v8219_v47, 16  ;;  %v70_v4 = vld [vmem:[%s11106_s0 + $0xdc] sm:$0xf] }
  0x47   :  { %v8243_v45 = vcombine.low %v484_v11, %v494_v21  ;;  %v503_v27 = vrot.slane %v502_v35, 4  ;;  %v512_v5 = vor.u32 %v511_v23, %v507_v59  ;;  %v517_v57 = vrot.slane %v515_v48, 5 }
  0x48   :  { %v3119_v40 = vrot.slane %v3117_v17, 4  ;;  %v3122_v55 = vrot.slane %v3120_v58, 5  ;;  %v3128_v15 = vrot.slane %v3126_v37, 5  ;;  %v3130_v51 = vshrl.u32 %v8219_v47, 16  ;;  %v71_v17 = vld [vmem:[%s11106_s0 + $0xe0] sm:$0x1] }
  0x49   :  { %11257 = vst [vmem:[#allocation27_spill] sm:$0xff] %v8243_v45  ;;  %6542 = vmatprep.mubr.msk.bf16.mxu1 %vm999_vm4, %v8243_v45  ;;  %v508_v8 = vsel %vm7796_vm3, %v503_v27, %v507_v59  ;;  %v513_v11 = vrot.slane %v512_v5, 4  ;;  %v3136_v35 = vshll.u32 %v8236_v41, 16  ;;  %v520_v23 = vshrl.u32 %v69_v63, 16 }
  0x4a   :  { %6803 = vmatmul.mubr.msk.bf16.gmra.mrb[24].mxu0 %vm999_vm4, %v8243_v45  ;;  %v3123_v48 = vor.u32 %v3122_v55, %v3119_v40  ;;  %v3132_v21 = vrot.slane %v3130_v51, 4  ;;  %v523_v58 = vshll.u32 %v69_v63, 16  ;;  %v529_v37 = vshll.u32 %v70_v4, 16  ;;  %v8266_v40 = vld [vmem:[%s11105_s1 + $0x4] sm:$0x3] }
  0x4b   :  { %v518_v47 = vsel %vm7796_vm3, %v513_v11, %v517_v57  ;;  %v3138_v26 = vrot.slane %v3136_v35, 5  ;;  %v522_v59 = vrot.slane %v520_v23, 4  ;;  %v533_v27 = vshrl.u32 %v70_v4, 16  ;;  %v8271_v57 = vld [vmem:[%s11106_s0 + $0xe4] sm:$0xf]  ;;  %7622 = vmatprep.subr.msk.bf16.mxu1 %vm1096_vm0, %v8266_v40 }
  0x4c   :  { %v8261_v5 = vcombine.low %v508_v8, %v518_v47  ;;  %v3124_v41 = vrot.slane %v3123_v48, 4  ;;  %v3133_v24 = vor.u32 %v3132_v21, %v3128_v15  ;;  %v525_v1 = vrot.slane %v523_v58, 5  ;;  %v8460_v45 = vld [vmem:[%s11106_s0 + $0x11c] sm:$0x1] }
  0x4d   :  { %v531_v55 = vrot.slane %v529_v37, 5  ;;  %v535_v51 = vrot.slane %v533_v27, 4  ;;  %v539_v63 = vshll.u32 %v71_v17, 16  ;;  %vm1970_vm6 = vcmask 1046532   ;;  %v8290_v17 = vld [vmem:[%s11106_s0 + $0xe8] sm:$0xf] }
  0x4e   :  { %11258 = vst [vmem:[#allocation28_spill] sm:$0xff] %v8261_v5  ;;  %6806 = vmatprep.mubr.msk.bf16.mxu0 %vm999_vm4, %v8261_v5  ;;  %6543 = vmatmul.mubr.msk.bf16.gmra.mrb[28].mxu1 %vm999_vm4, %v8261_v5  ;;  %v3129_v47 = vsel %vm7796_vm3, %v3124_v41, %v3128_v15  ;;  %v3134_v8 = vrot.slane %v3133_v24, 4  ;;  %v526_v4 = vor.u32 %v525_v1, %v522_v59  ;;  %vm8281_vm7 = vmor %vm1969_vm5, %vm1970_vm6  ;;  %v5912_v48 = vrot.slane %v7768_v13, 9  ;;  %v8297_v41 = vld [vmem:[%s11106_s0 + $0xec] sm:$0x1] }
  0x4f   :  { %v536_v11 = vor.u32 %v535_v51, %v531_v55  ;;  %v541_v35 = vrot.slane %v539_v63, 5  ;;  %v1981_v21 = vrot.slane %v7773_v14, 5  ;;  %v544_v15 = vshrl.u32 %v8271_v57, 16 }
  0x50   :  { %v3139_v24 = vsel %vm7796_vm3, %v3134_v8, %v3138_v26  ;;  %v527_v1 = vrot.slane %v526_v4, 4  ;;  %v547_v13 = vshll.u32 %v8271_v57, 16  ;;  %v553_v63 = vshll.u32 %v8290_v17, 16 }
  0x51   :  { %v8301_v58 = vcombine.low %v3129_v47, %v3139_v24  ;;  %v537_v14 = vrot.slane %v536_v11, 4  ;;  %v1982_v37 = vsel %vm8281_vm7, %v5912_v48, %v1981_v21  ;;  %v1983_v59 = vrot.slane %v1981_v21, 4 }
  0x52   :  { %v532_v26 = vsel %vm7796_vm3, %v527_v1, %v531_v55  ;;  %v546_v27 = vrot.slane %v544_v15, 4  ;;  %v549_v51 = vrot.slane %v547_v13, 5  ;;  %v11262_v47 = vrot.slane %v7778_v19, 5  ;;  %v8321_v55 = vld [vmem:[%s11106_s0 + $0xf0] sm:$0xf] }
  0x53   :  { %11261 = vst [vmem:[#allocation29_spill] sm:$0xff] %v8301_v58  ;;  %6807 = vmatmul.mubr.msk.bf16.gmra.mrb[28].mxu0 %vm999_vm4, %v8301_v58  ;;  %v542_v8 = vsel %vm7796_vm3, %v537_v14, %v541_v35  ;;  %v557_v11 = vshrl.u32 %v8290_v17, 16  ;;  %v563_v48 = vshll.u32 %v8297_v41, 16  ;;  %v555_v15 = vrot.slane %v553_v63, 5  ;;  %v8328_v19 = vld [vmem:[%s11106_s0 + $0xf4] sm:$0xf] }
  0x54   :  { %v1985_v4 = vsel %vm8281_vm7, %v1983_v59, %v11262_v47  ;;  %v5799_v21 = vcombine.low %v532_v26, %v542_v8  ;;  %v550_v1 = vor.u32 %v549_v51, %v546_v27  ;;  %v5913_v14 = vrot.slane %v7792_v29, 9  ;;  %v8341_v27 = vld [vmem:[%s11106_s0 + $0xf8] sm:$0x1] }
  0x55   :  { %v8323_v24 = vcombine.low %v1982_v37, %v1985_v4  ;;  %v559_v35 = vrot.slane %v557_v11, 4  ;;  %v565_v13 = vrot.slane %v563_v48, 5  ;;  %v11264_v59 = vrot.slane %v7803_v38, 5  ;;  %v8361_v38 = vld [vmem:[%s11106_s0 + $0xfc] sm:$0xf] }
  0x56   :  { %6546 = vmatprep.mubr.msk.bf16.mxu1 %vm999_vm4, %v5799_v21  ;;  %v551_v37 = vrot.slane %v550_v1, 4  ;;  %v3933_v26 = vsel %vm1096_vm0, %v8032_v10, 0  ;;  %v568_v51 = vshrl.u32 %v8321_v55, 16  ;;  %v571_v29 = vshll.u32 %v8321_v55, 16 }
  0x57   :  { %11263 = vst [vmem:[#allocation30_spill] sm:$0xff] %v8323_v24  ;;  %v1990_v47 = vrot.slane %v11264_v59, 4  ;;  %6844 = vmatprep.mubr.msk.bf16.mxu0 %vm999_vm4, %v8323_v24  ;;  %v560_v63 = vor.u32 %v559_v35, %v555_v15  ;;  %v11265_v8 = vmov %v11264_v59  ;;  %v11266_v11 = vrot.slane %v7810_v42, 5 }
  0x58   :  { %v1989_v4 = vsel %vm8281_vm7, %v5913_v14, %v11265_v8  ;;  %v577_v48 = vshll.u32 %v8328_v19, 16  ;;  %v556_v21 = vsel %vm7796_vm3, %v551_v37, %v555_v15  ;;  %v570_v59 = vrot.slane %v568_v51, 4  ;;  %v8371_v51 = vld [vmem:[%s11106_s0 + $0x100] sm:$0xf] }
  0x59   :  { %v1992_v10 = vsel %vm8281_vm7, %v1990_v47, %v11266_v11  ;;  %v573_v58 = vrot.slane %v571_v29, 5  ;;  %v561_v35 = vrot.slane %v560_v63, 4  ;;  %v581_v42 = vshrl.u32 %v8328_v19, 16 }
  0x5a   :  { %v8356_v1 = vcombine.low %v1989_v4, %v1992_v10  ;;  %v579_v14 = vrot.slane %v577_v48, 5  ;;  %v587_v47 = vshll.u32 %v8341_v27, 16  ;;  %v5914_v11 = vrot.slane %v7824_v56, 9  ;;  %v8380_v56 = vld [vmem:[%s11106_s0 + $0x104] sm:$0x1] }
  0x5b   :  { %v574_v8 = vor.u32 %v573_v58, %v570_v59  ;;  %v1995_v15 = vrot.slane %v7834_v61, 5  ;;  %v1998_v37 = vrot.slane %v7841_v2, 5  ;;  %v566_v29 = vsel %vm7796_vm3, %v561_v35, %v565_v13 }
  0x5c   :  { %11267 = vst [vmem:[#allocation31_spill] sm:$0xff] %v8356_v1  ;;  %6845 = vmatmul.mubr.msk.bf16.vlgmr.msra.gmra.mrb[0].mxu0 %vm999_vm4, %v8356_v1  ;;  %v583_v63 = vrot.slane %v581_v42, 4  ;;  %v589_v4 = vrot.slane %v587_v47, 5  ;;  %v592_v61 = vshrl.u32 %v8361_v38, 16  ;;  %v8383_v2 = vcombine.low %v556_v21, %v566_v29 }
  0x5d   :  { %6909 = vmatpush3.bf16.msra.mxu0 %v3933_v26  ;;  %v575_v58 = vrot.slane %v574_v8, 4  ;;  %v1996_v10 = vsel %vm8281_vm7, %v5914_v11, %v1995_v15  ;;  %v1997_v13 = vrot.slane %v1995_v15, 4  ;;  %v595_v35 = vshll.u32 %v8361_v38, 16  ;;  %v8400_v11 = vld [vmem:[%s11106_s0 + $0x108] sm:$0xf] }
  0x5e   :  { %11268 = vst [vmem:[#allocation32_spill] sm:$0xff] %v8383_v2  ;;  %v584_v48 = vor.u32 %v583_v63, %v579_v14  ;;  %v594_v59 = vrot.slane %v592_v61, 4  ;;  %v601_v42 = vshll.u32 %v8371_v51, 16  ;;  %6547 = vmatmul.mubr.msk.bf16.gmra.mrb[32].mxu1 %vm999_vm4, %v8383_v2  ;;  %v605_v21 = vshrl.u32 %v8371_v51, 16 }
  0x5f   :  { %v580_v47 = vsel %vm7796_vm3, %v575_v58, %v579_v14  ;;  %v1999_v26 = vsel %vm8281_vm7, %v1997_v13, %v1998_v37  ;;  %v611_v8 = vshll.u32 %v8380_v56, 16  ;;  %v597_v63 = vrot.slane %v595_v35, 5  ;;  %v8409_v58 = vld [vmem:[%s11106_s0 + $0x10c] sm:$0xf] }
  0x60   :  { %v585_v15 = vrot.slane %v584_v48, 4  ;;  %v8402_v29 = vcombine.low %v1996_v10, %v1999_v26  ;;  %v603_v61 = vrot.slane %v601_v42, 5  ;;  %v607_v2 = vrot.slane %v605_v21, 4 }
  0x61   :  { %v613_v5 = vrot.slane %v611_v8, 5  ;;  %v5915_v14 = vrot.slane %v7846_v3, 9  ;;  %v2002_v37 = vrot.slane %v7859_v18, 5  ;;  %v598_v10 = vor.u32 %v597_v63, %v594_v59  ;;  %v8419_v3 = vld [vmem:[%s11106_s0 + $0x110] sm:$0x1] }
  0x62   :  { %11269 = vst [vmem:[#allocation33_spill] sm:$0xff] %v8402_v29  ;;  %v590_v13 = vsel %vm7796_vm3, %v585_v15, %v589_v4  ;;  %6848 = vmatprep.mubr.msk.bf16.mxu0 %vm999_vm4, %v8402_v29  ;;  %v2005_v48 = vrot.slane %v7867_v25, 5  ;;  %v616_v18 = vshrl.u32 %v8400_v11, 16  ;;  %v608_v42 = vor.u32 %v607_v2, %v603_v61 }
  0x63   :  { %v8422_v35 = vcombine.low %v580_v47, %v590_v13  ;;  %v2003_v26 = vsel %vm8281_vm7, %v5915_v14, %v2002_v37  ;;  %v2004_v4 = vrot.slane %v2002_v37, 4  ;;  %v599_v21 = vrot.slane %v598_v10, 4 }
  0x64   :  { %v618_v8 = vrot.slane %v616_v18, 4  ;;  %v619_v59 = vshll.u32 %v8400_v11, 16  ;;  %v625_v25 = vshll.u32 %v8409_v58, 16  ;;  %v609_v15 = vrot.slane %v608_v42, 4  ;;  %v8441_v18 = vld [vmem:[%s11106_s0 + $0x114] sm:$0xf] }
  0x65   :  { %11270 = vst [vmem:[#allocation34_spill] sm:$0xff] %v8422_v35  ;;  %6550 = vmatprep.mubr.msk.bf16.mxu1 %vm999_vm4, %v8422_v35  ;;  %v2006_v63 = vsel %vm8281_vm7, %v2004_v4, %v2005_v48  ;;  %v629_v47 = vshrl.u32 %v8409_v58, 16  ;;  %v635_v2 = vshll.u32 %v8419_v3, 16  ;;  %v604_v14 = vsel %vm7796_vm3, %v599_v21, %v603_v61  ;;  %v8446_v48 = vld [vmem:[%s11106_s0 + $0x118] sm:$0xf] }
  0x66   :  { %v8436_v37 = vcombine.low %v2003_v26, %v2006_v63  ;;  %v621_v13 = vrot.slane %v619_v59, 5  ;;  %v627_v10 = vrot.slane %v625_v25, 5  ;;  %v614_v42 = vsel %vm7796_vm3, %v609_v15, %v613_v5 }
  0x67   :  { %v631_v4 = vrot.slane %v629_v47, 4  ;;  %v637_v35 = vrot.slane %v635_v2, 5  ;;  %v5916_v61 = vrot.slane %v7873_v32, 9  ;;  %v8451_v26 = vcombine.low %v604_v14, %v614_v42 }
  0x68   :  { %11271 = vst [vmem:[#allocation35_spill] sm:$0xff] %v8436_v37  ;;  %6849 = vmatmul.mubr.msk.bf16.gmra.mrb[4].mxu0 %vm999_vm4, %v8436_v37  ;;  %v622_v21 = vor.u32 %v621_v13, %v618_v8  ;;  %v2009_v59 = vrot.slane %v7885_v44, 5  ;;  %v2012_v25 = vrot.slane %v7897_v52, 5  ;;  %v640_v5 = vshrl.u32 %v8441_v18, 16 }
  0x69   :  { %11272 = vst [vmem:[#allocation36_spill] sm:$0xff] %v8451_v26  ;;  %v632_v63 = vor.u32 %v631_v4, %v627_v10  ;;  %v643_v32 = vshll.u32 %v8441_v18, 16  ;;  %v649_v15 = vshll.u32 %v8446_v48, 16  ;;  %6551 = vmatmul.mubr.msk.bf16.gmra.mrb[36].mxu1 %vm999_vm4, %v8451_v26  ;;  %v653_v47 = vshrl.u32 %v8446_v48, 16 }
  0x6a   :  { %v623_v8 = vrot.slane %v622_v21, 4  ;;  %v2010_v44 = vsel %vm8281_vm7, %v5916_v61, %v2009_v59  ;;  %v2011_v52 = vrot.slane %v2009_v59, 4  ;;  %v642_v14 = vrot.slane %v640_v5, 4  ;;  %v8478_v61 = vld [vmem:[%s11106_s0 + $0x120] sm:$0xf] }
  0x6b   :  { %v633_v2 = vrot.slane %v632_v63, 4  ;;  %v645_v13 = vrot.slane %v643_v32, 5  ;;  %v651_v42 = vrot.slane %v649_v15, 5  ;;  %v655_v29 = vrot.slane %v653_v47, 4 }
  0x6c   :  { %v628_v4 = vsel %vm7796_vm3, %v623_v8, %v627_v10  ;;  %v2013_v37 = vsel %vm8281_vm7, %v2011_v52, %v2012_v25  ;;  %v659_v26 = vshll.u32 %v8460_v45, 16  ;;  %v5917_v5 = vrot.slane %v7903_v54, 9  ;;  %v8488_v10 = vld [vmem:[%s11106_s0 + $0x124] sm:$0xf]  ;;  %v8499_v54 = vld [vmem:[%s11106_s0 + $0x128] sm:$0x1] }
  0x6d   :  { %v638_v21 = vsel %vm7796_vm3, %v633_v2, %v637_v35  ;;  %v8482_v59 = vcombine.low %v2010_v44, %v2013_v37  ;;  %v646_v63 = vor.u32 %v645_v13, %v642_v14  ;;  %v656_v32 = vor.u32 %v655_v29, %v651_v42 }
  0x6e   :  { %v8490_v25 = vcombine.low %v628_v4, %v638_v21  ;;  %v661_v15 = vrot.slane %v659_v26, 5  ;;  %v2016_v8 = vrot.slane %v7914_v7, 5  ;;  %v2019_v37 = vrot.slane %v7927_v16, 5 }
  0x6f   :  { %11273 = vst [vmem:[#allocation37_spill] sm:$0xff] %v8482_v59  ;;  %6852 = vmatprep.mubr.msk.bf16.mxu0 %vm999_vm4, %v8482_v59  ;;  %v647_v35 = vrot.slane %v646_v63, 4  ;;  %v664_v44 = vshrl.u32 %v8478_v61, 16  ;;  %v667_v52 = vshll.u32 %v8478_v61, 16  ;;  %v657_v29 = vrot.slane %v656_v32, 4 }
  0x70   :  { %11274 = vst [vmem:[#allocation38_spill] sm:$0xff] %v8490_v25  ;;  %6554 = vmatprep.mubr.msk.bf16.mxu1 %vm999_vm4, %v8490_v25  ;;  %v2017_v7 = vsel %vm8281_vm7, %v5917_v5, %v2016_v8  ;;  %v2018_v26 = vrot.slane %v2016_v8, 4  ;;  %v673_v47 = vshll.u32 %v8488_v10, 16  ;;  %v677_v13 = vshrl.u32 %v8488_v10, 16  ;;  %v8519_v5 = vld [vmem:[%s11106_s0 + $0x12c] sm:$0xf] }
  0x71   :  { %v652_v16 = vsel %vm7796_vm3, %v647_v35, %v651_v42  ;;  %v666_v2 = vrot.slane %v664_v44, 4  ;;  %v669_v14 = vrot.slane %v667_v52, 5  ;;  %v662_v4 = vsel %vm7796_vm3, %v657_v29, %v661_v15  ;;  %v8524_v42 = vld [vmem:[%s11105_s1 + $0xe] sm:$0x3] }
  0x72   :  { %v2020_v21 = vsel %vm8281_vm7, %v2018_v26, %v2019_v37  ;;  %v675_v63 = vrot.slane %v673_v47, 5  ;;  %v683_v32 = vshll.u32 %v8499_v54, 16  ;;  %11275 = vst [vmem:[#allocation39_spill] sm:$0xff] %v8524_v42  ;;  %v8526_v8 = vcombine.low %v652_v16, %v662_v4  ;;  %v8533_v37 = vld [vmem:[%s11106_s0 + $0x130] sm:$0xf]  ;;  %7628 = vmatprep.subr.msk.bf16.mxu0 %vm1096_vm0, %v8524_v42 }
  0x73   :  { %v8528_v35 = vcombine.low %v2017_v7, %v2020_v21  ;;  %v670_v15 = vor.u32 %v669_v14, %v666_v2  ;;  %v679_v44 = vrot.slane %v677_v13, 4  ;;  %v5918_v29 = vrot.slane %v7933_v20, 9  ;;  %v8547_v2 = vld [vmem:[%s11106_s0 + $0x134] sm:$0x1] }
  0x74   :  { %11276 = vst [vmem:[#allocation40_spill] sm:$0xff] %v8526_v8  ;;  %v685_v52 = vrot.slane %v683_v32, 5  ;;  %v2023_v26 = vrot.slane %v7943_v33, 5  ;;  %v2026_v47 = vrot.slane %v7957_v46, 5  ;;  %6555 = vmatmul.mubr.msk.bf16.gmra.mrb[40].mxu1 %vm999_vm4, %v8526_v8  ;;  %v688_v14 = vshrl.u32 %v8519_v5, 16 }
  0x75   :  { %11277 = vst [vmem:[#allocation41_spill] sm:$0xff] %v8528_v35  ;;  %6853 = vmatmul.mubr.msk.bf16.gmra.mrb[8].mxu0 %vm999_vm4, %v8528_v35  ;;  %v671_v7 = vrot.slane %v670_v15, 4  ;;  %v680_v16 = vor.u32 %v679_v44, %v675_v63  ;;  %v691_v20 = vshll.u32 %v8519_v5, 16  ;;  %v697_v13 = vshll.u32 %v8533_v37, 16 }
  0x76   :  { %v2024_v33 = vsel %vm8281_vm7, %v5918_v29, %v2023_v26  ;;  %v2025_v46 = vrot.slane %v2023_v26, 4  ;;  %v701_v4 = vshrl.u32 %v8533_v37, 16  ;;  %v690_v15 = vrot.slane %v688_v14, 4  ;;  %v8563_v29 = vld [vmem:[%s11106_s0 + $0x138] sm:$0xf] }
  0x77   :  { %v676_v21 = vsel %vm7796_vm3, %v671_v7, %v675_v63  ;;  %v681_v32 = vrot.slane %v680_v16, 4  ;;  %v693_v44 = vrot.slane %v691_v20, 5  ;;  %v699_v25 = vrot.slane %v697_v13, 5 }
  0x78   :  { %v2027_v8 = vsel %vm8281_vm7, %v2025_v46, %v2026_v47  ;;  %v703_v35 = vrot.slane %v701_v4, 4  ;;  %v707_v59 = vshll.u32 %v8547_v2, 16  ;;  %v5919_v7 = vrot.slane %v7964_v53, 9  ;;  %v8573_v47 = vld [vmem:[%s11106_s0 + $0x13c] sm:$0xf] }
  0x79   :  { %v686_v26 = vsel %vm7796_vm3, %v681_v32, %v685_v52  ;;  %v8567_v1 = vcombine.low %v2024_v33, %v2027_v8  ;;  %v694_v63 = vor.u32 %v693_v44, %v690_v15  ;;  %v2030_v46 = vrot.slane %v7972_v0, 5  ;;  %v8584_v53 = vld [vmem:[%s11106_s0 + $0x140] sm:$0x1] }
  0x7a   :  { %v8575_v16 = vcombine.low %v676_v21, %v686_v26  ;;  %v704_v14 = vor.u32 %v703_v35, %v699_v25  ;;  %v709_v20 = vrot.slane %v707_v59, 5  ;;  %v2033_v8 = vrot.slane %v7982_v12, 5 }
  0x7b   :  { %11278 = vst [vmem:[#allocation42_spill] sm:$0xff] %v8567_v1  ;;  %6856 = vmatprep.mubr.msk.bf16.mxu0 %vm999_vm4, %v8567_v1  ;;  %v695_v52 = vrot.slane %v694_v63, 4  ;;  %v712_v33 = vshrl.u32 %v8563_v29, 16  ;;  %v715_v13 = vshll.u32 %v8563_v29, 16  ;;  %v2031_v0 = vsel %vm8281_vm7, %v5919_v7, %v2030_v46  ;;  %v8604_v7 = vld [vmem:[%s11106_s0 + $0x144] sm:$0xf] }
  0x7c   :  { %11279 = vst [vmem:[#allocation43_spill] sm:$0xff] %v8575_v16  ;;  %6558 = vmatprep.mubr.msk.bf16.mxu1 %vm999_vm4, %v8575_v16  ;;  %v705_v59 = vrot.slane %v704_v14, 4  ;;  %v2032_v35 = vrot.slane %v2030_v46, 4  ;;  %v721_v4 = vshll.u32 %v8573_v47, 16  ;;  %v725_v15 = vshrl.u32 %v8573_v47, 16 }
  0x7d   :  { %v700_v12 = vsel %vm7796_vm3, %v695_v52, %v699_v25  ;;  %v714_v21 = vrot.slane %v712_v33, 4  ;;  %v717_v32 = vrot.slane %v715_v13, 5  ;;  %v731_v14 = vshll.u32 %v8584_v53, 16 }
  0x7e   :  { %v710_v44 = vsel %vm7796_vm3, %v705_v59, %v709_v20  ;;  %v2034_v26 = vsel %vm8281_vm7, %v2032_v35, %v2033_v8  ;;  %v723_v63 = vrot.slane %v721_v4, 5  ;;  %v727_v33 = vrot.slane %v725_v15, 4  ;;  %v8613_v20 = vld [vmem:[%s11106_s0 + $0x148] sm:$0xf] }
  0x7f   :  { %v8606_v46 = vcombine.low %v700_v12, %v710_v44  ;;  %v8608_v25 = vcombine.low %v2031_v0, %v2034_v26  ;;  %v718_v52 = vor.u32 %v717_v32, %v714_v21  ;;  %v733_v8 = vrot.slane %v731_v14, 5  ;;  %v8625_v12 = vld [vmem:[%s11106_s0 + $0x14c] sm:$0x1] }
  0x80   :  { %v5920_v13 = vrot.slane %v7995_v34, 9  ;;  %v2037_v59 = vrot.slane %v8003_v43, 5  ;;  %v2040_v35 = vrot.slane %v8012_v49, 5  ;;  %v728_v4 = vor.u32 %v727_v33, %v723_v63 }
  0x81   :  { %11280 = vst [vmem:[#allocation44_spill] sm:$0xff] %v8606_v46  ;;  %11281 = vst [vmem:[#allocation45_spill] sm:$0xff] %v8608_v25  ;;  %6559 = vmatmul.mubr.msk.bf16.gmra.mrb[44].mxu1 %vm999_vm4, %v8606_v46  ;;  %6857 = vmatmul.mubr.msk.bf16.gmra.mrb[12].mxu0 %vm999_vm4, %v8608_v25  ;;  %v719_v0 = vrot.slane %v718_v52, 4  ;;  %v736_v21 = vshrl.u32 %v8604_v7, 16  ;;  %v739_v34 = vshll.u32 %v8604_v7, 16  ;;  %v745_v32 = vshll.u32 %v8613_v20, 16 }
  0x82   :  { %v2038_v43 = vsel %vm8281_vm7, %v5920_v13, %v2037_v59  ;;  %v2039_v49 = vrot.slane %v2037_v59, 4  ;;  %v749_v15 = vshrl.u32 %v8613_v20, 16  ;;  %v729_v26 = vrot.slane %v728_v4, 4  ;;  %v8641_v13 = vld [vmem:[%s11106_s0 + $0x150] sm:$0xf] }
  0x83   :  { %v724_v44 = vsel %vm7796_vm3, %v719_v0, %v723_v63  ;;  %v738_v14 = vrot.slane %v736_v21, 4  ;;  %v741_v52 = vrot.slane %v739_v34, 5  ;;  %v747_v46 = vrot.slane %v745_v32, 5  ;;  %11282 = vst [vmem:[#allocation46_spill] sm:$0xff] %v8641_v13 }
  0x84   :  { %v2041_v33 = vsel %vm8281_vm7, %v2039_v49, %v2040_v35  ;;  %v751_v16 = vrot.slane %v749_v15, 4  ;;  %v755_v25 = vshll.u32 %v8625_v12, 16  ;;  %v734_v59 = vsel %vm7796_vm3, %v729_v26, %v733_v8  ;;  %v8651_v35 = vld [vmem:[%s11106_s0 + $0x154] sm:$0xf] }
  0x85   :  { %v8645_v1 = vcombine.low %v2038_v43, %v2041_v33  ;;  %v742_v63 = vor.u32 %v741_v52, %v738_v14  ;;  %v5921_v0 = vrot.slane %v8027_v9, 9  ;;  %11284 = vst [vmem:[#allocation48_spill] sm:$0xff] %v8651_v35  ;;  %v8653_v4 = vcombine.low %v724_v44, %v734_v59  ;;  %v8662_v9 = vld [vmem:[%s11106_s0 + $0x158] sm:$0x1] }
  0x86   :  { %v752_v21 = vor.u32 %v751_v16, %v747_v46  ;;  %v757_v34 = vrot.slane %v755_v25, 5  ;;  %v2044_v49 = vrot.slane %v8039_v22, 5  ;;  %v2047_v43 = vrot.slane %v8053_v36, 5  ;;  %11286 = vst [vmem:[#allocation50_spill] sm:$0xff] %v8662_v9 }
  0x87   :  { %11283 = vst [vmem:[#allocation47_spill] sm:$0xff] %v8645_v1  ;;  %11285 = vst [vmem:[#allocation49_spill] sm:$0xff] %v8653_v4  ;;  %6860 = vmatprep.mubr.msk.bf16.mxu0 %vm999_vm4, %v8645_v1  ;;  %v743_v8 = vrot.slane %v742_v63, 4  ;;  %v760_v32 = vshrl.u32 %v8641_v13, 16  ;;  %v763_v15 = vshll.u32 %v8641_v13, 16  ;;  %6562 = vmatprep.mubr.msk.bf16.mxu1 %vm999_vm4, %v8653_v4  ;;  %v769_v44 = vshll.u32 %v8651_v35, 16 }
  0x88   :  { %v753_v16 = vrot.slane %v752_v21, 4  ;;  %v2045_v22 = vsel %vm8281_vm7, %v5921_v0, %v2044_v49  ;;  %v2046_v25 = vrot.slane %v2044_v49, 4  ;;  %v773_v52 = vshrl.u32 %v8651_v35, 16  ;;  %v8682_v0 = vld [vmem:[%s11106_s0 + $0x15c] sm:$0xf] }
  0x89   :  { %v748_v36 = vsel %vm7796_vm3, %v743_v8, %v747_v46  ;;  %v762_v26 = vrot.slane %v760_v32, 4  ;;  %v765_v14 = vrot.slane %v763_v15, 5  ;;  %v771_v63 = vrot.slane %v769_v44, 5  ;;  %11287 = vst [vmem:[#allocation51_spill] sm:$0xff] %v8682_v0 }
  0x8a   :  { %v758_v33 = vsel %vm7796_vm3, %v753_v16, %v757_v34  ;;  %v2048_v59 = vsel %vm8281_vm7, %v2046_v25, %v2047_v43  ;;  %v779_v21 = vshll.u32 %v8662_v9, 16  ;;  %v775_v32 = vrot.slane %v773_v52, 4  ;;  %v8691_v34 = vld [vmem:[%s11106_s0 + $0x160] sm:$0xf] }
  0x8b   :  { %v8684_v49 = vcombine.low %v748_v36, %v758_v33  ;;  %v8686_v46 = vcombine.low %v2045_v22, %v2048_v59  ;;  %v766_v8 = vor.u32 %v765_v14, %v762_v26  ;;  %11290 = vst [vmem:[#allocation54_spill] sm:$0xff] %v8691_v34  ;;  %v5922_v15 = vrot.slane %v8063_v39, 9  ;;  %v8703_v36 = vld [vmem:[%s11106_s0 + $0x164] sm:$0x1] }
  0x8c   :  { %v781_v43 = vrot.slane %v779_v21, 5  ;;  %v2051_v16 = vrot.slane %v8070_v6, 5  ;;  %v2054_v25 = vrot.slane %v8081_v28, 5  ;;  %v776_v44 = vor.u32 %v775_v32, %v771_v63  ;;  %11291 = vst [vmem:[#allocation55_spill] sm:$0xff] %v8703_v36 }
  0x8d   :  { %11288 = vst [vmem:[#allocation52_spill] sm:$0xff] %v8684_v49  ;;  %11289 = vst [vmem:[#allocation53_spill] sm:$0xff] %v8686_v46  ;;  %6563 = vmatmul.mubr.msk.bf16.gmra.mrb[48].mxu1 %vm999_vm4, %v8684_v49  ;;  %6861 = vmatmul.mubr.msk.bf16.gmra.mrb[16].mxu0 %vm999_vm4, %v8686_v46  ;;  %v767_v22 = vrot.slane %v766_v8, 4  ;;  %v784_v26 = vshrl.u32 %v8682_v0, 16  ;;  %v787_v39 = vshll.u32 %v8682_v0, 16  ;;  %v793_v14 = vshll.u32 %v8691_v34, 16 }
  0x8e   :  { %v2052_v6 = vsel %vm8281_vm7, %v5922_v15, %v2051_v16  ;;  %v2053_v28 = vrot.slane %v2051_v16, 4  ;;  %v797_v52 = vshrl.u32 %v8691_v34, 16  ;;  %v777_v59 = vrot.slane %v776_v44, 4  ;;  %v8719_v15 = vld [vmem:[%s11106_s0 + $0x168] sm:$0xf]  ;;  %v11310_v0 = vld [vmem:[#allocation22_spill] sm:$0xff] }
  0x8f   :  { %v772_v33 = vsel %vm7796_vm3, %v767_v22, %v771_v63  ;;  %v786_v21 = vrot.slane %v784_v26, 4  ;;  %v789_v8 = vrot.slane %v787_v39, 5  ;;  %v795_v49 = vrot.slane %v793_v14, 5 }
  0x90   :  { %v2055_v32 = vsel %vm8281_vm7, %v2053_v28, %v2054_v25  ;;  %v799_v4 = vrot.slane %v797_v52, 4  ;;  %v803_v46 = vshll.u32 %v8703_v36, 16  ;;  %v782_v16 = vsel %vm7796_vm3, %v777_v59, %v781_v43  ;;  %v8729_v25 = vld [vmem:[%s11106_s0 + $0x16c] sm:$0xf] }
  0x91   :  { %v8723_v1 = vcombine.low %v2052_v6, %v2055_v32  ;;  %v790_v63 = vor.u32 %v789_v8, %v786_v21  ;;  %v5923_v22 = vrot.slane %v8093_v50, 9  ;;  %v8731_v44 = vcombine.low %v772_v33, %v782_v16  ;;  %v8740_v50 = vld [vmem:[%s11106_s0 + $0x170] sm:$0x1] }
  0x92   :  { %v800_v26 = vor.u32 %v799_v4, %v795_v49  ;;  %v805_v39 = vrot.slane %v803_v46, 5  ;;  %v2058_v28 = vrot.slane %v8100_v60, 5  ;;  %v2061_v6 = vrot.slane %v8113_v31, 5 }
  0x93   :  { %11292 = vst [vmem:[#allocation56_spill] sm:$0xff] %v8723_v1  ;;  %11293 = vst [vmem:[#allocation57_spill] sm:$0xff] %v8731_v44  ;;  %6864 = vmatprep.mubr.msk.bf16.mxu0 %vm999_vm4, %v8723_v1  ;;  %v791_v43 = vrot.slane %v790_v63, 4  ;;  %v808_v14 = vshrl.u32 %v8719_v15, 16  ;;  %v811_v52 = vshll.u32 %v8719_v15, 16  ;;  %6566 = vmatprep.mubr.msk.bf16.mxu1 %vm999_vm4, %v8731_v44  ;;  %v817_v33 = vshll.u32 %v8729_v25, 16 }
  0x94   :  { %v801_v4 = vrot.slane %v800_v26, 4  ;;  %v2059_v60 = vsel %vm8281_vm7, %v5923_v22, %v2058_v28  ;;  %v2060_v46 = vrot.slane %v2058_v28, 4  ;;  %v821_v8 = vshrl.u32 %v8729_v25, 16  ;;  %v8760_v22 = vld [vmem:[%s11106_s0 + $0x174] sm:$0xf] }
  0x95   :  { %v796_v31 = vsel %vm7796_vm3, %v791_v43, %v795_v49  ;;  %v810_v59 = vrot.slane %v808_v14, 4  ;;  %v813_v21 = vrot.slane %v811_v52, 5  ;;  %v819_v63 = vrot.slane %v817_v33, 5  ;;  %v11297_v33 = vld [vmem:[#allocation14_spill] sm:$0xff] }
  0x96   :  { %v806_v32 = vsel %vm7796_vm3, %v801_v4, %v805_v39  ;;  %v2062_v16 = vsel %vm8281_vm7, %v2060_v46, %v2061_v6  ;;  %v827_v26 = vshll.u32 %v8740_v50, 16  ;;  %v823_v14 = vrot.slane %v821_v8, 4  ;;  %v8769_v39 = vld [vmem:[%s11106_s0 + $0x178] sm:$0xf]  ;;  %v11296_v4 = vld [vmem:[#allocation12_spill] sm:$0xff] }
  0x97   :  { %v8762_v28 = vcombine.low %v796_v31, %v806_v32  ;;  %v8764_v49 = vcombine.low %v2059_v60, %v2062_v16  ;;  %v814_v43 = vor.u32 %v813_v21, %v810_v59  ;;  %v5924_v52 = vrot.slane %v8122_v62, 9  ;;  %v8781_v59 = vld [vmem:[%s11106_s0 + $0x17c] sm:$0x1] }
  0x98   :  { %v829_v6 = vrot.slane %v827_v26, 5  ;;  %v2065_v46 = vrot.slane %v11296_v4, 5  ;;  %v2068_v44 = vrot.slane %v11297_v33, 5  ;;  %v824_v31 = vor.u32 %v823_v14, %v819_v63 }
  0x99   :  { %11294 = vst [vmem:[#allocation58_spill] sm:$0xff] %v8762_v28  ;;  %11295 = vst [vmem:[#allocation59_spill] sm:$0xff] %v8764_v49  ;;  %6567 = vmatmul.mubr.msk.bf16.gmra.mrb[52].mxu1 %vm999_vm4, %v8762_v28  ;;  %6865 = vmatmul.mubr.msk.bf16.gmra.mrb[20].mxu0 %vm999_vm4, %v8764_v49  ;;  %v815_v60 = vrot.slane %v814_v43, 4  ;;  %v832_v21 = vshrl.u32 %v8760_v22, 16  ;;  %v835_v62 = vshll.u32 %v8760_v22, 16  ;;  %v841_v16 = vshll.u32 %v8769_v39, 16 }
  0x9a   :  { %v2066_v8 = vsel %vm8281_vm7, %v5924_v52, %v2065_v46  ;;  %v2067_v32 = vrot.slane %v2065_v46, 4  ;;  %v845_v26 = vshrl.u32 %v8769_v39, 16  ;;  %v825_v14 = vrot.slane %v824_v31, 4  ;;  %v8797_v52 = vld [vmem:[%s11106_s0 + $0x180] sm:$0xf] }
  0x9b   :  { %v820_v43 = vsel %vm7796_vm3, %v815_v60, %v819_v63  ;;  %v834_v4 = vrot.slane %v832_v21, 4  ;;  %v837_v33 = vrot.slane %v835_v62, 5  ;;  %v843_v49 = vrot.slane %v841_v16, 5  ;;  %v11299_v60 = vld [vmem:[#allocation15_spill] sm:$0xff]  ;;  %v11301_v16 = vld [vmem:[#allocation16_spill] sm:$0xff] }
  0x9c   :  { %v2069_v28 = vsel %vm8281_vm7, %v2067_v32, %v2068_v44  ;;  %v847_v1 = vrot.slane %v845_v26, 4  ;;  %v851_v24 = vshll.u32 %v8781_v59, 16  ;;  %v830_v46 = vsel %vm7796_vm3, %v825_v14, %v829_v6  ;;  %v8807_v44 = vld [vmem:[%s11106_s0 + $0x184] sm:$0xf]  ;;  %v8818_v14 = vld [vmem:[%s11106_s0 + $0x188] sm:$0x1] }
  0x9d   :  { %v8801_v42 = vcombine.low %v2066_v8, %v2069_v28  ;;  %v838_v63 = vor.u32 %v837_v33, %v834_v4  ;;  %v5925_v31 = vrot.slane %v11299_v60, 9  ;;  %v8809_v21 = vcombine.low %v820_v43, %v830_v46  ;;  %v11302_v28 = vld [vmem:[#allocation18_spill] sm:$0xff]  ;;  %11303 = vst [vmem:[#allocation15_spill] sm:$0xff] %v8818_v14 }
  0x9e   :  { %v848_v62 = vor.u32 %v847_v1, %v843_v49  ;;  %v853_v32 = vrot.slane %v851_v24, 5  ;;  %v2072_v26 = vrot.slane %v11301_v16, 5  ;;  %v2075_v8 = vrot.slane %v11302_v28, 5 }
  0x9f   :  { %11298 = vst [vmem:[#allocation12_spill] sm:$0xff] %v8801_v42  ;;  %11300 = vst [vmem:[#allocation14_spill] sm:$0xff] %v8809_v21  ;;  %6868 = vmatprep.mubr.msk.bf16.mxu0 %vm999_vm4, %v8801_v42  ;;  %v839_v6 = vrot.slane %v838_v63, 4  ;;  %v856_v4 = vshrl.u32 %v8797_v52, 16  ;;  %v859_v43 = vshll.u32 %v8797_v52, 16  ;;  %6570 = vmatprep.mubr.msk.bf16.mxu1 %vm999_vm4, %v8809_v21  ;;  %v865_v46 = vshll.u32 %v8807_v44, 16 }
  0xa0   :  { %v849_v24 = vrot.slane %v848_v62, 4  ;;  %v2073_v1 = vsel %vm8281_vm7, %v5925_v31, %v2072_v26  ;;  %v2074_v33 = vrot.slane %v2072_v26, 4  ;;  %v869_v28 = vshrl.u32 %v8807_v44, 16  ;;  %v8838_v31 = vld [vmem:[%s11106_s0 + $0x18c] sm:$0xf] }
  0xa1   :  { %v844_v63 = vsel %vm7796_vm3, %v839_v6, %v843_v49  ;;  %v858_v60 = vrot.slane %v856_v4, 4  ;;  %v861_v16 = vrot.slane %v859_v43, 5  ;;  %v867_v62 = vrot.slane %v865_v46, 5  ;;  %11304 = vst [vmem:[#allocation16_spill] sm:$0xff] %v8838_v31  ;;  %v11308_v43 = vld [vmem:[#allocation19_spill] sm:$0xff] }
  0xa2   :  { %v854_v42 = vsel %vm7796_vm3, %v849_v24, %v853_v32  ;;  %v2076_v21 = vsel %vm8281_vm7, %v2074_v33, %v2075_v8  ;;  %v875_v36 = vshll.u32 %v8818_v14, 16  ;;  %v871_v4 = vrot.slane %v869_v28, 4  ;;  %v8847_v32 = vld [vmem:[%s11106_s0 + $0x190] sm:$0xf] }
  0xa3   :  { %v8840_v26 = vcombine.low %v844_v63, %v854_v42  ;;  %v8842_v49 = vcombine.low %v2073_v1, %v2076_v21  ;;  %v862_v6 = vor.u32 %v861_v16, %v858_v60  ;;  %11307 = vst [vmem:[#allocation61_spill] sm:$0xff] %v8847_v32  ;;  %v5926_v24 = vrot.slane %v11308_v43, 9  ;;  %v11309_v33 = vld [vmem:[#allocation21_spill] sm:$0xff] }
  0xa4   :  { %v877_v8 = vrot.slane %v875_v36, 5  ;;  %v2079_v46 = vrot.slane %v11309_v33, 5  ;;  %v2082_v9 = vrot.slane %v11310_v0, 5  ;;  %v872_v21 = vor.u32 %v871_v4, %v867_v62  ;;  %v8859_v1 = vld [vmem:[%s11106_s0 + $0x194] sm:$0x1] }
  0xa5   :  { %11305 = vst [vmem:[#allocation18_spill] sm:$0xff] %v8840_v26  ;;  %11306 = vst [vmem:[#allocation60_spill] sm:$0xff] %v8842_v49  ;;  %6571 = vmatmul.mubr.msk.bf16.gmra.mrb[56].mxu1 %vm999_vm4, %v8840_v26  ;;  %6869 = vmatmul.mubr.msk.bf16.gmra.mrb[24].mxu0 %vm999_vm4, %v8842_v49  ;;  %v863_v42 = vrot.slane %v862_v6, 4  ;;  %v880_v36 = vshrl.u32 %v8838_v31, 16  ;;  %v883_v63 = vshll.u32 %v8838_v31, 16  ;;  %v889_v16 = vshll.u32 %v8847_v32, 16 }
  0xa6   :  { %v2080_v0 = vsel %vm8281_vm7, %v5926_v24, %v2079_v46  ;;  %v2081_v60 = vrot.slane %v2079_v46, 4  ;;  %v893_v28 = vshrl.u32 %v8847_v32, 16  ;;  %v873_v4 = vrot.slane %v872_v21, 4  ;;  %v11311_v32 = vld [vmem:[#allocation23_spill] sm:$0xff]  ;;  %v11313_v21 = vld [vmem:[#allocation24_spill] sm:$0xff] }
  0xa7   :  { %v868_v6 = vsel %vm7796_vm3, %v863_v42, %v867_v62  ;;  %v882_v43 = vrot.slane %v880_v36, 4  ;;  %v885_v33 = vrot.slane %v883_v63, 5  ;;  %v891_v49 = vrot.slane %v889_v16, 5  ;;  %v11314_v63 = vld [vmem:[#allocation26_spill] sm:$0xff] }
  0xa8   :  { %v2083_v26 = vsel %vm8281_vm7, %v2081_v60, %v2082_v9  ;;  %v895_v13 = vrot.slane %v893_v28, 4  ;;  %v899_v31 = vshll.u32 %v8859_v1, 16  ;;  %v878_v24 = vsel %vm7796_vm3, %v873_v4, %v877_v8 }
  0xa9   :  { %v8874_v46 = vcombine.low %v2080_v0, %v2083_v26  ;;  %v886_v34 = vor.u32 %v885_v33, %v882_v43  ;;  %v6075_v35 = vrot.slane %v11311_v32, 9  ;;  %v8877_v14 = vcombine.low %v868_v6, %v878_v24 }
  0xaa   :  { %v896_v62 = vor.u32 %v895_v13, %v891_v49  ;;  %v901_v42 = vrot.slane %v899_v31, 5  ;;  %v3536_v36 = vrot.slane %v11313_v21, 5  ;;  %v3539_v60 = vrot.slane %v11314_v63, 5 }
  0xab   :  { %11312 = vst [vmem:[#allocation19_spill] sm:$0xff] %v8877_v14  ;;  %6872 = vmatprep.mubr.msk.bf16.mxu0 %vm999_vm4, %v8874_v46  ;;  %v887_v9 = vrot.slane %v886_v34, 4  ;;  %v5928_v16 = vrot.slane %v8271_v57, 9  ;;  %6574 = vmatprep.mubr.msk.bf16.mxu1 %vm999_vm4, %v8877_v14  ;;  %v2093_v13 = vrot.slane %v8290_v17, 5  ;;  %v8894_v34 = vld [vmem:[%s11106_s0] sm:$0xf] }
  0xac   :  { %v897_v26 = vrot.slane %v896_v62, 4  ;;  %v3537_v32 = vsel %vm8281_vm7, %v6075_v35, %v3536_v36  ;;  %v3538_v8 = vrot.slane %v3536_v36, 4  ;;  %v8899_v57 = vld [vmem:[%s11106_s0 + $0x4] sm:$0xf]  ;;  %v2096_v35 = vrot.slane %v8297_v41, 5 }
  0xad   :  { %v892_v31 = vsel %vm7796_vm3, %v887_v9, %v891_v49  ;;  %v5847_v0 = vcombine.low %v8894_v34, %v8899_v57  ;;  %v5929_v17 = vrot.slane %v8321_v55, 9  ;;  %v2094_v6 = vsel %vm8281_vm7, %v5928_v16, %v2093_v13  ;;  %v7671_v16 = vld [vmem:[%s11106_s0 + $0xc] sm:$0xf] }
  0xae   :  { %v902_v49 = vsel %vm7796_vm3, %v897_v26, %v901_v42  ;;  %v3540_v28 = vsel %vm8281_vm7, %v3538_v8, %v3539_v60  ;;  %v2095_v4 = vrot.slane %v2093_v13, 4  ;;  %v2100_v24 = vrot.slane %v8328_v19, 5  ;;  %v7672_v26 = vld [vmem:[%s11106_s0 + $0x10] sm:$0xf]  ;;  %v7673_v13 = vld [vmem:[%s11106_s0 + $0x18] sm:$0xf] }
  0xaf   :  { %v8911_v43 = vcombine.low %v892_v31, %v902_v49  ;;  %v8913_v33 = vcombine.low %v3537_v32, %v3540_v28  ;;  %v2103_v41 = vrot.slane %v8341_v27, 5  ;;  %v5930_v62 = vrot.slane %v8361_v38, 9 }
  0xb0   :  { %v2097_v55 = vsel %vm8281_vm7, %v2095_v4, %v2096_v35  ;;  %v2107_v42 = vrot.slane %v8371_v51, 5  ;;  %v2102_v36 = vrot.slane %v2100_v24, 4  ;;  %v2110_v19 = vrot.slane %v8380_v56, 5 }
  0xb1   :  { %11315 = vst [vmem:[#allocation21_spill] sm:$0xff] %v8911_v43  ;;  %11316 = vst [vmem:[#allocation22_spill] sm:$0xff] %v8913_v33  ;;  %6575 = vmatmul.mubr.msk.bf16.gmra.mrb[60].mxu1 %vm999_vm4, %v8911_v43  ;;  %6873 = vmatmul.mubr.msk.bf16.gmra.mrb[28].mxu0 %vm999_vm4, %v8913_v33  ;;  %v8925_v21 = vcombine.low %v2094_v6, %v2097_v55  ;;  %v2101_v27 = vsel %vm8281_vm7, %v5929_v17, %v2100_v24  ;;  %v2114_v51 = vrot.slane %v8409_v58, 5  ;;  %v8971_v24 = vld [vmem:[%s11105_s1 + $0x6] sm:$0x3]  ;;  %vm5088_vm8 = vcmask 130048  }
  0xb2   :  { %6580 = vmatprep.mubr.msk.bf16.mxu1 %vm999_vm4, %v5847_v0  ;;  %v2109_v9 = vrot.slane %v2107_v42, 4  ;;  %v2104_v38 = vsel %vm8281_vm7, %v2102_v36, %v2103_v41  ;;  %v2108_v63 = vsel %vm8281_vm7, %v5930_v62, %v2107_v42  ;;  %v2121_v60 = vrot.slane %v8446_v48, 5  ;;  %v7674_v48 = vld [vmem:[%s11106_s0 + $0x1c] sm:$0xf]  ;;  %v7675_v55 = vld [vmem:[%s11106_s0 + $0x24] sm:$0xf] }
  0xb3   :  { %6876 = vmatprep.mubr.msk.bf16.mxu0 %vm999_vm4, %v8925_v21  ;;  %v8947_v32 = vcombine.low %v7671_v16, %v7672_v26  ;;  %v2389_v58 = vsel %vm1096_vm0, %v8266_v40, 0  ;;  %v8951_v8 = vcombine.low %v2101_v27, %v2104_v38  ;;  %v8959_v31 = vcombine.low %v7673_v13, %v7674_v48  ;;  %v7676_v62 = vld [vmem:[%s11106_s0 + $0x28] sm:$0xf]  ;;  %v7680_v13 = vld [vmem:[%s11106_s0 + $0x40] sm:$0xf] }
  0xb4   :  { %v2111_v56 = vsel %vm8281_vm7, %v2109_v9, %v2110_v19  ;;  %v5931_v0 = vrot.slane %v8400_v11, 9  ;;  %v2116_v35 = vrot.slane %v2114_v51, 4  ;;  %v2117_v17 = vrot.slane %v8419_v3, 5 }
  0xb5   :  { %11317 = vst [vmem:[#allocation23_spill] sm:$0xff] %v8959_v31  ;;  %v8963_v49 = vcombine.low %v2108_v63, %v2111_v56  ;;  %v5932_v40 = vrot.slane %v8441_v18, 9  ;;  %v2123_v28 = vrot.slane %v2121_v60, 4  ;;  %v2124_v6 = vrot.slane %v8460_v45, 5  ;;  %v7677_v56 = vld [vmem:[%s11106_s0 + $0x30] sm:$0xf] }
  0xb6   :  { %v2128_v4 = vrot.slane %v8488_v10, 5  ;;  %v2135_v11 = vrot.slane %v8533_v37, 5  ;;  %v2115_v45 = vsel %vm8281_vm7, %v5931_v0, %v2114_v51  ;;  %v2118_v3 = vsel %vm8281_vm7, %v2116_v35, %v2117_v17 }
  0xb7   :  { %v2122_v18 = vsel %vm8281_vm7, %v5932_v40, %v2121_v60  ;;  %v2125_v41 = vsel %vm8281_vm7, %v2123_v28, %v2124_v6  ;;  %v8998_v42 = vcombine.low %v7675_v55, %v7676_v62  ;;  %v5933_v36 = vrot.slane %v8478_v61, 9  ;;  %v7678_v60 = vld [vmem:[%s11106_s0 + $0x34] sm:$0xf]  ;;  %v7681_v40 = vld [vmem:[%s11106_s0 + $0x48] sm:$0xf] }
  0xb8   :  { %v2130_v19 = vrot.slane %v2128_v4, 4  ;;  %v2131_v27 = vrot.slane %v8499_v54, 5  ;;  %v9002_v9 = vcombine.low %v2115_v45, %v2118_v3  ;;  %v5934_v38 = vrot.slane %v8519_v5, 9  ;;  %v7682_v28 = vld [vmem:[%s11106_s0 + $0x4c] sm:$0xf] }
  0xb9   :  { %6581 = vmatmul.mubr.msk.bf16.vlgmr.msra.gmra.mrb[0].mxu1 %vm999_vm4, %v8947_v32  ;;  %6877 = vmatmul.mubr.msk.bf16.gmra.mrb[32].mxu0 %vm999_vm4, %v8951_v8  ;;  %v2137_v51 = vrot.slane %v2135_v11, 4  ;;  %v2138_v63 = vrot.slane %v8547_v2, 5  ;;  %v9012_v16 = vcombine.low %v7677_v56, %v7678_v60  ;;  %v9014_v26 = vcombine.low %v2122_v18, %v2125_v41  ;;  %v7679_v2 = vld [vmem:[%s11106_s0 + $0x3c] sm:$0xf] }
  0xba   :  { %6645 = vmatpush3.bf16.msra.mxu1 %v2389_v58  ;;  %6584 = vmatprep.mubr.msk.bf16.mxu1 %vm999_vm4, %v8959_v31  ;;  %v2129_v54 = vsel %vm8281_vm7, %v5933_v36, %v2128_v4  ;;  %v2132_v58 = vsel %vm8281_vm7, %v2130_v19, %v2131_v27  ;;  %v9030_v48 = vcombine.low %v7679_v2, %v7680_v13  ;;  %v2142_v17 = vrot.slane %v8573_v47, 5 }
  0xbb   :  { %6880 = vmatprep.mubr.msk.bf16.mxu0 %vm999_vm4, %v8963_v49  ;;  %7623 = vmatprep.subr.msk.bf16.mxu1 %vm1096_vm0, %v8971_v24  ;;  %v2136_v0 = vsel %vm8281_vm7, %v5934_v38, %v2135_v11  ;;  %v2139_v35 = vsel %vm8281_vm7, %v2137_v51, %v2138_v63  ;;  %v9047_v6 = vcombine.low %v7681_v40, %v7682_v28  ;;  %v5935_v4 = vrot.slane %v8563_v29, 9 }
  0xbc   :  { %v2145_v11 = vrot.slane %v8584_v53, 5  ;;  %v5939_v45 = vrot.slane %v8719_v15, 9  ;;  %v9052_v3 = vcombine.low %v2129_v54, %v2132_v58  ;;  %v2149_v18 = vrot.slane %v8613_v20, 5 }
  0xbd   :  { %v2170_v41 = vrot.slane %v8729_v25, 5  ;;  %v2173_v55 = vrot.slane %v8740_v50, 5  ;;  %v9057_v62 = vcombine.low %v2136_v0, %v2139_v35  ;;  %v5936_v36 = vrot.slane %v8604_v7, 9  ;;  %v11318_v0 = vld [vmem:[#allocation15_spill] sm:$0xff] }
  0xbe   :  { %v5940_v19 = vrot.slane %v8760_v22, 9  ;;  %v2177_v27 = vrot.slane %v8769_v39, 5  ;;  %v2144_v38 = vrot.slane %v2142_v17, 4  ;;  %v2180_v63 = vrot.slane %v8781_v59, 5 }
  0xbf   :  { %v2171_v53 = vsel %vm8281_vm7, %v5939_v45, %v2170_v41  ;;  %v2172_v51 = vrot.slane %v2170_v41, 4  ;;  %v2152_v56 = vrot.slane %v8625_v12, 5  ;;  %v5941_v54 = vrot.slane %v8797_v52, 9 }
  0xc0   :  { %v2178_v50 = vsel %vm8281_vm7, %v5940_v19, %v2177_v27  ;;  %v2179_v60 = vrot.slane %v2177_v27, 4  ;;  %v2151_v58 = vrot.slane %v2149_v18, 4  ;;  %v2184_v13 = vrot.slane %v8807_v44, 5  ;;  %v11321_v19 = vld [vmem:[#allocation48_spill] sm:$0xff] }
  0xc1   :  { %6585 = vmatmul.mubr.msk.bf16.gmra.mrb[4].mxu1 %vm999_vm4, %v8998_v42  ;;  %6881 = vmatmul.mubr.msk.bf16.gmra.mrb[36].mxu0 %vm999_vm4, %v9002_v9  ;;  %v2174_v2 = vsel %vm8281_vm7, %v2172_v51, %v2173_v55  ;;  %v2187_v35 = vrot.slane %v11318_v0, 5  ;;  %v2143_v41 = vsel %vm8281_vm7, %v5935_v4, %v2142_v17  ;;  %v2146_v55 = vsel %vm8281_vm7, %v2144_v38, %v2145_v11  ;;  %v7683_v17 = vld [vmem:[%s11106_s0 + $0x54] sm:$0xf]  ;;  %v7684_v4 = vld [vmem:[%s11106_s0 + $0x58] sm:$0xf] }
  0xc2   :  { %6588 = vmatprep.mubr.msk.bf16.mxu1 %vm999_vm4, %v9012_v16  ;;  %6884 = vmatprep.mubr.msk.bf16.mxu0 %vm999_vm4, %v9014_v26  ;;  %v9073_v40 = vcombine.low %v2171_v53, %v2174_v2  ;;  %v2181_v59 = vsel %vm8281_vm7, %v2179_v60, %v2180_v63  ;;  %v2185_v28 = vsel %vm8281_vm7, %v5941_v54, %v2184_v13  ;;  %v2186_v45 = vrot.slane %v2184_v13, 4  ;;  %v11322_v63 = vld [vmem:[#allocation54_spill] sm:$0xff]  ;;  %v7686_v38 = vld [vmem:[%s11106_s0 + $0x64] sm:$0xf] }
  0xc3   :  { %v9081_v12 = vcombine.low %v2178_v50, %v2181_v59  ;;  %v2156_v27 = vrot.slane %v11321_v19, 5  ;;  %v2150_v53 = vsel %vm8281_vm7, %v5936_v36, %v2149_v18  ;;  %v2153_v51 = vsel %vm8281_vm7, %v2151_v58, %v2152_v56  ;;  %v7685_v36 = vld [vmem:[%s11106_s0 + $0x60] sm:$0xf] }
  0xc4   :  { %11319 = vst [vmem:[#allocation24_spill] sm:$0xff] %v9073_v40  ;;  %v2163_v50 = vrot.slane %v11322_v63, 5  ;;  %v2188_v60 = vsel %vm8281_vm7, %v2186_v45, %v2187_v35  ;;  %v9109_v11 = vcombine.low %v7683_v17, %v7684_v4  ;;  %v9111_v18 = vcombine.low %v2143_v41, %v2146_v55  ;;  %v11325_v2 = vld [vmem:[#allocation46_spill] sm:$0xff]  ;;  %v11328_v55 = vld [vmem:[#allocation55_spill] sm:$0xff]  ;;  %v11332_v4 = vld [vmem:[#allocation61_spill] sm:$0xff] }
  0xc5   :  { %11320 = vst [vmem:[#allocation26_spill] sm:$0xff] %v9081_v12  ;;  %v9101_v54 = vcombine.low %v2185_v28, %v2188_v60  ;;  %v9119_v56 = vcombine.low %v7685_v36, %v7686_v38  ;;  %v9121_v58 = vcombine.low %v2150_v53, %v2153_v51  ;;  %v5937_v13 = vrot.slane %v11325_v2, 9  ;;  %v11326_v35 = vld [vmem:[#allocation50_spill] sm:$0xff]  ;;  %v11327_v28 = vld [vmem:[#allocation51_spill] sm:$0xff]  ;;  %v11333_v36 = vld [vmem:[#allocation16_spill] sm:$0xff] }
  0xc6   :  { %v2158_v0 = vrot.slane %v2156_v27, 4  ;;  %v2159_v59 = vrot.slane %v11326_v35, 5  ;;  %v5938_v45 = vrot.slane %v11327_v28, 9  ;;  %v2165_v41 = vrot.slane %v2163_v50, 4 }
  0xc7   :  { %11323 = vst [vmem:[#allocation15_spill] sm:$0xff] %v9101_v54  ;;  %11324 = vst [vmem:[#allocation48_spill] sm:$0xff] %v9121_v58  ;;  %v2166_v60 = vrot.slane %v11328_v55, 5  ;;  %v9129_v17 = vcombine.low %v8719_v15, %v8729_v25  ;;  %v9137_v53 = vcombine.low %v8760_v22, %v8769_v39  ;;  %v9141_v51 = vcombine.low %v8797_v52, %v8807_v44  ;;  %v7687_v44 = vld [vmem:[%s11106_s0 + $0x6c] sm:$0xf] }
  0xc8   :  { %v2157_v15 = vsel %vm8281_vm7, %v5937_v13, %v2156_v27  ;;  %v2160_v25 = vsel %vm8281_vm7, %v2158_v0, %v2159_v59  ;;  %v9153_v22 = vcombine.low %v11333_v36, %v11332_v4  ;;  %v2164_v39 = vsel %vm8281_vm7, %v5938_v45, %v2163_v50  ;;  %v7688_v27 = vld [vmem:[%s11106_s0 + $0x70] sm:$0xf]  ;;  %v7689_v0 = vld [vmem:[%s11106_s0 + $0x78] sm:$0xf]  ;;  %v7690_v50 = vld [vmem:[%s11106_s0 + $0x7c] sm:$0xf] }
  0xc9   :  { %6589 = vmatmul.mubr.msk.bf16.gmra.mrb[8].mxu1 %vm999_vm4, %v9030_v48  ;;  %6885 = vmatmul.mubr.msk.bf16.gmra.mrb[40].mxu0 %vm999_vm4, %v9052_v3  ;;  %11329 = vst [vmem:[#allocation54_spill] sm:$0xff] %v9129_v17  ;;  %11330 = vst [vmem:[#allocation46_spill] sm:$0xff] %v9137_v53  ;;  %v2167_v52 = vsel %vm8281_vm7, %v2165_v41, %v2166_v60  ;;  %v9165_v38 = vcombine.low %v7687_v44, %v7688_v27  ;;  %v2191_v45 = vrot.slane %v11332_v4, 5  ;;  %v7691_v41 = vld [vmem:[%s11106_s0 + $0x84] sm:$0xf]  ;;  %vm5425_vm9 = vcmask 123904  }
  0xca   :  { %6592 = vmatprep.mubr.msk.bf16.mxu1 %vm999_vm4, %v9047_v6  ;;  %6888 = vmatprep.mubr.msk.bf16.mxu0 %vm999_vm4, %v9057_v62  ;;  %11331 = vst [vmem:[#allocation50_spill] sm:$0xff] %v9141_v51  ;;  %11334 = vst [vmem:[#allocation51_spill] sm:$0xff] %v9153_v22  ;;  %v9167_v13 = vcombine.low %v2157_v15, %v2160_v25  ;;  %v9175_v35 = vcombine.low %v7689_v0, %v7690_v50  ;;  %v7692_v55 = vld [vmem:[%s11106_s0 + $0x88] sm:$0xf]  ;;  %v7693_v15 = vld [vmem:[%s11106_s0 + $0x90] sm:$0xf] }
  0xcb   :  { %v9177_v59 = vcombine.low %v2164_v39, %v2167_v52  ;;  %v9194_v60 = vcombine.low %v7691_v41, %v7692_v55  ;;  %v7694_v25 = vld [vmem:[%s11106_s0 + $0x94] sm:$0xf]  ;;  %v5942_v4 = vrot.slane %v11333_v36, 9  ;;  %v2193_v52 = vrot.slane %v2191_v45, 4  ;;  %v9209_v27 = vld [vmem:[%s11106_s0 + $0x19c] sm:$0xf] }
  0xcc   :  { %11335 = vst [vmem:[#allocation55_spill] sm:$0xff] %v9167_v13  ;;  %v9202_v39 = vcombine.low %v7693_v15, %v7694_v25  ;;  %v2194_v44 = vrot.slane %v8859_v1, 5  ;;  %v3543_v36 = vrot.slane %v9209_v27, 5  ;;  %v9227_v50 = vld [vmem:[%s11106_s0 + $0x198] sm:$0xf]  ;;  %vm5419_vm10 = vcmask 1040384  }
  0xcd   :  { %11336 = vst [vmem:[#allocation61_spill] sm:$0xff] %v9177_v59  ;;  %v2192_v1 = vsel %vm8281_vm7, %v5942_v4, %v2191_v45  ;;  %v9232_v41 = vld [vmem:[%s11106_s0 + $0x1a0] sm:$0x1]  ;;  %v7695_v55 = vld [vmem:[%s11106_s0 + $0x9c] sm:$0xf]  ;;  %v6076_v33 = vrot.slane %v9227_v50, 9 }
  0xce   :  { %v2195_v0 = vsel %vm8281_vm7, %v2193_v52, %v2194_v44  ;;  %11337 = vst [vmem:[#allocation16_spill] sm:$0xff] %v9232_v41  ;;  %v7696_v45 = vld [vmem:[%s11106_s0 + $0xa0] sm:$0xf]  ;;  %v7697_v25 = vld [vmem:[%s11106_s0 + $0xa8] sm:$0xf]  ;;  %v3545_v43 = vrot.slane %v3543_v36, 4 }
  0xcf   :  { %v9240_v15 = vcombine.low %v7695_v55, %v7696_v45  ;;  %v7698_v4 = vld [vmem:[%s11106_s0 + $0xac] sm:$0xf]  ;;  %v9250_v44 = vcombine.low %v2192_v1, %v2195_v0  ;;  %v3546_v14 = vrot.slane %v9232_v41, 5  ;;  %v3544_v1 = vsel %vm8281_vm7, %v6076_v33, %v3543_v36  ;;  %v7699_v55 = vld [vmem:[%s11106_s0 + $0xb4] sm:$0xf] }
  0xd0   :  { %v9248_v52 = vcombine.low %v7697_v25, %v7698_v4  ;;  %v7700_v45 = vld [vmem:[%s11106_s0 + $0xb8] sm:$0xf]  ;;  %v7703_v33 = vld [vmem:[%s11106_s0 + $0xe4] sm:$0xf]  ;;  %v7704_v36 = vld [vmem:[%s11106_s0 + $0xe8] sm:$0xf] }
  0xd1   :  { %6593 = vmatmul.mubr.msk.bf16.gmra.mrb[12].mxu1 %vm999_vm4, %v9109_v11  ;;  %6889 = vmatmul.mubr.msk.bf16.gmra.mrb[44].mxu0 %vm999_vm4, %v9111_v18  ;;  %11338 = vst [vmem:[#allocation62_spill] sm:$0xff] %v9250_v44  ;;  %v3547_v0 = vsel %vm8281_vm7, %v3545_v43, %v3546_v14  ;;  %v9272_v25 = vcombine.low %v7699_v55, %v7700_v45  ;;  %v9279_v41 = vld [vmem:[%s11106_s0 + $0xd8] sm:$0xf]  ;;  %v9284_v14 = vld [vmem:[%s11106_s0 + $0xdc] sm:$0xf] }
  0xd2   :  { %6596 = vmatprep.mubr.msk.bf16.mxu1 %vm999_vm4, %v9119_v56  ;;  %6892 = vmatprep.mubr.msk.bf16.mxu0 %vm999_vm4, %v9121_v58  ;;  %v9274_v4 = vcombine.low %v3544_v1, %v3547_v0  ;;  %v5863_v43 = vcombine.low %v9279_v41, %v9284_v14  ;;  %v9301_v1 = vcombine.low %v7703_v33, %v7704_v36  ;;  %v7705_v0 = vld [vmem:[%s11106_s0 + $0xf0] sm:$0xf]  ;;  %v7706_v55 = vld [vmem:[%s11106_s0 + $0xf4] sm:$0xf]  ;;  %v7707_v33 = vld [vmem:[%s11106_s0 + $0xfc] sm:$0xf] }
  0xd3   :  { %v9309_v45 = vcombine.low %v7705_v0, %v7706_v55  ;;  %v7708_v36 = vld [vmem:[%s11106_s0 + $0x100] sm:$0xf]  ;;  %v7710_v55 = vld [vmem:[%s11106_s0 + $0x10c] sm:$0xf] }
  0xd4   :  { %11339 = vst [vmem:[#allocation63_spill] sm:$0xff] %v9274_v4  ;;  %v9334_v0 = vcombine.low %v7707_v33, %v7708_v36  ;;  %v7711_v33 = vld [vmem:[%s11106_s0 + $0x114] sm:$0xf]  ;;  %v7712_v36 = vld [vmem:[%s11106_s0 + $0x118] sm:$0xf] }
  0xd9   :  { %6597 = vmatmul.mubr.msk.bf16.gmra.mrb[16].mxu1 %vm999_vm4, %v9165_v38  ;;  %6893 = vmatmul.mubr.msk.bf16.gmra.mrb[48].mxu0 %vm999_vm4, %v9167_v13 }
  0xda   :  { %6600 = vmatprep.mubr.msk.bf16.mxu1 %vm999_vm4, %v9175_v35  ;;  %6896 = vmatprep.mubr.msk.bf16.mxu0 %vm999_vm4, %v9177_v59 }
  0xe1   :  { %6601 = vmatmul.mubr.msk.bf16.gmra.mrb[20].mxu1 %vm999_vm4, %v9194_v60  ;;  %6897 = vmatmul.mubr.msk.bf16.gmra.mrb[52].mxu0 %vm999_vm4, %v9073_v40 }
  0xe2   :  { %6604 = vmatprep.mubr.msk.bf16.mxu1 %vm999_vm4, %v9202_v39  ;;  %6900 = vmatprep.mubr.msk.bf16.mxu0 %vm999_vm4, %v9081_v12 }
  0xe9   :  { %6605 = vmatmul.mubr.msk.bf16.gmra.mrb[24].mxu1 %vm999_vm4, %v9240_v15  ;;  %6901 = vmatmul.mubr.msk.bf16.gmra.mrb[56].mxu0 %vm999_vm4, %v9101_v54 }
  0xea   :  { %6608 = vmatprep.mubr.msk.bf16.mxu1 %vm999_vm4, %v9248_v52  ;;  %6904 = vmatprep.mubr.msk.bf16.mxu0 %vm999_vm4, %v9250_v44 }
  0xf1   :  { %6609 = vmatmul.mubr.msk.bf16.gmra.mrb[28].mxu1 %vm999_vm4, %v9272_v25  ;;  %6905 = vmatmul.mubr.msk.bf16.gmra.mrb[60].mxu0 %vm999_vm4, %v9274_v4 }
  0xf2   :  { %6612 = vmatprep.mubr.msk.bf16.mxu1 %vm999_vm4, %v5863_v43  ;;  %6910 = vmatprep.mubr.msk.bf16.mxu0 %vm999_vm4, %v8959_v31  ;;  %v11340_v43 = vld [vmem:[#allocation39_spill] sm:$0xff]  ;;  %v9316_v31 = vld [vmem:[%s11105_s1 + $0x10] sm:$0x3] }
  0xf3   :  { %v4349_v4 = vsel %vm1096_vm0, %v11340_v43, 0 }
  0xf9   :  { %6613 = vmatmul.mubr.msk.bf16.gmra.mrb[32].mxu1 %vm999_vm4, %v9301_v1  ;;  %6911 = vmatmul.mubr.msk.bf16.vlgmr.msra.gmra.mrb[0].mxu0 %vm999_vm4, %v8998_v42 }
  0xfa   :  { %6975 = vmatpush3.bf16.msra.mxu0 %v4349_v4  ;;  %6616 = vmatprep.mubr.msk.bf16.mxu1 %vm999_vm4, %v9309_v45  ;;  %v7709_v4 = vld [vmem:[%s11106_s0 + $0x108] sm:$0xf] }
  0xfb   :  { %6914 = vmatprep.mubr.msk.bf16.mxu0 %vm999_vm4, %v9012_v16  ;;  %7629 = vmatprep.subr.msk.bf16.mxu0 %vm1096_vm0, %v9316_v31  ;;  %v9342_v43 = vcombine.low %v7709_v4, %v7710_v55  ;;  %v9358_v4 = vcombine.low %v7711_v33, %v7712_v36  ;;  %v9362_v55 = vcombine.low %v8478_v61, %v8488_v10 }
  0xfc   :  { %v9374_v33 = vcombine.low %v8519_v5, %v8533_v37  ;;  %v9378_v61 = vcombine.low %v8563_v29, %v8573_v47  ;;  %v9390_v10 = vcombine.low %v8604_v7, %v8613_v20  ;;  %v9394_v5 = vcombine.low %v11325_v2, %v11321_v19  ;;  %v7713_v47 = vld [vmem:[%s11106_s0 + $0xc0] sm:$0xf]  ;;  %v7714_v7 = vld [vmem:[%s11106_s0 + $0xc4] sm:$0xf]  ;;  %v7715_v19 = vld [vmem:[%s11106_s0 + $0x8] sm:$0x1] }
  0xfd   :  { %v9406_v37 = vcombine.low %v11327_v28, %v11322_v63  ;;  %v1974_v29 = vrot.slane %v8899_v57, 5  ;;  %v9423_v20 = vcombine.low %v7713_v47, %v7714_v7  ;;  %v1977_v63 = vrot.slane %v7715_v19, 5  ;;  %v9440_v57 = vld [vmem:[%s11106_s0 + $0xcc] sm:$0xf] }
  0xfe   :  { %11341 = vst [vmem:[#allocation39_spill] sm:$0xff] %v9378_v61  ;;  %11342 = vst [vmem:[#allocation64_spill] sm:$0xff] %v9390_v10  ;;  %v5911_v2 = vrot.slane %v8894_v34, 9  ;;  %v9445_v34 = vld [vmem:[%s11106_s0 + $0xd0] sm:$0xf] }
  0xff   :  { %11343 = vst [vmem:[#allocation65_spill] sm:$0xff] %v9394_v5  ;;  %11344 = vst [vmem:[#allocation66_spill] sm:$0xff] %v9406_v37  ;;  %v1976_v28 = vrot.slane %v1974_v29, 4  ;;  %v6111_v7 = vcombine.low %v9440_v57, %v9445_v34 }
 0x100   :  { %v1975_v36 = vsel %vm8281_vm7, %v5911_v2, %v1974_v29  ;;  %v2761_v29 = vsel %vm1096_vm0, %v8971_v24, 0  ;;  %v11345_v2 = vld [vmem:[#allocation30_spill] sm:$0xff]  ;;  %v11347_v24 = vld [vmem:[#allocation33_spill] sm:$0xff] }
 0x101   :  { %6617 = vmatmul.mubr.msk.bf16.gmra.mrb[36].mxu1 %vm999_vm4, %v9334_v0  ;;  %6915 = vmatmul.mubr.msk.bf16.gmra.mrb[4].mxu0 %vm999_vm4, %v9030_v48  ;;  %v1978_v47 = vsel %vm8281_vm7, %v1976_v28, %v1977_v63  ;;  %v11346_v63 = vld [vmem:[#allocation31_spill] sm:$0xff] }
 0x102   :  { %6620 = vmatprep.mubr.msk.bf16.mxu1 %vm999_vm4, %v9342_v43  ;;  %6918 = vmatprep.mubr.msk.bf16.mxu0 %vm999_vm4, %v9047_v6  ;;  %v5943_v19 = vcombine.low %v1975_v36, %v1978_v47  ;;  %v7716_v28 = vld [vmem:[%s11105_s1 + $0x8] sm:$0x3]  ;;  %v11349_v47 = vld [vmem:[#allocation37_spill] sm:$0xff] }
 0x103   :  { %v11348_v36 = vld [vmem:[#allocation35_spill] sm:$0xff] }
 0x105   :  { %v11394_v30 = vld [vmem:[#allocation39_spill] sm:$0xff] }
 0x109   :  { %6621 = vmatmul.mubr.msk.bf16.gmra.mrb[40].mxu1 %vm999_vm4, %v9358_v4  ;;  %6919 = vmatmul.mubr.msk.bf16.gmra.mrb[8].mxu0 %vm999_vm4, %v9109_v11 }
 0x10a   :  { %6624 = vmatprep.mubr.msk.bf16.mxu1 %vm999_vm4, %v9362_v55  ;;  %6922 = vmatprep.mubr.msk.bf16.mxu0 %vm999_vm4, %v9119_v56 }
 0x111   :  { %6625 = vmatmul.mubr.msk.bf16.gmra.mrb[44].mxu1 %vm999_vm4, %v9374_v33  ;;  %6923 = vmatmul.mubr.msk.bf16.gmra.mrb[12].mxu0 %vm999_vm4, %v9165_v38 }
 0x112   :  { %6628 = vmatprep.mubr.msk.bf16.mxu1 %vm999_vm4, %v9378_v61  ;;  %6926 = vmatprep.mubr.msk.bf16.mxu0 %vm999_vm4, %v9175_v35 }
 0x119   :  { %6629 = vmatmul.mubr.msk.bf16.gmra.mrb[48].mxu1 %vm999_vm4, %v9390_v10  ;;  %6927 = vmatmul.mubr.msk.bf16.gmra.mrb[16].mxu0 %vm999_vm4, %v9194_v60 }
 0x11a   :  { %6632 = vmatprep.mubr.msk.bf16.mxu1 %vm999_vm4, %v9394_v5  ;;  %6930 = vmatprep.mubr.msk.bf16.mxu0 %vm999_vm4, %v9202_v39 }
 0x121   :  { %6633 = vmatmul.mubr.msk.bf16.gmra.mrb[52].mxu1 %vm999_vm4, %v9406_v37  ;;  %6931 = vmatmul.mubr.msk.bf16.gmra.mrb[20].mxu0 %vm999_vm4, %v9240_v15 }
 0x122   :  { %6636 = vmatprep.mubr.msk.bf16.mxu1 %vm999_vm4, %v9129_v17  ;;  %6934 = vmatprep.mubr.msk.bf16.mxu0 %vm999_vm4, %v9248_v52 }
 0x129   :  { %6637 = vmatmul.mubr.msk.bf16.gmra.mrb[56].mxu1 %vm999_vm4, %v9137_v53  ;;  %6935 = vmatmul.mubr.msk.bf16.gmra.mrb[24].mxu0 %vm999_vm4, %v9272_v25 }
 0x12a   :  { %6640 = vmatprep.mubr.msk.bf16.mxu1 %vm999_vm4, %v9141_v51  ;;  %6938 = vmatprep.mubr.msk.bf16.mxu0 %vm999_vm4, %v9423_v20 }
 0x131   :  { %6641 = vmatmul.mubr.msk.bf16.gmra.mrb[60].mxu1 %vm999_vm4, %v9153_v22  ;;  %6939 = vmatmul.mubr.msk.bf16.gmra.mrb[28].mxu0 %vm999_vm4, %v6111_v7  ;;  %v11350_v7 = vld [vmem:[#allocation41_spill] sm:$0xff] }
 0x132   :  { %6646 = vmatprep.mubr.msk.bf16.mxu1 %vm999_vm4, %v5943_v19  ;;  %6942 = vmatprep.mubr.msk.bf16.mxu0 %vm999_vm4, %v9309_v45  ;;  %v11351_v19 = vld [vmem:[#allocation42_spill] sm:$0xff] }
 0x139   :  { %6647 = vmatmul.mubr.msk.bf16.vlgmr.msra.gmra.mrb[0].mxu1 %vm999_vm4, %v11345_v2  ;;  %6943 = vmatmul.mubr.msk.bf16.gmra.mrb[32].mxu0 %vm999_vm4, %v9334_v0  ;;  %v11353_v2 = vld [vmem:[#allocation47_spill] sm:$0xff] }
 0x13a   :  { %6711 = vmatpush3.bf16.msra.mxu1 %v2761_v29  ;;  %6650 = vmatprep.mubr.msk.bf16.mxu1 %vm999_vm4, %v11346_v63  ;;  %v11352_v29 = vld [vmem:[#allocation45_spill] sm:$0xff] }
 0x13b   :  { %6946 = vmatprep.mubr.msk.bf16.mxu0 %vm999_vm4, %v9342_v43  ;;  %7625 = vmatprep.subr.msk.bf16.mxu1 %vm1096_vm0, %v7716_v28  ;;  %v11354_v28 = vld [vmem:[#allocation53_spill] sm:$0xff] }
 0x141   :  { %6651 = vmatmul.mubr.msk.bf16.gmra.mrb[4].mxu1 %vm999_vm4, %v11347_v24  ;;  %6947 = vmatmul.mubr.msk.bf16.gmra.mrb[36].mxu0 %vm999_vm4, %v9358_v4 }
 0x142   :  { %6654 = vmatprep.mubr.msk.bf16.mxu1 %vm999_vm4, %v11348_v36  ;;  %6950 = vmatprep.mubr.msk.bf16.mxu0 %vm999_vm4, %v9362_v55 }
 0x149   :  { %6655 = vmatmul.mubr.msk.bf16.gmra.mrb[8].mxu1 %vm999_vm4, %v11349_v47  ;;  %6951 = vmatmul.mubr.msk.bf16.gmra.mrb[40].mxu0 %vm999_vm4, %v9374_v33 }
 0x14a   :  { %6658 = vmatprep.mubr.msk.bf16.mxu1 %vm999_vm4, %v11350_v7  ;;  %6954 = vmatprep.mubr.msk.bf16.mxu0 %vm999_vm4, %v9378_v61  ;;  %v11355_v61 = vld [vmem:[#allocation56_spill] sm:$0xff] }
 0x151   :  { %6659 = vmatmul.mubr.msk.bf16.gmra.mrb[12].mxu1 %vm999_vm4, %v11351_v19  ;;  %6955 = vmatmul.mubr.msk.bf16.gmra.mrb[44].mxu0 %vm999_vm4, %v9390_v10  ;;  %v11356_v10 = vld [vmem:[#allocation59_spill] sm:$0xff] }
 0x152   :  { %6662 = vmatprep.mubr.msk.bf16.mxu1 %vm999_vm4, %v11352_v29  ;;  %6958 = vmatprep.mubr.msk.bf16.mxu0 %vm999_vm4, %v9394_v5  ;;  %v9516_v5 = vcombine.low %v9227_v50, %v9209_v27 }
 0x154   :  { %11357 = vst [vmem:[#allocation30_spill] sm:$0xff] %v9516_v5 }
 0x159   :  { %6663 = vmatmul.mubr.msk.bf16.gmra.mrb[16].mxu1 %vm999_vm4, %v11353_v2  ;;  %6959 = vmatmul.mubr.msk.bf16.gmra.mrb[48].mxu0 %vm999_vm4, %v9406_v37  ;;  %v2086_v37 = vrot.slane %v9284_v14, 5  ;;  %v11358_v2 = vld [vmem:[#allocation12_spill] sm:$0xff] }
 0x15a   :  { %6666 = vmatprep.mubr.msk.bf16.mxu1 %vm999_vm4, %v11354_v28  ;;  %6962 = vmatprep.mubr.msk.bf16.mxu0 %vm999_vm4, %v9129_v17  ;;  %v5927_v17 = vrot.slane %v9279_v41, 9  ;;  %v9533_v41 = vld [vmem:[%s11106_s0 + $0x1a4] sm:$0xf]  ;;  %v9538_v14 = vld [vmem:[%s11106_s0 + $0x1a8] sm:$0xf] }
 0x15b   :  { %v2088_v28 = vrot.slane %v2086_v37, 4  ;;  %11360 = vst [vmem:[#allocation31_spill] sm:$0xff] %v9533_v41  ;;  %11361 = vst [vmem:[#allocation33_spill] sm:$0xff] %v9538_v14 }
 0x161   :  { %6667 = vmatmul.mubr.msk.bf16.gmra.mrb[20].mxu1 %vm999_vm4, %v11355_v61  ;;  %6963 = vmatmul.mubr.msk.bf16.gmra.mrb[52].mxu0 %vm999_vm4, %v9137_v53  ;;  %v7717_v61 = vld [vmem:[%s11106_s0 + $0xe0] sm:$0x1] }
 0x162   :  { %6670 = vmatprep.mubr.msk.bf16.mxu1 %vm999_vm4, %v11356_v10  ;;  %6966 = vmatprep.mubr.msk.bf16.mxu0 %vm999_vm4, %v9141_v51  ;;  %v2089_v53 = vrot.slane %v7717_v61, 5  ;;  %v11359_v51 = vld [vmem:[#allocation60_spill] sm:$0xff]  ;;  %v2087_v61 = vsel %vm8281_vm7, %v5927_v17, %v2086_v37  ;;  %v4733_v17 = vsel %vm1096_vm0, %v9316_v31, 0  ;;  %v11367_v31 = vld [vmem:[#allocation9_spill] sm:$0xff]  ;;  %v11369_v37 = vld [vmem:[#allocation11_spill] sm:$0xff] }
 0x169   :  { %6671 = vmatmul.mubr.msk.bf16.gmra.mrb[24].mxu1 %vm999_vm4, %v11358_v2  ;;  %6967 = vmatmul.mubr.msk.bf16.gmra.mrb[56].mxu0 %vm999_vm4, %v9153_v22  ;;  %v2090_v22 = vsel %vm8281_vm7, %v2088_v28, %v2089_v53  ;;  %v11362_v2 = vld [vmem:[#allocation4_spill] sm:$0xff]  ;;  %v11363_v53 = vld [vmem:[#allocation5_spill] sm:$0xff] }
 0x16a   :  { %6674 = vmatprep.mubr.msk.bf16.mxu1 %vm999_vm4, %v11359_v51  ;;  %6970 = vmatprep.mubr.msk.bf16.mxu0 %vm999_vm4, %v9516_v5  ;;  %v6112_v51 = vcombine.low %v9533_v41, %v9538_v14  ;;  %v5959_v5 = vcombine.low %v2087_v61, %v2090_v22  ;;  %v11364_v22 = vld [vmem:[#allocation6_spill] sm:$0xff]  ;;  %v11371_v28 = vld [vmem:[#allocation17_spill] sm:$0xff]  ;;  %v4289_v61 = vshrl.u32 %v9440_v57, 16 }
 0x171   :  { %6675 = vmatmul.mubr.msk.bf16.gmra.mrb[28].mxu1 %vm999_vm4, %v8874_v46  ;;  %6971 = vmatmul.mubr.msk.bf16.gmra.mrb[60].mxu0 %vm999_vm4, %v6112_v51  ;;  %v11365_v51 = vld [vmem:[#allocation7_spill] sm:$0xff] }
 0x172   :  { %6678 = vmatprep.mubr.msk.bf16.mxu1 %vm999_vm4, %v5959_v5  ;;  %6976 = vmatprep.mubr.msk.bf16.mxu0 %vm999_vm4, %v11362_v2  ;;  %v11368_v5 = vld [vmem:[#allocation10_spill] sm:$0xff]  ;;  %v11370_v2 = vld [vmem:[#allocation13_spill] sm:$0xff] }
 0x179   :  { %6679 = vmatmul.mubr.msk.bf16.gmra.mrb[32].mxu1 %vm999_vm4, %v8925_v21  ;;  %6977 = vmatmul.mubr.msk.bf16.vlgmr.msra.gmra.mrb[0].mxu0 %vm999_vm4, %v11363_v53  ;;  %v11366_v21 = vld [vmem:[#allocation8_spill] sm:$0xff]  ;;  %v4302_v53 = vshrl.u32 %v9445_v34, 16 }
 0x17a   :  { %7041 = vmatpush3.bf16.msra.mxu0 %v4733_v17  ;;  %6682 = vmatprep.mubr.msk.bf16.mxu1 %vm999_vm4, %v8951_v8  ;;  %v4292_v17 = vshll.u32 %v9440_v57, 16 }
 0x17b   :  { %6980 = vmatprep.mubr.msk.bf16.mxu0 %vm999_vm4, %v11364_v22  ;;  %v11372_v22 = vld [vmem:[#allocation20_spill] sm:$0xff] }
 0x181   :  { %6683 = vmatmul.mubr.msk.bf16.gmra.mrb[36].mxu1 %vm999_vm4, %v8963_v49  ;;  %6981 = vmatmul.mubr.msk.bf16.gmra.mrb[4].mxu0 %vm999_vm4, %v11365_v51  ;;  %v4298_v51 = vshll.u32 %v9445_v34, 16 }
 0x182   :  { %6686 = vmatprep.mubr.msk.bf16.mxu1 %vm999_vm4, %v9002_v9  ;;  %6984 = vmatprep.mubr.msk.bf16.mxu0 %vm999_vm4, %v11366_v21  ;;  %v4291_v21 = vrot.slane %v4289_v61, 4 }
 0x189   :  { %6687 = vmatmul.mubr.msk.bf16.gmra.mrb[40].mxu1 %vm999_vm4, %v9014_v26  ;;  %6985 = vmatmul.mubr.msk.bf16.gmra.mrb[8].mxu0 %vm999_vm4, %v11367_v31  ;;  %v4294_v31 = vrot.slane %v4292_v17, 5 }
 0x18a   :  { %6690 = vmatprep.mubr.msk.bf16.mxu1 %vm999_vm4, %v9052_v3  ;;  %6988 = vmatprep.mubr.msk.bf16.mxu0 %vm999_vm4, %v11368_v5  ;;  %v4300_v5 = vrot.slane %v4298_v51, 5 }
 0x18b   :  { %v4295_v61 = vor.u32 %v4294_v31, %v4291_v21 }
 0x18d   :  { %v4296_v51 = vrot.slane %v4295_v61, 4  ;;  %v11379_v61 = vld [vmem:[#allocation36_spill] sm:$0xff] }
 0x18f   :  { %v4301_v21 = vsel %vm7796_vm3, %v4296_v51, %v4300_v5  ;;  %v3154_v51 = vshrl.u32 %v9209_v27, 16 }
 0x191   :  { %6691 = vmatmul.mubr.msk.bf16.gmra.mrb[44].mxu1 %vm999_vm4, %v9057_v62  ;;  %6989 = vmatmul.mubr.msk.bf16.gmra.mrb[12].mxu0 %vm999_vm4, %v11369_v37  ;;  %v4304_v37 = vrot.slane %v4302_v53, 4 }
 0x192   :  { %6694 = vmatprep.mubr.msk.bf16.mxu1 %vm999_vm4, %v9111_v18  ;;  %6992 = vmatprep.mubr.msk.bf16.mxu0 %vm999_vm4, %v11370_v2  ;;  %v9601_v2 = vld [vmem:[%s11106_s0 + $0xd4] sm:$0x1] }
 0x193   :  { %v4305_v17 = vor.u32 %v4304_v37, %v4300_v5  ;;  %v4308_v53 = vshll.u32 %v9601_v2, 16  ;;  %v11380_v5 = vld [vmem:[#allocation3_spill] sm:$0xff] }
 0x199   :  { %6695 = vmatmul.mubr.msk.bf16.gmra.mrb[48].mxu1 %vm999_vm4, %v9121_v58  ;;  %6993 = vmatmul.mubr.msk.bf16.gmra.mrb[16].mxu0 %vm999_vm4, %v11371_v28  ;;  %v11373_v28 = vld [vmem:[#allocation25_spill] sm:$0xff]  ;;  %v4310_v58 = vrot.slane %v4308_v53, 5  ;;  %v3144_v53 = vshll.u32 %v9227_v50, 16 }
 0x19a   :  { %6698 = vmatprep.mubr.msk.bf16.mxu1 %vm999_vm4, %v9167_v13  ;;  %6996 = vmatprep.mubr.msk.bf16.mxu0 %vm999_vm4, %v11372_v22  ;;  %v11374_v22 = vld [vmem:[#allocation27_spill] sm:$0xff]  ;;  %v4306_v13 = vrot.slane %v4305_v17, 4  ;;  %v11384_v17 = vld [vmem:[#allocation44_spill] sm:$0xff] }
 0x19c   :  { %v4311_v31 = vsel %vm7796_vm3, %v4306_v13, %v4310_v58  ;;  %v11381_v58 = vld [vmem:[#allocation38_spill] sm:$0xff]  ;;  %v11383_v13 = vld [vmem:[#allocation43_spill] sm:$0xff] }
 0x19d   :  { %v6145_v37 = vcombine.low %v4301_v21, %v4311_v31  ;;  %v3146_v21 = vrot.slane %v3144_v53, 5  ;;  %v3156_v31 = vrot.slane %v3154_v51, 4 }
 0x1a1   :  { %6699 = vmatmul.mubr.msk.bf16.gmra.mrb[52].mxu1 %vm999_vm4, %v9177_v59  ;;  %6997 = vmatmul.mubr.msk.bf16.gmra.mrb[20].mxu0 %vm999_vm4, %v11373_v28  ;;  %v11375_v59 = vld [vmem:[#allocation28_spill] sm:$0xff]  ;;  %v11376_v28 = vld [vmem:[#allocation29_spill] sm:$0xff] }
 0x1a2   :  { %6702 = vmatprep.mubr.msk.bf16.mxu1 %vm999_vm4, %v9073_v40  ;;  %7000 = vmatprep.mubr.msk.bf16.mxu0 %vm999_vm4, %v11374_v22  ;;  %v11378_v22 = vld [vmem:[#allocation23_spill] sm:$0xff] }
 0x1a9   :  { %6703 = vmatmul.mubr.msk.bf16.gmra.mrb[56].mxu1 %vm999_vm4, %v9081_v12  ;;  %7001 = vmatmul.mubr.msk.bf16.gmra.mrb[24].mxu0 %vm999_vm4, %v11375_v59  ;;  %v11377_v59 = vld [vmem:[#allocation34_spill] sm:$0xff] }
 0x1aa   :  { %6706 = vmatprep.mubr.msk.bf16.mxu1 %vm999_vm4, %v9101_v54  ;;  %7004 = vmatprep.mubr.msk.bf16.mxu0 %vm999_vm4, %v11376_v28 }
 0x1b1   :  { %6707 = vmatmul.mubr.msk.bf16.gmra.mrb[60].mxu1 %vm999_vm4, %v9250_v44  ;;  %7005 = vmatmul.mubr.msk.bf16.gmra.mrb[28].mxu0 %vm999_vm4, %v6145_v37  ;;  %v11388_v37 = vld [vmem:[#allocation58_spill] sm:$0xff] }
 0x1b2   :  { %6712 = vmatprep.mubr.msk.bf16.mxu1 %vm999_vm4, %v8947_v32  ;;  %7008 = vmatprep.mubr.msk.bf16.mxu0 %vm999_vm4, %v11377_v59  ;;  %v11382_v32 = vld [vmem:[#allocation40_spill] sm:$0xff] }
 0x1b9   :  { %6713 = vmatmul.mubr.msk.bf16.vlgmr.msra.gmra.mrb[0].mxu1 %vm999_vm4, %v11378_v22  ;;  %7009 = vmatmul.mubr.msk.bf16.gmra.mrb[32].mxu0 %vm999_vm4, %v11379_v61  ;;  %v4316_v22 = vshll.u32 %v9533_v41, 16 }
 0x1ba   :  { %7107 = vmatpush3.bf16.msra.mxu1 %v11380_v5  ;;  %6716 = vmatprep.mubr.msk.bf16.mxu1 %vm999_vm4, %v8998_v42  ;;  %v11385_v42 = vld [vmem:[#allocation49_spill] sm:$0xff]  ;;  %v4322_v5 = vshll.u32 %v9538_v14, 16 }
 0x1bb   :  { %7012 = vmatprep.mubr.msk.bf16.mxu0 %vm999_vm4, %v11381_v58  ;;  %v4318_v44 = vrot.slane %v4316_v22, 5 }
 0x1bc   :  { %v4324_v54 = vrot.slane %v4322_v5, 5 }
 0x1c1   :  { %6717 = vmatmul.mubr.msk.bf16.gmra.mrb[4].mxu1 %vm999_vm4, %v9012_v16  ;;  %7013 = vmatmul.mubr.msk.bf16.gmra.mrb[36].mxu0 %vm999_vm4, %v11382_v32  ;;  %v11386_v16 = vld [vmem:[#allocation52_spill] sm:$0xff] }
 0x1c2   :  { %6720 = vmatprep.mubr.msk.bf16.mxu1 %vm999_vm4, %v9030_v48  ;;  %7016 = vmatprep.mubr.msk.bf16.mxu0 %vm999_vm4, %v11383_v13  ;;  %v11387_v48 = vld [vmem:[#allocation57_spill] sm:$0xff] }
 0x1c9   :  { %6721 = vmatmul.mubr.msk.bf16.gmra.mrb[8].mxu1 %vm999_vm4, %v9047_v6  ;;  %7017 = vmatmul.mubr.msk.bf16.gmra.mrb[40].mxu0 %vm999_vm4, %v11384_v17  ;;  %v3141_v6 = vshrl.u32 %v9227_v50, 16  ;;  %v4326_v50 = vshrl.u32 %v9538_v14, 16  ;;  %v11391_v14 = vld [vmem:[#allocation18_spill] sm:$0xff] }
 0x1ca   :  { %6724 = vmatprep.mubr.msk.bf16.mxu1 %vm999_vm4, %v9109_v11  ;;  %7020 = vmatprep.mubr.msk.bf16.mxu0 %vm999_vm4, %v11385_v42  ;;  %v3150_v11 = vshll.u32 %v9209_v27, 16  ;;  %v11389_v27 = vld [vmem:[#allocation14_spill] sm:$0xff] }
 0x1cb   :  { %v3143_v28 = vrot.slane %v3141_v6, 4  ;;  %v4328_v12 = vrot.slane %v4326_v50, 4 }
 0x1cd   :  { %v3147_v6 = vor.u32 %v3146_v21, %v3143_v28  ;;  %v11392_v28 = vld [vmem:[#allocation19_spill] sm:$0xff] }
 0x1cf   :  { %v3148_v40 = vrot.slane %v3147_v6, 4 }
 0x1d1   :  { %6725 = vmatmul.mubr.msk.bf16.gmra.mrb[12].mxu1 %vm999_vm4, %v9119_v56  ;;  %7021 = vmatmul.mubr.msk.bf16.gmra.mrb[44].mxu0 %vm999_vm4, %v11386_v16  ;;  %v3152_v56 = vrot.slane %v3150_v11, 5 }
 0x1d2   :  { %6728 = vmatprep.mubr.msk.bf16.mxu1 %vm999_vm4, %v9165_v38  ;;  %7024 = vmatprep.mubr.msk.bf16.mxu0 %vm999_vm4, %v11387_v48  ;;  %v4313_v38 = vshrl.u32 %v9533_v41, 16 }
 0x1d3   :  { %v3157_v53 = vor.u32 %v3156_v31, %v3152_v56  ;;  %v4329_v31 = vor.u32 %v4328_v12, %v4324_v54  ;;  %v3153_v22 = vsel %vm7796_vm3, %v3148_v40, %v3152_v56 }
 0x1d4   :  { %v4315_v51 = vrot.slane %v4313_v38, 4 }
 0x1d5   :  { %v3158_v41 = vrot.slane %v3157_v53, 4  ;;  %v4330_v6 = vrot.slane %v4329_v31, 4 }
 0x1d6   :  { %v4319_v21 = vor.u32 %v4318_v44, %v4315_v51 }
 0x1d8   :  { %v4320_v5 = vrot.slane %v4319_v21, 4 }
 0x1d9   :  { %6729 = vmatmul.mubr.msk.bf16.gmra.mrb[16].mxu1 %vm999_vm4, %v9175_v35  ;;  %7025 = vmatmul.mubr.msk.bf16.gmra.mrb[48].mxu0 %vm999_vm4, %v11388_v37  ;;  %v11390_v35 = vld [vmem:[#allocation16_spill] sm:$0xff] }
 0x1da   :  { %6732 = vmatprep.mubr.msk.bf16.mxu1 %vm999_vm4, %v9194_v60  ;;  %7028 = vmatprep.mubr.msk.bf16.mxu0 %vm999_vm4, %v11389_v27  ;;  %v3160_v11 = vshll.u32 %v11390_v35, 16  ;;  %v9684_v60 = vld [vmem:[%s11106_s0 + $0x1ac] sm:$0x1]  ;;  %v4325_v40 = vsel %vm7796_vm3, %v4320_v5, %v4324_v54  ;;  %v11395_v54 = vld [vmem:[#allocation47_spill] sm:$0xff] }
 0x1db   :  { %v4332_v38 = vshll.u32 %v9684_v60, 16 }
 0x1dc   :  { %v3162_v37 = vrot.slane %v3160_v11, 5 }
 0x1dd   :  { %v4334_v53 = vrot.slane %v4332_v38, 5 }
 0x1de   :  { %v3163_v50 = vsel %vm7796_vm3, %v3158_v41, %v3162_v37  ;;  %v11409_v41 = vld [vmem:[#allocation32_spill] sm:$0xff] }
 0x1df   :  { %v4335_v12 = vsel %vm7796_vm3, %v4330_v6, %v4334_v53 }
 0x1e0   :  { %v6146_v44 = vcombine.low %v4325_v40, %v4335_v12 }
 0x1e1   :  { %6733 = vmatmul.mubr.msk.bf16.gmra.mrb[20].mxu1 %vm999_vm4, %v9202_v39  ;;  %7029 = vmatmul.mubr.msk.bf16.gmra.mrb[52].mxu0 %vm999_vm4, %v11391_v14  ;;  %v9699_v39 = vcombine.low %v3153_v22, %v3163_v50 }
 0x1e2   :  { %6736 = vmatprep.mubr.msk.bf16.mxu1 %vm999_vm4, %v9240_v15  ;;  %7032 = vmatprep.mubr.msk.bf16.mxu0 %vm999_vm4, %v11392_v28  ;;  %v11393_v15 = vld [vmem:[#allocation21_spill] sm:$0xff] }
 0x1e9   :  { %6737 = vmatmul.mubr.msk.bf16.gmra.mrb[24].mxu1 %vm999_vm4, %v9248_v52  ;;  %7033 = vmatmul.mubr.msk.bf16.gmra.mrb[56].mxu0 %vm999_vm4, %v11393_v15  ;;  %v11396_v52 = vld [vmem:[#allocation64_spill] sm:$0xff] }
 0x1ea   :  { %6740 = vmatprep.mubr.msk.bf16.mxu1 %vm999_vm4, %v9272_v25  ;;  %7036 = vmatprep.mubr.msk.bf16.mxu0 %vm999_vm4, %v9699_v39  ;;  %v11397_v25 = vld [vmem:[#allocation53_spill] sm:$0xff] }
 0x1f1   :  { %6741 = vmatmul.mubr.msk.bf16.gmra.mrb[28].mxu1 %vm999_vm4, %v9423_v20  ;;  %7037 = vmatmul.mubr.msk.bf16.gmra.mrb[60].mxu0 %vm999_vm4, %v6146_v44  ;;  %v4708_v20 = vrot.slane %v9445_v34, 5 }
 0x1f2   :  { %6744 = vmatprep.mubr.msk.bf16.mxu1 %vm999_vm4, %v9301_v1  ;;  %7042 = vmatprep.mubr.msk.bf16.mxu0 %vm999_vm4, %v11346_v63  ;;  %v11398_v1 = vld [vmem:[#allocation65_spill] sm:$0xff]  ;;  %v6179_v63 = vrot.slane %v9440_v57, 9 }
 0x1f4   :  { %v4709_v34 = vsel %vm8281_vm7, %v6179_v63, %v4708_v20 }
 0x1f9   :  { %6745 = vmatmul.mubr.msk.bf16.gmra.mrb[32].mxu1 %vm999_vm4, %v9309_v45  ;;  %7043 = vmatmul.mubr.msk.bf16.vlgmr.msra.gmra.mrb[0].mxu0 %vm999_vm4, %v11347_v24  ;;  %v11399_v45 = vld [vmem:[#allocation56_spill] sm:$0xff]  ;;  %v4710_v24 = vrot.slane %v4708_v20, 4 }
 0x1fa   :  { %6748 = vmatprep.mubr.msk.bf16.mxu1 %vm999_vm4, %v9334_v0  ;;  %7046 = vmatprep.mubr.msk.bf16.mxu0 %vm999_vm4, %v11348_v36  ;;  %v11400_v0 = vld [vmem:[#allocation66_spill] sm:$0xff]  ;;  %v4711_v36 = vrot.slane %v9601_v2, 5 }
 0x1fc   :  { %v4712_v57 = vsel %vm8281_vm7, %v4710_v24, %v4711_v36 }
 0x201   :  { %6749 = vmatmul.mubr.msk.bf16.gmra.mrb[36].mxu1 %vm999_vm4, %v9342_v43  ;;  %7047 = vmatmul.mubr.msk.bf16.gmra.mrb[4].mxu0 %vm999_vm4, %v11349_v47  ;;  %v11401_v43 = vld [vmem:[#allocation54_spill] sm:$0xff]  ;;  %v11406_v47 = vld [vmem:[#allocation51_spill] sm:$0xff] }
 0x202   :  { %6752 = vmatprep.mubr.msk.bf16.mxu1 %vm999_vm4, %v9358_v4  ;;  %7050 = vmatprep.mubr.msk.bf16.mxu0 %vm999_vm4, %v11350_v7  ;;  %v11402_v4 = vld [vmem:[#allocation12_spill] sm:$0xff]  ;;  %v11407_v7 = vld [vmem:[#allocation22_spill] sm:$0xff] }
 0x209   :  { %6753 = vmatmul.mubr.msk.bf16.gmra.mrb[40].mxu1 %vm999_vm4, %v9362_v55  ;;  %7051 = vmatmul.mubr.msk.bf16.gmra.mrb[8].mxu0 %vm999_vm4, %v11351_v19  ;;  %v11403_v55 = vld [vmem:[#allocation46_spill] sm:$0xff]  ;;  %v6181_v19 = vcombine.low %v4709_v34, %v4712_v57 }
 0x20a   :  { %6756 = vmatprep.mubr.msk.bf16.mxu1 %vm999_vm4, %v9374_v33  ;;  %7054 = vmatprep.mubr.msk.bf16.mxu0 %vm999_vm4, %v11352_v29  ;;  %v11404_v33 = vld [vmem:[#allocation60_spill] sm:$0xff]  ;;  %v11408_v29 = vld [vmem:[#allocation30_spill] sm:$0xff] }
 0x211   :  { %6757 = vmatmul.mubr.msk.bf16.gmra.mrb[44].mxu1 %vm999_vm4, %v11394_v30  ;;  %7055 = vmatmul.mubr.msk.bf16.gmra.mrb[12].mxu0 %vm999_vm4, %v11395_v54 }
 0x212   :  { %6760 = vmatprep.mubr.msk.bf16.mxu1 %vm999_vm4, %v11396_v52  ;;  %7058 = vmatprep.mubr.msk.bf16.mxu0 %vm999_vm4, %v11397_v25 }
 0x219   :  { %6761 = vmatmul.mubr.msk.bf16.gmra.mrb[48].mxu1 %vm999_vm4, %v11398_v1  ;;  %7059 = vmatmul.mubr.msk.bf16.gmra.mrb[16].mxu0 %vm999_vm4, %v11399_v45 }
 0x21a   :  { %6764 = vmatprep.mubr.msk.bf16.mxu1 %vm999_vm4, %v11400_v0  ;;  %7062 = vmatprep.mubr.msk.bf16.mxu0 %vm999_vm4, %v11356_v10  ;;  %v11405_v10 = vld [vmem:[#allocation50_spill] sm:$0xff] }
 0x221   :  { %6765 = vmatmul.mubr.msk.bf16.gmra.mrb[52].mxu1 %vm999_vm4, %v11401_v43  ;;  %7063 = vmatmul.mubr.msk.bf16.gmra.mrb[20].mxu0 %vm999_vm4, %v11402_v4 }
 0x222   :  { %6768 = vmatprep.mubr.msk.bf16.mxu1 %vm999_vm4, %v11403_v55  ;;  %7066 = vmatprep.mubr.msk.bf16.mxu0 %vm999_vm4, %v11404_v33 }
 0x229   :  { %6769 = vmatmul.mubr.msk.bf16.gmra.mrb[56].mxu1 %vm999_vm4, %v11405_v10  ;;  %7067 = vmatmul.mubr.msk.bf16.gmra.mrb[24].mxu0 %vm999_vm4, %v8874_v46  ;;  %v11410_v46 = vld [vmem:[#allocation48_spill] sm:$0xff] }
 0x22a   :  { %6772 = vmatprep.mubr.msk.bf16.mxu1 %vm999_vm4, %v11406_v47  ;;  %7070 = vmatprep.mubr.msk.bf16.mxu0 %vm999_vm4, %v11407_v7 }
 0x231   :  { %6773 = vmatmul.mubr.msk.bf16.gmra.mrb[60].mxu1 %vm999_vm4, %v11408_v29  ;;  %7071 = vmatmul.mubr.msk.bf16.gmra.mrb[28].mxu0 %vm999_vm4, %v6181_v19 }
 0x232   :  { %6810 = vmatprep.mubr.msk.bf16.mxu1 %vm999_vm4, %v11409_v41  ;;  %7074 = vmatprep.mubr.msk.bf16.mxu0 %vm999_vm4, %v8951_v8  ;;  %v11411_v8 = vld [vmem:[#allocation55_spill] sm:$0xff] }
 0x239   :  { %6811 = vmatmul.mubr.msk.bf16.vlgmr.msra.gmra.mrb[32].mxu1 %vm999_vm4, %v11377_v59  ;;  %7075 = vmatmul.mubr.msk.bf16.gmra.mrb[32].mxu0 %vm999_vm4, %v8963_v49  ;;  %v11412_v49 = vld [vmem:[#allocation61_spill] sm:$0xff]  ;;  %v11418_v59 = vld [vmem:[#allocation31_spill] sm:$0xff] }
 0x23a   :  { %6814 = vmatprep.mubr.msk.bf16.mxu1 %vm999_vm4, %v11379_v61  ;;  %7078 = vmatprep.mubr.msk.bf16.mxu0 %vm999_vm4, %v9002_v9  ;;  %v11413_v9 = vld [vmem:[#allocation58_spill] sm:$0xff]  ;;  %v6180_v61 = vrot.slane %v11418_v59, 9 }
 0x241   :  { %6815 = vmatmul.mubr.msk.bf16.gmra.mrb[36].mxu1 %vm999_vm4, %v11381_v58  ;;  %7079 = vmatmul.mubr.msk.bf16.gmra.mrb[36].mxu0 %vm999_vm4, %v9014_v26  ;;  %v11414_v26 = vld [vmem:[#allocation24_spill] sm:$0xff] }
 0x242   :  { %6818 = vmatprep.mubr.msk.bf16.mxu1 %vm999_vm4, %v11382_v32  ;;  %7082 = vmatprep.mubr.msk.bf16.mxu0 %vm999_vm4, %v9052_v3  ;;  %v11415_v3 = vld [vmem:[#allocation26_spill] sm:$0xff]  ;;  %v4718_v32 = vrot.slane %v9684_v60, 5 }
 0x249   :  { %6819 = vmatmul.mubr.msk.bf16.gmra.mrb[40].mxu1 %vm999_vm4, %v11383_v13  ;;  %7083 = vmatmul.mubr.msk.bf16.gmra.mrb[40].mxu0 %vm999_vm4, %v9057_v62  ;;  %v11416_v62 = vld [vmem:[#allocation15_spill] sm:$0xff]  ;;  %v11419_v13 = vld [vmem:[#allocation62_spill] sm:$0xff] }
 0x24a   :  { %6822 = vmatprep.mubr.msk.bf16.mxu1 %vm999_vm4, %v11384_v17  ;;  %7086 = vmatprep.mubr.msk.bf16.mxu0 %vm999_vm4, %v9111_v18  ;;  %v11417_v18 = vld [vmem:[#allocation33_spill] sm:$0xff] }
 0x24b   :  { %v4715_v2 = vrot.slane %v11417_v18, 5 }
 0x24d   :  { %v4717_v58 = vrot.slane %v4715_v2, 4  ;;  %v4716_v17 = vsel %vm8281_vm7, %v6180_v61, %v4715_v2 }
 0x251   :  { %6823 = vmatmul.mubr.msk.bf16.gmra.mrb[44].mxu1 %vm999_vm4, %v11385_v42  ;;  %7087 = vmatmul.mubr.msk.bf16.gmra.mrb[44].mxu0 %vm999_vm4, %v11410_v46  ;;  %v4719_v42 = vsel %vm8281_vm7, %v4717_v58, %v4718_v32 }
 0x252   :  { %6826 = vmatprep.mubr.msk.bf16.mxu1 %vm999_vm4, %v11386_v16  ;;  %7090 = vmatprep.mubr.msk.bf16.mxu0 %vm999_vm4, %v11411_v8  ;;  %v6182_v16 = vcombine.low %v4716_v17, %v4719_v42 }
 0x259   :  { %6827 = vmatmul.mubr.msk.bf16.gmra.mrb[48].mxu1 %vm999_vm4, %v11387_v48  ;;  %7091 = vmatmul.mubr.msk.bf16.gmra.mrb[48].mxu0 %vm999_vm4, %v11412_v49 }
 0x25a   :  { %6830 = vmatprep.mubr.msk.bf16.mxu1 %vm999_vm4, %v11413_v9  ;;  %7094 = vmatprep.mubr.msk.bf16.mxu0 %vm999_vm4, %v11414_v26 }
 0x261   :  { %6831 = vmatmul.mubr.msk.bf16.gmra.mrb[52].mxu1 %vm999_vm4, %v11389_v27  ;;  %7095 = vmatmul.mubr.msk.bf16.gmra.mrb[52].mxu0 %vm999_vm4, %v11415_v3 }
 0x262   :  { %6834 = vmatprep.mubr.msk.bf16.mxu1 %vm999_vm4, %v11391_v14  ;;  %7098 = vmatprep.mubr.msk.bf16.mxu0 %vm999_vm4, %v11416_v62  ;;  %v11420_v14 = vld [vmem:[#allocation63_spill] sm:$0xff] }
 0x269   :  { %6835 = vmatmul.mubr.msk.bf16.gmra.mrb[56].mxu1 %vm999_vm4, %v11392_v28  ;;  %7099 = vmatmul.mubr.msk.bf16.gmra.mrb[56].mxu0 %vm999_vm4, %v11419_v13 }
 0x26a   :  { %6838 = vmatprep.mubr.msk.bf16.mxu1 %vm999_vm4, %v11393_v15  ;;  %7102 = vmatprep.mubr.msk.bf16.mxu0 %vm999_vm4, %v11420_v14 }
 0x271   :  { %6839 = vmatmul.mubr.msk.bf16.gmra.mrb[60].mxu1 %vm999_vm4, %v9699_v39  ;;  %7103 = vmatmul.mubr.msk.bf16.gmra.mrb[60].mxu0 %vm999_vm4, %v6182_v16 }
 0x28c   :  { %v6714_v48 = vpop.f32.mrb[0].mxu1 }
 0x28d   :  { %v2797_v56 = vpop.f32.mrb[1].mxu1 }
 0x28e   :  { %v6715_v37 = vpop.f32.mrb[2].mxu1 }
 0x28f   :  { %v2800_v27 = vpop.f32.mrb[3].mxu1 }
 0x294   :  { %v6718_v35 = vpop.f32.mrb[4].mxu1 }
 0x295   :  { %v2813_v11 = vpop.f32.mrb[5].mxu1 }
 0x296   :  { %v9856_v51 = vpop.f32.mrb[6].mxu1 }
 0x297   :  { %v9858_v60 = vpop.f32.mrb[7].mxu1 }
 0x29c   :  { %v9860_v28 = vpop.f32.mrb[8].mxu1 }
 0x29d   :  { %v9862_v23 = vpop.f32.mrb[9].mxu1 }
 0x29e   :  { %v9864_v21 = vpop.f32.mrb[10].mxu1 }
 0x29f   :  { %v9866_v31 = vpop.f32.mrb[11].mxu1 }
 0x2a4   :  { %v9868_v38 = vpop.f32.mrb[12].mxu1 }
 0x2a5   :  { %v9870_v22 = vpop.f32.mrb[13].mxu1 }
 0x2a6   :  { %v9872_v50 = vpop.f32.mrb[14].mxu1 }
 0x2a7   :  { %v9874_v39 = vpop.f32.mrb[15].mxu1 }
 0x2ac   :  { %v9876_v5 = vpop.f32.mrb[16].mxu1 }
 0x2ad   :  { %v9878_v6 = vpop.f32.mrb[17].mxu1 }
 0x2ae   :  { %v9880_v53 = vpop.f32.mrb[18].mxu1 }
 0x2af   :  { %v9882_v15 = vpop.f32.mrb[19].mxu1 }
 0x2b4   :  { %v9884_v40 = vpop.f32.mrb[20].mxu1 }
 0x2b5   :  { %v9886_v12 = vpop.f32.mrb[21].mxu1 }
 0x2b6   :  { %v9888_v44 = vpop.f32.mrb[22].mxu1 }
 0x2b7   :  { %v9890_v30 = vpop.f32.mrb[23].mxu1 }
 0x2bc   :  { %v9892_v54 = vpop.f32.mrb[24].mxu1 }
 0x2bd   :  { %v9894_v52 = vpop.f32.mrb[25].mxu1 }
 0x2be   :  { %v9896_v25 = vpop.f32.mrb[26].mxu1 }
 0x2bf   :  { %v9898_v1 = vpop.f32.mrb[27].mxu1 }
 0x2c4   :  { %v9900_v45 = vpop.f32.mrb[28].mxu1 }
 0x2c5   :  { %v9902_v0 = vpop.f32.mrb[29].mxu1 }
 0x2c6   :  { %v9904_v43 = vpop.f32.mrb[30].mxu1 }
 0x2c7   :  { %v9906_v4 = vpop.f32.mrb[31].mxu1 }
 0x2cc   :  { %v7044_v55 = vpop.f32.mrb[0].mxu0 }
 0x2cd   :  { %v7108_v33 = vadd.f32 %v7044_v55, %v6714_v48  ;;  %v4769_v20 = vpop.f32.mrb[1].mxu0 }
 0x2ce   :  { %v7109_v63 = vadd.f32 %v4769_v20, %v2797_v56  ;;  %v7045_v24 = vpop.f32.mrb[2].mxu0 }
 0x2cf   :  { %5435 = vst.msk [vmem:[%s11107_s3 + $0x10] sm:$0xff] %vm5088_vm8, %v7108_v33  ;;  %v7110_v36 = vadd.f32 %v7045_v24, %v6715_v37  ;;  %v4772_v10 = vpop.f32.mrb[3].mxu0  ;;  %v5224_v34 = vmul.f32 %v7108_v33, %v7108_v33  ;;  %v5092_v8 = vsel %vm5088_vm8, %v7108_v33, 0.0 }
 0x2d0   :  { %v5222_v47 = vmul.f32 %v7109_v63, %v7109_v63  ;;  %5433 = vst.msk [vmem:[%s11107_s3] sm:$0xff] %vm5088_vm8, %v7109_v63  ;;  %v7111_v7 = vadd.f32 %v4772_v10, %v2800_v27  ;;  %v5089_v57 = vsel %vm5088_vm8, %v7109_v63, 0.0 }
 0x2d1   :  { %5436 = vst.msk [vmem:[%s11107_s3 + $0x18] sm:$0xff] %vm5088_vm8, %v7110_v36  ;;  %v5225_v41 = vmul.f32 %v7110_v36, %v7110_v36  ;;  %v5289_v59 = vsel %vm5088_vm8, %v5224_v34, 0.0  ;;  %v5094_v61 = vsel %vm5088_vm8, %v7110_v36, 0.0  ;;  %v7718_v36 = vmov 0.0  }
 0x2d2   :  { %v5090_v19 = vsel %vm5088_vm8, %v7111_v7, 0.0  ;;  %v5223_v29 = vmul.f32 %v7111_v7, %v7111_v7  ;;  %5434 = vst.msk [vmem:[%s11107_s3 + $0x8] sm:$0xff] %vm5088_vm8, %v7111_v7  ;;  %v5286_v49 = vsel %vm5088_vm8, %v5222_v47, 0.0 }
 0x2d3   :  { %v5091_v46 = vadd.f32 %v5090_v19, %v5089_v57  ;;  %v5291_v13 = vsel %vm5088_vm8, %v5225_v41, 0.0  ;;  %5426 = vst.msk [vmem:[#allocation2] sm:$0x3] %vm5425_vm9, %v7718_v36 }
 0x2d4   :  { %v5287_v9 = vsel %vm5088_vm8, %v5223_v29, 0.0  ;;  %v7048_v26 = vpop.f32.mrb[4].mxu0 }
 0x2d5   :  { %v5093_v3 = vadd.f32 %v5092_v8, %v5091_v46  ;;  %v5288_v62 = vadd.f32 %v5287_v9, %v5286_v49  ;;  %v7112_v18 = vadd.f32 %v7048_v26, %v6718_v35  ;;  %v4785_v2 = vpop.f32.mrb[5].mxu0 }
 0x2d6   :  { %v7113_v58 = vadd.f32 %v4785_v2, %v2813_v11  ;;  %v7049_v32 = vpop.f32.mrb[6].mxu0 }
 0x2d7   :  { %v5290_v14 = vadd.f32 %v5289_v59, %v5288_v62  ;;  %5439 = vst.msk [vmem:[%s11107_s3 + $0x30] sm:$0xff] %vm5088_vm8, %v7112_v18  ;;  %v5095_v17 = vadd.f32 %v5094_v61, %v5093_v3  ;;  %v4788_v42 = vpop.f32.mrb[7].mxu0  ;;  %v7114_v56 = vadd.f32 %v7049_v32, %v9856_v51  ;;  %v5228_v11 = vmul.f32 %v7112_v18, %v7112_v18 }
 0x2d8   :  { %v5096_v16 = vsel %vm5088_vm8, %v7113_v58, 0.0  ;;  %v5226_v48 = vmul.f32 %v7113_v58, %v7113_v58  ;;  %5437 = vst.msk [vmem:[%s11107_s3 + $0x20] sm:$0xff] %vm5088_vm8, %v7113_v58  ;;  %v7115_v37 = vadd.f32 %v4788_v42, %v9858_v60  ;;  %v5100_v63 = vsel %vm5088_vm8, %v7112_v18, 0.0 }
 0x2d9   :  { %v5097_v27 = vadd.f32 %v5096_v16, %v5095_v17  ;;  %v5292_v35 = vadd.f32 %v5291_v13, %v5290_v14  ;;  %5440 = vst.msk [vmem:[%s11107_s3 + $0x38] sm:$0xff] %vm5088_vm8, %v7114_v56  ;;  %v5229_v10 = vmul.f32 %v7114_v56, %v7114_v56  ;;  %v5102_v19 = vsel %vm5088_vm8, %v7114_v56, 0.0 }
 0x2da   :  { %v5293_v55 = vsel %vm5088_vm8, %v5226_v48, 0.0  ;;  %v5098_v33 = vsel %vm5088_vm8, %v7115_v37, 0.0  ;;  %5438 = vst.msk [vmem:[%s11107_s3 + $0x28] sm:$0xff] %vm5088_vm8, %v7115_v37  ;;  %v5227_v20 = vmul.f32 %v7115_v37, %v7115_v37  ;;  %v5297_v8 = vsel %vm5088_vm8, %v5228_v11, 0.0 }
 0x2db   :  { %v5294_v51 = vadd.f32 %v5293_v55, %v5292_v35  ;;  %v5099_v60 = vadd.f32 %v5098_v33, %v5097_v27  ;;  %v5299_v18 = vsel %vm5088_vm8, %v5229_v10, 0.0 }
 0x2dc   :  { %v7052_v24 = vpop.f32.mrb[8].mxu0  ;;  %v5295_v7 = vsel %vm5088_vm8, %v5227_v20, 0.0 }
 0x2dd   :  { %v5101_v47 = vadd.f32 %v5100_v63, %v5099_v60  ;;  %v7116_v34 = vadd.f32 %v7052_v24, %v9860_v28  ;;  %v4801_v57 = vpop.f32.mrb[9].mxu0  ;;  %v5296_v29 = vadd.f32 %v5295_v7, %v5294_v51 }
 0x2de   :  { %v7117_v41 = vadd.f32 %v4801_v57, %v9862_v23  ;;  %v7053_v46 = vpop.f32.mrb[10].mxu0 }
 0x2df   :  { %5443 = vst.msk [vmem:[%s11107_s3 + $0x50] sm:$0xff] %vm5088_vm8, %v7116_v34  ;;  %v5103_v49 = vadd.f32 %v5102_v19, %v5101_v47  ;;  %v7118_v9 = vadd.f32 %v7053_v46, %v9864_v21  ;;  %v4804_v26 = vpop.f32.mrb[11].mxu0  ;;  %v5298_v3 = vadd.f32 %v5297_v8, %v5296_v29  ;;  %v5108_v13 = vsel %vm5088_vm8, %v7116_v34, 0.0 }
 0x2e0   :  { %v5104_v28 = vsel %vm5088_vm8, %v7117_v41, 0.0  ;;  %v5230_v62 = vmul.f32 %v7117_v41, %v7117_v41  ;;  %5441 = vst.msk [vmem:[%s11107_s3 + $0x40] sm:$0xff] %vm5088_vm8, %v7117_v41  ;;  %v7119_v23 = vadd.f32 %v4804_v26, %v9866_v31  ;;  %v5232_v31 = vmul.f32 %v7116_v34, %v7116_v34 }
 0x2e1   :  { %v5105_v2 = vadd.f32 %v5104_v28, %v5103_v49  ;;  %5444 = vst.msk [vmem:[%s11107_s3 + $0x58] sm:$0xff] %vm5088_vm8, %v7118_v9  ;;  %v5300_v21 = vadd.f32 %v5299_v18, %v5298_v3  ;;  %v5233_v16 = vmul.f32 %v7118_v9, %v7118_v9  ;;  %v5110_v27 = vsel %vm5088_vm8, %v7118_v9, 0.0 }
 0x2e2   :  { %v5301_v59 = vsel %vm5088_vm8, %v5230_v62, 0.0  ;;  %v5106_v61 = vsel %vm5088_vm8, %v7119_v23, 0.0  ;;  %v5231_v58 = vmul.f32 %v7119_v23, %v7119_v23  ;;  %5442 = vst.msk [vmem:[%s11107_s3 + $0x48] sm:$0xff] %vm5088_vm8, %v7119_v23  ;;  %v5305_v33 = vsel %vm5088_vm8, %v5232_v31, 0.0 }
 0x2e3   :  { %v5107_v32 = vadd.f32 %v5106_v61, %v5105_v2  ;;  %v5302_v14 = vadd.f32 %v5301_v59, %v5300_v21  ;;  %v5307_v36 = vsel %vm5088_vm8, %v5233_v16, 0.0 }
 0x2e4   :  { %v5303_v17 = vsel %vm5088_vm8, %v5231_v58, 0.0  ;;  %v7056_v42 = vpop.f32.mrb[12].mxu0 }
 0x2e5   :  { %v5109_v48 = vadd.f32 %v5108_v13, %v5107_v32  ;;  %v7120_v56 = vadd.f32 %v7056_v42, %v9868_v38  ;;  %v4817_v37 = vpop.f32.mrb[13].mxu0  ;;  %v5304_v35 = vadd.f32 %v5303_v17, %v5302_v14 }
 0x2e6   :  { %v7121_v11 = vadd.f32 %v4817_v37, %v9870_v22  ;;  %v7057_v55 = vpop.f32.mrb[14].mxu0 }
 0x2e7   :  { %5447 = vst.msk [vmem:[%s11107_s3 + $0x70] sm:$0xff] %vm5088_vm8, %v7120_v56  ;;  %v5111_v51 = vadd.f32 %v5110_v27, %v5109_v48  ;;  %v7122_v60 = vadd.f32 %v7057_v55, %v9872_v50  ;;  %v4820_v20 = vpop.f32.mrb[15].mxu0  ;;  %v5306_v63 = vadd.f32 %v5305_v33, %v5304_v35  ;;  %v5116_v19 = vsel %vm5088_vm8, %v7120_v56, 0.0 }
 0x2e8   :  { %v5112_v38 = vsel %vm5088_vm8, %v7121_v11, 0.0  ;;  %v5234_v24 = vmul.f32 %v7121_v11, %v7121_v11  ;;  %5445 = vst.msk [vmem:[%s11107_s3 + $0x60] sm:$0xff] %vm5088_vm8, %v7121_v11  ;;  %v7123_v22 = vadd.f32 %v4820_v20, %v9874_v39  ;;  %v5236_v39 = vmul.f32 %v7120_v56, %v7120_v56 }
 0x2e9   :  { %v5113_v10 = vadd.f32 %v5112_v38, %v5111_v51  ;;  %5448 = vst.msk [vmem:[%s11107_s3 + $0x78] sm:$0xff] %vm5088_vm8, %v7122_v60  ;;  %v5308_v50 = vadd.f32 %v5307_v36, %v5306_v63  ;;  %v5237_v8 = vmul.f32 %v7122_v60, %v7122_v60  ;;  %v5118_v3 = vsel %vm5088_vm8, %v7122_v60, 0.0 }
 0x2ea   :  { %v5309_v47 = vsel %vm5088_vm8, %v5234_v24, 0.0  ;;  %v5114_v7 = vsel %vm5088_vm8, %v7123_v22, 0.0  ;;  %v5235_v34 = vmul.f32 %v7123_v22, %v7123_v22  ;;  %5446 = vst.msk [vmem:[%s11107_s3 + $0x68] sm:$0xff] %vm5088_vm8, %v7123_v22  ;;  %v5313_v18 = vsel %vm5088_vm8, %v5236_v39, 0.0 }
 0x2eb   :  { %v5115_v57 = vadd.f32 %v5114_v7, %v5113_v10  ;;  %v5310_v29 = vadd.f32 %v5309_v47, %v5308_v50  ;;  %v5315_v31 = vsel %vm5088_vm8, %v5237_v8, 0.0 }
 0x2ec   :  { %v5311_v41 = vsel %vm5088_vm8, %v5235_v34, 0.0  ;;  %v7060_v46 = vpop.f32.mrb[16].mxu0 }
 0x2ed   :  { %v5117_v49 = vadd.f32 %v5116_v19, %v5115_v57  ;;  %v7124_v9 = vadd.f32 %v7060_v46, %v9876_v5  ;;  %v4833_v26 = vpop.f32.mrb[17].mxu0  ;;  %v5312_v28 = vadd.f32 %v5311_v41, %v5310_v29 }
 0x2ee   :  { %v7125_v62 = vadd.f32 %v4833_v26, %v9878_v6  ;;  %v7061_v23 = vpop.f32.mrb[18].mxu0 }
 0x2ef   :  { %5451 = vst.msk [vmem:[%s11107_s3 + $0x90] sm:$0xff] %vm5088_vm8, %v7124_v9  ;;  %v5119_v2 = vadd.f32 %v5118_v3, %v5117_v49  ;;  %v7126_v21 = vadd.f32 %v7061_v23, %v9880_v53  ;;  %v4836_v59 = vpop.f32.mrb[19].mxu0  ;;  %v5314_v61 = vadd.f32 %v5313_v18, %v5312_v28  ;;  %v5124_v16 = vsel %vm5088_vm8, %v7124_v9, 0.0 }
 0x2f0   :  { %v5120_v5 = vsel %vm5088_vm8, %v7125_v62, 0.0  ;;  %v5238_v58 = vmul.f32 %v7125_v62, %v7125_v62  ;;  %5449 = vst.msk [vmem:[%s11107_s3 + $0x80] sm:$0xff] %vm5088_vm8, %v7125_v62  ;;  %v7127_v6 = vadd.f32 %v4836_v59, %v9882_v15  ;;  %v5240_v15 = vmul.f32 %v7124_v9, %v7124_v9 }
 0x2f1   :  { %v5121_v32 = vadd.f32 %v5120_v5, %v5119_v2  ;;  %5452 = vst.msk [vmem:[%s11107_s3 + $0x98] sm:$0xff] %vm5088_vm8, %v7126_v21  ;;  %v5316_v53 = vadd.f32 %v5315_v31, %v5314_v61  ;;  %v5241_v27 = vmul.f32 %v7126_v21, %v7126_v21  ;;  %v5126_v33 = vsel %vm5088_vm8, %v7126_v21, 0.0 }
 0x2f2   :  { %v5317_v13 = vsel %vm5088_vm8, %v5238_v58, 0.0  ;;  %v5122_v14 = vsel %vm5088_vm8, %v7127_v6, 0.0  ;;  %v5239_v17 = vmul.f32 %v7127_v6, %v7127_v6  ;;  %5450 = vst.msk [vmem:[%s11107_s3 + $0x88] sm:$0xff] %vm5088_vm8, %v7127_v6  ;;  %v5321_v63 = vsel %vm5088_vm8, %v5240_v15, 0.0 }
 0x2f3   :  { %v5123_v42 = vadd.f32 %v5122_v14, %v5121_v32  ;;  %v5318_v48 = vadd.f32 %v5317_v13, %v5316_v53  ;;  %v5323_v50 = vsel %vm5088_vm8, %v5241_v27, 0.0 }
 0x2f4   :  { %v5319_v56 = vsel %vm5088_vm8, %v5239_v17, 0.0  ;;  %v7064_v37 = vpop.f32.mrb[20].mxu0 }
 0x2f5   :  { %v5125_v35 = vadd.f32 %v5124_v16, %v5123_v42  ;;  %v7128_v11 = vadd.f32 %v7064_v37, %v9884_v40  ;;  %v4849_v55 = vpop.f32.mrb[21].mxu0  ;;  %v5320_v51 = vadd.f32 %v5319_v56, %v5318_v48 }
 0x2f6   :  { %v7129_v60 = vadd.f32 %v4849_v55, %v9886_v12  ;;  %v7065_v20 = vpop.f32.mrb[22].mxu0 }
 0x2f7   :  { %5455 = vst.msk [vmem:[%s11107_s3 + $0xb0] sm:$0xff] %vm5088_vm8, %v7128_v11  ;;  %v5127_v38 = vadd.f32 %v5126_v33, %v5125_v35  ;;  %v7130_v24 = vadd.f32 %v7065_v20, %v9888_v44  ;;  %v4852_v22 = vpop.f32.mrb[23].mxu0  ;;  %v5322_v36 = vadd.f32 %v5321_v63, %v5320_v51  ;;  %v5132_v19 = vsel %vm5088_vm8, %v7128_v11, 0.0 }
 0x2f8   :  { %v5128_v40 = vsel %vm5088_vm8, %v7129_v60, 0.0  ;;  %v5242_v10 = vmul.f32 %v7129_v60, %v7129_v60  ;;  %5453 = vst.msk [vmem:[%s11107_s3 + $0xa0] sm:$0xff] %vm5088_vm8, %v7129_v60  ;;  %v7131_v12 = vadd.f32 %v4852_v22, %v9890_v30  ;;  %v5244_v30 = vmul.f32 %v7128_v11, %v7128_v11 }
 0x2f9   :  { %v5129_v47 = vadd.f32 %v5128_v40, %v5127_v38  ;;  %5456 = vst.msk [vmem:[%s11107_s3 + $0xb8] sm:$0xff] %vm5088_vm8, %v7130_v24  ;;  %v5324_v44 = vadd.f32 %v5323_v50, %v5322_v36  ;;  %v5245_v8 = vmul.f32 %v7130_v24, %v7130_v24  ;;  %v5134_v3 = vsel %vm5088_vm8, %v7130_v24, 0.0 }
 0x2fa   :  { %v5325_v7 = vsel %vm5088_vm8, %v5242_v10, 0.0  ;;  %v5130_v34 = vsel %vm5088_vm8, %v7131_v12, 0.0  ;;  %v5243_v39 = vmul.f32 %v7131_v12, %v7131_v12  ;;  %5454 = vst.msk [vmem:[%s11107_s3 + $0xa8] sm:$0xff] %vm5088_vm8, %v7131_v12  ;;  %v5329_v18 = vsel %vm5088_vm8, %v5244_v30, 0.0 }
 0x2fb   :  { %v5131_v57 = vadd.f32 %v5130_v34, %v5129_v47  ;;  %v5326_v29 = vadd.f32 %v5325_v7, %v5324_v44  ;;  %v5331_v58 = vsel %vm5088_vm8, %v5245_v8, 0.0 }
 0x2fc   :  { %v5327_v41 = vsel %vm5088_vm8, %v5243_v39, 0.0  ;;  %v7068_v46 = vpop.f32.mrb[24].mxu0 }
 0x2fd   :  { %v5133_v49 = vadd.f32 %v5132_v19, %v5131_v57  ;;  %v7132_v9 = vadd.f32 %v7068_v46, %v9892_v54  ;;  %v4865_v26 = vpop.f32.mrb[25].mxu0  ;;  %v5328_v28 = vadd.f32 %v5327_v41, %v5326_v29 }
 0x2fe   :  { %v7133_v62 = vadd.f32 %v4865_v26, %v9894_v52  ;;  %v7069_v23 = vpop.f32.mrb[26].mxu0 }
 0x2ff   :  { %5459 = vst.msk [vmem:[%s11107_s3 + $0xd0] sm:$0xff] %vm5088_vm8, %v7132_v9  ;;  %v5135_v2 = vadd.f32 %v5134_v3, %v5133_v49  ;;  %v7134_v21 = vadd.f32 %v7069_v23, %v9896_v25  ;;  %v4868_v59 = vpop.f32.mrb[27].mxu0  ;;  %v5330_v61 = vadd.f32 %v5329_v18, %v5328_v28  ;;  %v5140_v14 = vsel %vm5088_vm8, %v7132_v9, 0.0 }
 0x300   :  { %v5136_v54 = vsel %vm5088_vm8, %v7133_v62, 0.0  ;;  %v5246_v5 = vmul.f32 %v7133_v62, %v7133_v62  ;;  %5457 = vst.msk [vmem:[%s11107_s3 + $0xc0] sm:$0xff] %vm5088_vm8, %v7133_v62  ;;  %v7135_v52 = vadd.f32 %v4868_v59, %v9898_v1  ;;  %v5248_v1 = vmul.f32 %v7132_v9, %v7132_v9 }
 0x301   :  { %v5137_v6 = vadd.f32 %v5136_v54, %v5135_v2  ;;  %5460 = vst.msk [vmem:[%s11107_s3 + $0xd8] sm:$0xff] %vm5088_vm8, %v7134_v21  ;;  %v5332_v25 = vadd.f32 %v5331_v58, %v5330_v61  ;;  %v5249_v16 = vmul.f32 %v7134_v21, %v7134_v21  ;;  %v5142_v27 = vsel %vm5088_vm8, %v7134_v21, 0.0 }
 0x302   :  { %v5333_v31 = vsel %vm5088_vm8, %v5246_v5, 0.0  ;;  %v5138_v32 = vsel %vm5088_vm8, %v7135_v52, 0.0  ;;  %v5247_v53 = vmul.f32 %v7135_v52, %v7135_v52  ;;  %5458 = vst.msk [vmem:[%s11107_s3 + $0xc8] sm:$0xff] %vm5088_vm8, %v7135_v52  ;;  %v5337_v33 = vsel %vm5088_vm8, %v5248_v1, 0.0 }
 0x303   :  { %v5139_v13 = vadd.f32 %v5138_v32, %v5137_v6  ;;  %v5334_v17 = vadd.f32 %v5333_v31, %v5332_v25  ;;  %v5339_v24 = vsel %vm5088_vm8, %v5249_v16, 0.0 }
 0x304   :  { %v5335_v15 = vsel %vm5088_vm8, %v5247_v53, 0.0  ;;  %v7072_v42 = vpop.f32.mrb[28].mxu0 }
 0x305   :  { %v5141_v48 = vadd.f32 %v5140_v14, %v5139_v13  ;;  %v7136_v56 = vadd.f32 %v7072_v42, %v9900_v45  ;;  %v4881_v37 = vpop.f32.mrb[29].mxu0  ;;  %v5336_v35 = vadd.f32 %v5335_v15, %v5334_v17 }
 0x306   :  { %v7137_v11 = vadd.f32 %v4881_v37, %v9902_v0  ;;  %v7073_v55 = vpop.f32.mrb[30].mxu0 }
 0x307   :  { %5463 = vst.msk [vmem:[%s11107_s3 + $0xf0] sm:$0xff] %vm5088_vm8, %v7136_v56  ;;  %v5143_v51 = vadd.f32 %v5142_v27, %v5141_v48  ;;  %v7138_v60 = vadd.f32 %v7073_v55, %v9904_v43  ;;  %v4884_v20 = vpop.f32.mrb[31].mxu0  ;;  %v5338_v63 = vadd.f32 %v5337_v33, %v5336_v35  ;;  %v5148_v50 = vsel %vm5088_vm8, %v7136_v56, 0.0 }
 0x308   :  { %v5144_v45 = vsel %vm5088_vm8, %v7137_v11, 0.0  ;;  %v5250_v38 = vmul.f32 %v7137_v11, %v7137_v11  ;;  %5461 = vst.msk [vmem:[%s11107_s3 + $0xe0] sm:$0xff] %vm5088_vm8, %v7137_v11  ;;  %v7139_v0 = vadd.f32 %v4884_v20, %v9906_v4  ;;  %v5252_v4 = vmul.f32 %v7136_v56, %v7136_v56 }
 0x309   :  { %v5145_v22 = vadd.f32 %v5144_v45, %v5143_v51  ;;  %5464 = vst.msk [vmem:[%s11107_s3 + $0xf8] sm:$0xff] %vm5088_vm8, %v7138_v60  ;;  %v5340_v43 = vadd.f32 %v5339_v24, %v5338_v63  ;;  %v5253_v39 = vmul.f32 %v7138_v60, %v7138_v60  ;;  %v5150_v41 = vsel %vm5088_vm8, %v7138_v60, 0.0 }
 0x30a   :  { %v5341_v36 = vsel %vm5088_vm8, %v5250_v38, 0.0  ;;  %v5146_v40 = vsel %vm5088_vm8, %v7139_v0, 0.0  ;;  %v5251_v10 = vmul.f32 %v7139_v0, %v7139_v0  ;;  %5462 = vst.msk [vmem:[%s11107_s3 + $0xe8] sm:$0xff] %vm5088_vm8, %v7139_v0  ;;  %v5345_v26 = vsel %vm5088_vm8, %v5252_v4, 0.0 }
 0x30b   :  { %v5147_v12 = vadd.f32 %v5146_v40, %v5145_v22  ;;  %v5342_v47 = vadd.f32 %v5341_v36, %v5340_v43  ;;  %v5347_v61 = vsel %vm5088_vm8, %v5253_v39, 0.0 }
 0x30c   :  { %v5343_v44 = vsel %vm5088_vm8, %v5251_v10, 0.0  ;;  %v6812_v7 = vpop.f32.mrb[32].mxu1  ;;  %v7076_v34 = vpop.f32.mrb[32].mxu0 }
 0x30d   :  { %v5149_v30 = vadd.f32 %v5148_v50, %v5147_v12  ;;  %v7140_v57 = vadd.f32 %v7076_v34, %v6812_v7  ;;  %v3341_v19 = vpop.f32.mrb[33].mxu1  ;;  %v4897_v29 = vpop.f32.mrb[33].mxu0  ;;  %v5344_v46 = vadd.f32 %v5343_v44, %v5342_v47 }
 0x30e   :  { %v7141_v8 = vadd.f32 %v4897_v29, %v3341_v19  ;;  %v6813_v49 = vpop.f32.mrb[34].mxu1  ;;  %v7077_v9 = vpop.f32.mrb[34].mxu0 }
 0x30f   :  { %5467 = vst.msk [vmem:[%s11107_s3 + $0x110] sm:$0xff] %vm5088_vm8, %v7140_v57  ;;  %v5151_v3 = vadd.f32 %v5150_v41, %v5149_v30  ;;  %v7142_v28 = vadd.f32 %v7077_v9, %v6813_v49  ;;  %v3344_v62 = vpop.f32.mrb[35].mxu1  ;;  %v4900_v23 = vpop.f32.mrb[35].mxu0  ;;  %v5346_v18 = vadd.f32 %v5345_v26, %v5344_v46  ;;  %v5256_v25 = vmul.f32 %v7140_v57, %v7140_v57 }
 0x310   :  { %v5152_v2 = vsel %vm5088_vm8, %v7141_v8, 0.0  ;;  %v5254_v21 = vmul.f32 %v7141_v8, %v7141_v8  ;;  %5465 = vst.msk [vmem:[%s11107_s3 + $0x100] sm:$0xff] %vm5088_vm8, %v7141_v8  ;;  %v7143_v59 = vadd.f32 %v4900_v23, %v3344_v62  ;;  %v5156_v32 = vsel %vm5088_vm8, %v7140_v57, 0.0 }
 0x311   :  { %v5153_v54 = vadd.f32 %v5152_v2, %v5151_v3  ;;  %5468 = vst.msk [vmem:[%s11107_s3 + $0x118] sm:$0xff] %vm5088_vm8, %v7142_v28  ;;  %v5348_v5 = vadd.f32 %v5347_v61, %v5346_v18  ;;  %v5257_v17 = vmul.f32 %v7142_v28, %v7142_v28  ;;  %v5158_v56 = vsel %vm5088_vm8, %v7142_v28, 0.0 }
 0x312   :  { %v5349_v52 = vsel %vm5088_vm8, %v5254_v21, 0.0  ;;  %v5154_v58 = vsel %vm5088_vm8, %v7143_v59, 0.0  ;;  %v5255_v6 = vmul.f32 %v7143_v59, %v7143_v59  ;;  %5466 = vst.msk [vmem:[%s11107_s3 + $0x108] sm:$0xff] %vm5088_vm8, %v7143_v59  ;;  %v5353_v55 = vsel %vm5088_vm8, %v5256_v25, 0.0 }
 0x313   :  { %v5155_v31 = vadd.f32 %v5154_v58, %v5153_v54  ;;  %v5350_v53 = vadd.f32 %v5349_v52, %v5348_v5  ;;  %v5355_v24 = vsel %vm5088_vm8, %v5257_v17, 0.0 }
 0x314   :  { %v5351_v1 = vsel %vm5088_vm8, %v5255_v6, 0.0  ;;  %v6816_v13 = vpop.f32.mrb[36].mxu1  ;;  %v7080_v14 = vpop.f32.mrb[36].mxu0 }
 0x315   :  { %v5157_v15 = vadd.f32 %v5156_v32, %v5155_v31  ;;  %v7144_v42 = vadd.f32 %v7080_v14, %v6816_v13  ;;  %v3357_v16 = vpop.f32.mrb[37].mxu1  ;;  %v4913_v48 = vpop.f32.mrb[37].mxu0  ;;  %v5352_v37 = vadd.f32 %v5351_v1, %v5350_v53 }
 0x316   :  { %v7145_v27 = vadd.f32 %v4913_v48, %v3357_v16  ;;  %v6817_v35 = vpop.f32.mrb[38].mxu1  ;;  %v7081_v11 = vpop.f32.mrb[38].mxu0 }
 0x317   :  { %5471 = vst.msk [vmem:[%s11107_s3 + $0x130] sm:$0xff] %vm5088_vm8, %v7144_v42  ;;  %v5159_v33 = vadd.f32 %v5158_v56, %v5157_v15  ;;  %v7146_v51 = vadd.f32 %v7081_v11, %v6817_v35  ;;  %v3360_v60 = vpop.f32.mrb[39].mxu1  ;;  %v4916_v20 = vpop.f32.mrb[39].mxu0  ;;  %v5354_v63 = vadd.f32 %v5353_v55, %v5352_v37  ;;  %v5260_v4 = vmul.f32 %v7144_v42, %v7144_v42 }
 0x318   :  { %v5160_v45 = vsel %vm5088_vm8, %v7145_v27, 0.0  ;;  %v5258_v38 = vmul.f32 %v7145_v27, %v7145_v27  ;;  %5469 = vst.msk [vmem:[%s11107_s3 + $0x120] sm:$0xff] %vm5088_vm8, %v7145_v27  ;;  %v7147_v0 = vadd.f32 %v4916_v20, %v3360_v60  ;;  %v5164_v50 = vsel %vm5088_vm8, %v7144_v42, 0.0 }
 0x319   :  { %v5161_v22 = vadd.f32 %v5160_v45, %v5159_v33  ;;  %5472 = vst.msk [vmem:[%s11107_s3 + $0x138] sm:$0xff] %vm5088_vm8, %v7146_v51  ;;  %v5356_v43 = vadd.f32 %v5355_v24, %v5354_v63  ;;  %v5261_v39 = vmul.f32 %v7146_v51, %v7146_v51  ;;  %v5166_v41 = vsel %vm5088_vm8, %v7146_v51, 0.0 }
 0x31a   :  { %v5357_v36 = vsel %vm5088_vm8, %v5258_v38, 0.0  ;;  %v5162_v40 = vsel %vm5088_vm8, %v7147_v0, 0.0  ;;  %v5259_v10 = vmul.f32 %v7147_v0, %v7147_v0  ;;  %5470 = vst.msk [vmem:[%s11107_s3 + $0x128] sm:$0xff] %vm5088_vm8, %v7147_v0  ;;  %v5361_v26 = vsel %vm5088_vm8, %v5260_v4, 0.0 }
 0x31b   :  { %v5163_v12 = vadd.f32 %v5162_v40, %v5161_v22  ;;  %v5358_v47 = vadd.f32 %v5357_v36, %v5356_v43  ;;  %v5363_v61 = vsel %vm5088_vm8, %v5261_v39, 0.0 }
 0x31c   :  { %v5359_v44 = vsel %vm5088_vm8, %v5259_v10, 0.0  ;;  %v6820_v7 = vpop.f32.mrb[40].mxu1  ;;  %v7084_v34 = vpop.f32.mrb[40].mxu0 }
 0x31d   :  { %v5165_v30 = vadd.f32 %v5164_v50, %v5163_v12  ;;  %v7148_v57 = vadd.f32 %v7084_v34, %v6820_v7  ;;  %v3373_v19 = vpop.f32.mrb[41].mxu1  ;;  %v4929_v29 = vpop.f32.mrb[41].mxu0  ;;  %v5360_v46 = vadd.f32 %v5359_v44, %v5358_v47 }
 0x31e   :  { %v7149_v8 = vadd.f32 %v4929_v29, %v3373_v19  ;;  %v6821_v49 = vpop.f32.mrb[42].mxu1  ;;  %v7085_v9 = vpop.f32.mrb[42].mxu0 }
 0x31f   :  { %5475 = vst.msk [vmem:[%s11107_s3 + $0x150] sm:$0xff] %vm5088_vm8, %v7148_v57  ;;  %v5167_v3 = vadd.f32 %v5166_v41, %v5165_v30  ;;  %v7150_v28 = vadd.f32 %v7085_v9, %v6821_v49  ;;  %v3376_v62 = vpop.f32.mrb[43].mxu1  ;;  %v4932_v23 = vpop.f32.mrb[43].mxu0  ;;  %v5362_v18 = vadd.f32 %v5361_v26, %v5360_v46  ;;  %v5264_v25 = vmul.f32 %v7148_v57, %v7148_v57 }
 0x320   :  { %v5168_v2 = vsel %vm5088_vm8, %v7149_v8, 0.0  ;;  %v5262_v21 = vmul.f32 %v7149_v8, %v7149_v8  ;;  %5473 = vst.msk [vmem:[%s11107_s3 + $0x140] sm:$0xff] %vm5088_vm8, %v7149_v8  ;;  %v7151_v59 = vadd.f32 %v4932_v23, %v3376_v62  ;;  %v5172_v32 = vsel %vm5088_vm8, %v7148_v57, 0.0 }
 0x321   :  { %v5169_v54 = vadd.f32 %v5168_v2, %v5167_v3  ;;  %5476 = vst.msk [vmem:[%s11107_s3 + $0x158] sm:$0xff] %vm5088_vm8, %v7150_v28  ;;  %v5364_v5 = vadd.f32 %v5363_v61, %v5362_v18  ;;  %v5265_v17 = vmul.f32 %v7150_v28, %v7150_v28  ;;  %v5174_v56 = vsel %vm5088_vm8, %v7150_v28, 0.0 }
 0x322   :  { %v5365_v52 = vsel %vm5088_vm8, %v5262_v21, 0.0  ;;  %v5170_v58 = vsel %vm5088_vm8, %v7151_v59, 0.0  ;;  %v5263_v6 = vmul.f32 %v7151_v59, %v7151_v59  ;;  %5474 = vst.msk [vmem:[%s11107_s3 + $0x148] sm:$0xff] %vm5088_vm8, %v7151_v59  ;;  %v5369_v55 = vsel %vm5088_vm8, %v5264_v25, 0.0 }
 0x323   :  { %v5171_v31 = vadd.f32 %v5170_v58, %v5169_v54  ;;  %v5366_v53 = vadd.f32 %v5365_v52, %v5364_v5  ;;  %v5371_v24 = vsel %vm5088_vm8, %v5265_v17, 0.0 }
 0x324   :  { %v5367_v1 = vsel %vm5088_vm8, %v5263_v6, 0.0  ;;  %v6824_v13 = vpop.f32.mrb[44].mxu1  ;;  %v7088_v14 = vpop.f32.mrb[44].mxu0 }
 0x325   :  { %v5173_v15 = vadd.f32 %v5172_v32, %v5171_v31  ;;  %v7152_v42 = vadd.f32 %v7088_v14, %v6824_v13  ;;  %v3389_v16 = vpop.f32.mrb[45].mxu1  ;;  %v4945_v48 = vpop.f32.mrb[45].mxu0  ;;  %v5368_v37 = vadd.f32 %v5367_v1, %v5366_v53 }
 0x326   :  { %v7153_v27 = vadd.f32 %v4945_v48, %v3389_v16  ;;  %v6825_v35 = vpop.f32.mrb[46].mxu1  ;;  %v7089_v11 = vpop.f32.mrb[46].mxu0 }
 0x327   :  { %5479 = vst.msk [vmem:[%s11107_s3 + $0x170] sm:$0xff] %vm5088_vm8, %v7152_v42  ;;  %v5175_v33 = vadd.f32 %v5174_v56, %v5173_v15  ;;  %v7154_v51 = vadd.f32 %v7089_v11, %v6825_v35  ;;  %v3392_v60 = vpop.f32.mrb[47].mxu1  ;;  %v4948_v20 = vpop.f32.mrb[47].mxu0  ;;  %v5370_v63 = vadd.f32 %v5369_v55, %v5368_v37  ;;  %v5268_v4 = vmul.f32 %v7152_v42, %v7152_v42 }
 0x328   :  { %v5176_v45 = vsel %vm5088_vm8, %v7153_v27, 0.0  ;;  %v5266_v38 = vmul.f32 %v7153_v27, %v7153_v27  ;;  %5477 = vst.msk [vmem:[%s11107_s3 + $0x160] sm:$0xff] %vm5088_vm8, %v7153_v27  ;;  %v7155_v0 = vadd.f32 %v4948_v20, %v3392_v60  ;;  %v5180_v50 = vsel %vm5088_vm8, %v7152_v42, 0.0 }
 0x329   :  { %v5177_v22 = vadd.f32 %v5176_v45, %v5175_v33  ;;  %5480 = vst.msk [vmem:[%s11107_s3 + $0x178] sm:$0xff] %vm5088_vm8, %v7154_v51  ;;  %v5372_v43 = vadd.f32 %v5371_v24, %v5370_v63  ;;  %v5269_v39 = vmul.f32 %v7154_v51, %v7154_v51  ;;  %v5182_v41 = vsel %vm5088_vm8, %v7154_v51, 0.0 }
 0x32a   :  { %v5373_v36 = vsel %vm5088_vm8, %v5266_v38, 0.0  ;;  %v5178_v40 = vsel %vm5088_vm8, %v7155_v0, 0.0  ;;  %v5267_v10 = vmul.f32 %v7155_v0, %v7155_v0  ;;  %5478 = vst.msk [vmem:[%s11107_s3 + $0x168] sm:$0xff] %vm5088_vm8, %v7155_v0  ;;  %v5377_v26 = vsel %vm5088_vm8, %v5268_v4, 0.0 }
 0x32b   :  { %v5179_v12 = vadd.f32 %v5178_v40, %v5177_v22  ;;  %v5374_v47 = vadd.f32 %v5373_v36, %v5372_v43  ;;  %v5379_v61 = vsel %vm5088_vm8, %v5269_v39, 0.0 }
 0x32c   :  { %v5375_v44 = vsel %vm5088_vm8, %v5267_v10, 0.0  ;;  %v6828_v7 = vpop.f32.mrb[48].mxu1  ;;  %v7092_v34 = vpop.f32.mrb[48].mxu0 }
 0x32d   :  { %v5181_v30 = vadd.f32 %v5180_v50, %v5179_v12  ;;  %v7156_v57 = vadd.f32 %v7092_v34, %v6828_v7  ;;  %v3405_v19 = vpop.f32.mrb[49].mxu1  ;;  %v4961_v29 = vpop.f32.mrb[49].mxu0  ;;  %v5376_v46 = vadd.f32 %v5375_v44, %v5374_v47 }
 0x32e   :  { %v7157_v8 = vadd.f32 %v4961_v29, %v3405_v19  ;;  %v6829_v49 = vpop.f32.mrb[50].mxu1  ;;  %v7093_v9 = vpop.f32.mrb[50].mxu0 }
 0x32f   :  { %5483 = vst.msk [vmem:[%s11107_s3 + $0x190] sm:$0xff] %vm5088_vm8, %v7156_v57  ;;  %v5183_v3 = vadd.f32 %v5182_v41, %v5181_v30  ;;  %v7158_v28 = vadd.f32 %v7093_v9, %v6829_v49  ;;  %v3408_v62 = vpop.f32.mrb[51].mxu1  ;;  %v4964_v23 = vpop.f32.mrb[51].mxu0  ;;  %v5378_v18 = vadd.f32 %v5377_v26, %v5376_v46  ;;  %v5272_v25 = vmul.f32 %v7156_v57, %v7156_v57 }
 0x330   :  { %v5184_v2 = vsel %vm5088_vm8, %v7157_v8, 0.0  ;;  %v5270_v21 = vmul.f32 %v7157_v8, %v7157_v8  ;;  %5481 = vst.msk [vmem:[%s11107_s3 + $0x180] sm:$0xff] %vm5088_vm8, %v7157_v8  ;;  %v7159_v59 = vadd.f32 %v4964_v23, %v3408_v62  ;;  %v5188_v32 = vsel %vm5088_vm8, %v7156_v57, 0.0 }
 0x331   :  { %v5185_v54 = vadd.f32 %v5184_v2, %v5183_v3  ;;  %5484 = vst.msk [vmem:[%s11107_s3 + $0x198] sm:$0xff] %vm5088_vm8, %v7158_v28  ;;  %v5380_v5 = vadd.f32 %v5379_v61, %v5378_v18  ;;  %v5273_v17 = vmul.f32 %v7158_v28, %v7158_v28  ;;  %v5190_v56 = vsel %vm5088_vm8, %v7158_v28, 0.0 }
 0x332   :  { %v5381_v52 = vsel %vm5088_vm8, %v5270_v21, 0.0  ;;  %v5186_v58 = vsel %vm5088_vm8, %v7159_v59, 0.0  ;;  %v5271_v6 = vmul.f32 %v7159_v59, %v7159_v59  ;;  %5482 = vst.msk [vmem:[%s11107_s3 + $0x188] sm:$0xff] %vm5088_vm8, %v7159_v59  ;;  %v5385_v55 = vsel %vm5088_vm8, %v5272_v25, 0.0 }
 0x333   :  { %v5187_v31 = vadd.f32 %v5186_v58, %v5185_v54  ;;  %v5382_v53 = vadd.f32 %v5381_v52, %v5380_v5  ;;  %v5387_v24 = vsel %vm5088_vm8, %v5273_v17, 0.0 }
 0x334   :  { %v5383_v1 = vsel %vm5088_vm8, %v5271_v6, 0.0  ;;  %v6832_v13 = vpop.f32.mrb[52].mxu1  ;;  %v7096_v14 = vpop.f32.mrb[52].mxu0 }
 0x335   :  { %v5189_v15 = vadd.f32 %v5188_v32, %v5187_v31  ;;  %v7160_v42 = vadd.f32 %v7096_v14, %v6832_v13  ;;  %v3421_v16 = vpop.f32.mrb[53].mxu1  ;;  %v4977_v48 = vpop.f32.mrb[53].mxu0  ;;  %v5384_v37 = vadd.f32 %v5383_v1, %v5382_v53 }
 0x336   :  { %v7161_v27 = vadd.f32 %v4977_v48, %v3421_v16  ;;  %v6833_v35 = vpop.f32.mrb[54].mxu1  ;;  %v7097_v11 = vpop.f32.mrb[54].mxu0 }
 0x337   :  { %5487 = vst.msk [vmem:[%s11107_s3 + $0x1b0] sm:$0xff] %vm5088_vm8, %v7160_v42  ;;  %v5191_v33 = vadd.f32 %v5190_v56, %v5189_v15  ;;  %v7162_v51 = vadd.f32 %v7097_v11, %v6833_v35  ;;  %v3424_v60 = vpop.f32.mrb[55].mxu1  ;;  %v4980_v20 = vpop.f32.mrb[55].mxu0  ;;  %v5386_v63 = vadd.f32 %v5385_v55, %v5384_v37  ;;  %v5276_v4 = vmul.f32 %v7160_v42, %v7160_v42 }
 0x338   :  { %v5192_v45 = vsel %vm5088_vm8, %v7161_v27, 0.0  ;;  %v5274_v38 = vmul.f32 %v7161_v27, %v7161_v27  ;;  %5485 = vst.msk [vmem:[%s11107_s3 + $0x1a0] sm:$0xff] %vm5088_vm8, %v7161_v27  ;;  %v7163_v0 = vadd.f32 %v4980_v20, %v3424_v60  ;;  %v5196_v50 = vsel %vm5088_vm8, %v7160_v42, 0.0 }
 0x339   :  { %v5193_v22 = vadd.f32 %v5192_v45, %v5191_v33  ;;  %5488 = vst.msk [vmem:[%s11107_s3 + $0x1b8] sm:$0xff] %vm5088_vm8, %v7162_v51  ;;  %v5388_v43 = vadd.f32 %v5387_v24, %v5386_v63  ;;  %v5277_v39 = vmul.f32 %v7162_v51, %v7162_v51  ;;  %v5198_v41 = vsel %vm5088_vm8, %v7162_v51, 0.0 }
 0x33a   :  { %v5389_v36 = vsel %vm5088_vm8, %v5274_v38, 0.0  ;;  %v5194_v40 = vsel %vm5088_vm8, %v7163_v0, 0.0  ;;  %v5275_v10 = vmul.f32 %v7163_v0, %v7163_v0  ;;  %5486 = vst.msk [vmem:[%s11107_s3 + $0x1a8] sm:$0xff] %vm5088_vm8, %v7163_v0  ;;  %v5393_v26 = vsel %vm5088_vm8, %v5276_v4, 0.0 }
 0x33b   :  { %v5195_v12 = vadd.f32 %v5194_v40, %v5193_v22  ;;  %v5390_v47 = vadd.f32 %v5389_v36, %v5388_v43  ;;  %v5395_v61 = vsel %vm5088_vm8, %v5277_v39, 0.0 }
 0x33c   :  { %v5391_v44 = vsel %vm5088_vm8, %v5275_v10, 0.0  ;;  %v6836_v7 = vpop.f32.mrb[56].mxu1  ;;  %v7100_v34 = vpop.f32.mrb[56].mxu0 }
 0x33d   :  { %v5197_v30 = vadd.f32 %v5196_v50, %v5195_v12  ;;  %v7164_v57 = vadd.f32 %v7100_v34, %v6836_v7  ;;  %v3437_v19 = vpop.f32.mrb[57].mxu1  ;;  %v4993_v29 = vpop.f32.mrb[57].mxu0  ;;  %v5392_v46 = vadd.f32 %v5391_v44, %v5390_v47 }
 0x33e   :  { %v7165_v8 = vadd.f32 %v4993_v29, %v3437_v19  ;;  %v6837_v49 = vpop.f32.mrb[58].mxu1  ;;  %v7101_v9 = vpop.f32.mrb[58].mxu0 }
 0x33f   :  { %5491 = vst.msk [vmem:[%s11107_s3 + $0x1d0] sm:$0xff] %vm5088_vm8, %v7164_v57  ;;  %v5199_v3 = vadd.f32 %v5198_v41, %v5197_v30  ;;  %v7166_v28 = vadd.f32 %v7101_v9, %v6837_v49  ;;  %v3440_v62 = vpop.f32.mrb[59].mxu1  ;;  %v4996_v23 = vpop.f32.mrb[59].mxu0  ;;  %v5394_v18 = vadd.f32 %v5393_v26, %v5392_v46  ;;  %v5280_v25 = vmul.f32 %v7164_v57, %v7164_v57 }
 0x340   :  { %v5200_v2 = vsel %vm5088_vm8, %v7165_v8, 0.0  ;;  %v5278_v21 = vmul.f32 %v7165_v8, %v7165_v8  ;;  %5489 = vst.msk [vmem:[%s11107_s3 + $0x1c0] sm:$0xff] %vm5088_vm8, %v7165_v8  ;;  %v7167_v59 = vadd.f32 %v4996_v23, %v3440_v62  ;;  %v5204_v32 = vsel %vm5088_vm8, %v7164_v57, 0.0 }
 0x341   :  { %v5201_v54 = vadd.f32 %v5200_v2, %v5199_v3  ;;  %5492 = vst.msk [vmem:[%s11107_s3 + $0x1d8] sm:$0xff] %vm5088_vm8, %v7166_v28  ;;  %v5396_v5 = vadd.f32 %v5395_v61, %v5394_v18  ;;  %v5281_v17 = vmul.f32 %v7166_v28, %v7166_v28  ;;  %v5206_v56 = vsel %vm5088_vm8, %v7166_v28, 0.0  ;;  %v5427_v61 = vld [vmem:[#allocation2] sm:$0x3] }
 0x342   :  { %v5397_v52 = vsel %vm5088_vm8, %v5278_v21, 0.0  ;;  %v5202_v58 = vsel %vm5088_vm8, %v7167_v59, 0.0  ;;  %v5279_v6 = vmul.f32 %v7167_v59, %v7167_v59  ;;  %5490 = vst.msk [vmem:[%s11107_s3 + $0x1c8] sm:$0xff] %vm5088_vm8, %v7167_v59  ;;  %v5401_v55 = vsel %vm5088_vm8, %v5280_v25, 0.0 }
 0x343   :  { %v5203_v31 = vadd.f32 %v5202_v58, %v5201_v54  ;;  %v5398_v53 = vadd.f32 %v5397_v52, %v5396_v5  ;;  %v5403_v24 = vsel %vm5088_vm8, %v5281_v17, 0.0  ;;  %v5507_v17 = vld [vmem:[%s11108_s2] sm:$0x1] }
 0x344   :  { %v5399_v1 = vsel %vm5088_vm8, %v5279_v6, 0.0  ;;  %v6840_v13 = vpop.f32.mrb[60].mxu1  ;;  %v7104_v14 = vpop.f32.mrb[60].mxu0 }
 0x345   :  { %v5205_v15 = vadd.f32 %v5204_v32, %v5203_v31  ;;  %v7168_v42 = vadd.f32 %v7104_v14, %v6840_v13  ;;  %v3453_v16 = vpop.f32.mrb[61].mxu1  ;;  %v5009_v48 = vpop.f32.mrb[61].mxu0  ;;  %v5400_v37 = vadd.f32 %v5399_v1, %v5398_v53  ;;  %v5578_v13 = vlaneseq }
 0x346   :  { %v7169_v27 = vadd.f32 %v5009_v48, %v3453_v16  ;;  %v6841_v35 = vpop.f32.mrb[62].mxu1  ;;  %v7105_v11 = vpop.f32.mrb[62].mxu0 }
 0x347   :  { %5495 = vst.msk [vmem:[%s11107_s3 + $0x1f0] sm:$0xff] %vm5088_vm8, %v7168_v42  ;;  %v5207_v33 = vadd.f32 %v5206_v56, %v5205_v15  ;;  %v7170_v51 = vadd.f32 %v7105_v11, %v6841_v35  ;;  %v3456_v60 = vpop.f32.mrb[63].mxu1  ;;  %v5012_v20 = vpop.f32.mrb[63].mxu0  ;;  %v5402_v63 = vadd.f32 %v5401_v55, %v5400_v37  ;;  %v5284_v4 = vmul.f32 %v7168_v42, %v7168_v42  ;;  %v5515_v56 = vld [vmem:[%s11107_s3 + $0x10] sm:$0xff]  ;;  %v5513_v37 = vld [vmem:[%s11107_s3] sm:$0xff]  ;;  %v5514_v35 = vld [vmem:[%s11107_s3 + $0x8] sm:$0xff] }
 0x348   :  { %v5208_v45 = vsel %vm5088_vm8, %v7169_v27, 0.0  ;;  %v5282_v38 = vmul.f32 %v7169_v27, %v7169_v27  ;;  %5493 = vst.msk [vmem:[%s11107_s3 + $0x1e0] sm:$0xff] %vm5088_vm8, %v7169_v27  ;;  %v7171_v0 = vadd.f32 %v5012_v20, %v3456_v60  ;;  %v5212_v50 = vsel %vm5088_vm8, %v7168_v42, 0.0  ;;  %v5516_v27 = vld [vmem:[%s11107_s3 + $0x18] sm:$0xff]  ;;  %v5519_v55 = vld [vmem:[%s11107_s3 + $0x30] sm:$0xff]  ;;  %v5518_v60 = vld [vmem:[%s11107_s3 + $0x28] sm:$0xff] }
 0x349   :  { %v5209_v22 = vadd.f32 %v5208_v45, %v5207_v33  ;;  %5496 = vst.msk [vmem:[%s11107_s3 + $0x1f8] sm:$0xff] %vm5088_vm8, %v7170_v51  ;;  %v5404_v43 = vadd.f32 %v5403_v24, %v5402_v63  ;;  %v5285_v7 = vmul.f32 %v7170_v51, %v7170_v51  ;;  %v5214_v39 = vsel %vm5088_vm8, %v7170_v51, 0.0  ;;  %v5517_v33 = vld [vmem:[%s11107_s3 + $0x20] sm:$0xff]  ;;  %v5520_v51 = vld [vmem:[%s11107_s3 + $0x38] sm:$0xff]  ;;  %v5523_v20 = vld [vmem:[%s11107_s3 + $0x50] sm:$0xff] }
 0x34a   :  { %v5405_v36 = vsel %vm5088_vm8, %v5282_v38, 0.0  ;;  %v5210_v40 = vsel %vm5088_vm8, %v7171_v0, 0.0  ;;  %v5283_v10 = vmul.f32 %v7171_v0, %v7171_v0  ;;  %5494 = vst.msk [vmem:[%s11107_s3 + $0x1e8] sm:$0xff] %vm5088_vm8, %v7171_v0  ;;  %v5409_v57 = vsel %vm5088_vm8, %v5284_v4, 0.0  ;;  %v5521_v63 = vld [vmem:[%s11107_s3 + $0x40] sm:$0xff]  ;;  %v5524_v45 = vld [vmem:[%s11107_s3 + $0x58] sm:$0xff] }
 0x34b   :  { %v5211_v12 = vadd.f32 %v5210_v40, %v5209_v22  ;;  %v5406_v47 = vadd.f32 %v5405_v36, %v5404_v43  ;;  %v5411_v41 = vsel %vm5088_vm8, %v5285_v7, 0.0  ;;  %v10320_v14 = vshrl.u32 %v5578_v13, 7  ;;  %v5522_v38 = vld [vmem:[%s11107_s3 + $0x48] sm:$0xff]  ;;  %v5527_v22 = vld [vmem:[%s11107_s3 + $0x70] sm:$0xff]  ;;  %v5525_v43 = vld [vmem:[%s11107_s3 + $0x60] sm:$0xff] }
 0x34c   :  { %v5407_v44 = vsel %vm5088_vm8, %v5283_v10, 0.0  ;;  %v5528_v36 = vld [vmem:[%s11107_s3 + $0x78] sm:$0xff]  ;;  %v5526_v40 = vld [vmem:[%s11107_s3 + $0x68] sm:$0xff] }
 0x34d   :  { %v5213_v34 = vadd.f32 %v5212_v50, %v5211_v12  ;;  %v5408_v30 = vadd.f32 %v5407_v44, %v5406_v47  ;;  %v11230_v15 = vsub.s32 0, %v10320_v14  ;;  %v5531_v47 = vld [vmem:[%s11107_s3 + $0x90] sm:$0xff]  ;;  %v5529_v44 = vld [vmem:[%s11107_s3 + $0x80] sm:$0xff]  ;;  %v5532_v7 = vld [vmem:[%s11107_s3 + $0x98] sm:$0xff] }
 0x34e   :  { %v5548_v13 = vld [vmem:[%s11107_s3 + $0x118] sm:$0xff] }
 0x34f   :  { %v5215_v19 = vadd.f32 %v5214_v39, %v5213_v34  ;;  %v5410_v29 = vadd.f32 %v5409_v57, %v5408_v30  ;;  %v5530_v34 = vld [vmem:[%s11107_s3 + $0x88] sm:$0xff] }
 0x351   :  { %v5216_v46 = vrot.slane %v5215_v19, 4  ;;  %v5412_v8 = vadd.f32 %v5411_v41, %v5410_v29  ;;  %v5535_v29 = vld [vmem:[%s11107_s3 + $0xb0] sm:$0xff]  ;;  %v5533_v41 = vld [vmem:[%s11107_s3 + $0xa0] sm:$0xff] }
 0x353   :  { %v5217_v49 = vadd.f32 %v5216_v46, %v5215_v19  ;;  %v5413_v9 = vrot.slane %v5412_v8, 4  ;;  %v5536_v46 = vld [vmem:[%s11107_s3 + $0xb8] sm:$0xff] }
 0x355   :  { %v5218_v26 = vrot.slane %v5217_v49, 2  ;;  %v5414_v3 = vadd.f32 %v5413_v9, %v5412_v8  ;;  %v5534_v8 = vld [vmem:[%s11107_s3 + $0xa8] sm:$0xff] }
 0x357   :  { %v5219_v28 = vadd.f32 %v5218_v26, %v5217_v49  ;;  %v5415_v62 = vrot.slane %v5414_v3, 2 }
 0x359   :  { %v5220_v23 = vrot.slane %v5219_v28, 1  ;;  %v5416_v18 = vadd.f32 %v5415_v62, %v5414_v3  ;;  %v5537_v62 = vld [vmem:[%s11107_s3 + $0xc0] sm:$0xff] }
 0x35b   :  { %v5417_v2 = vrot.slane %v5416_v18, 1  ;;  %v5221_v21 = vadd.f32 %v5220_v23, %v5219_v28  ;;  %v5539_v28 = vld [vmem:[%s11107_s3 + $0xd0] sm:$0xff]  ;;  %v5540_v23 = vld [vmem:[%s11107_s3 + $0xd8] sm:$0xff] }
 0x35d   :  { %v5418_v59 = vadd.f32 %v5417_v2, %v5416_v18  ;;  %v5538_v18 = vld [vmem:[%s11107_s3 + $0xc8] sm:$0xff] }
 0x35f   :  { %v5420_v54 = vsel %vm5419_vm10, %v5221_v21, %v5418_v59 }
 0x360   :  { %v5428_v5 = vadd.f32 %v5427_v61, %v5420_v54  ;;  %v5543_v54 = vld [vmem:[%s11107_s3 + $0xf0] sm:$0xff] }
 0x362   :  { %5430 = vst.msk [vmem:[#allocation2] sm:$0x3] %vm5425_vm9, %v5428_v5  ;;  %v5541_v5 = vld [vmem:[%s11107_s3 + $0xe0] sm:$0xff] }
 0x369   :  { %v5500_v52 = vld [vmem:[#allocation2] sm:$0x1]  ;;  %v5502_v58 = vld [vmem:[#allocation2 + $0x1] sm:$0x1] }
 0x36a   :  { %v5501_v6 = vmul.f32 0.001953125, %v5500_v52  ;;  %v5503_v25 = vmul.f32 0.001953125, %v5502_v58  ;;  %v5544_v52 = vld [vmem:[%s11107_s3 + $0xf8] sm:$0xff]  ;;  %v5542_v58 = vld [vmem:[%s11107_s3 + $0xe8] sm:$0xff] }
 0x36c   :  { %v5504_v31 = vmul.f32 %v5501_v6, %v5501_v6  ;;  %v5511_v11 = vsub.f32 0.0, %v5501_v6 }
 0x36e   :  { %v5505_v32 = vsub.f32 %v5503_v25, %v5504_v31 }
 0x370   :  { %v5506_v53 = vmax.f32 %v5505_v32, 0.0 }
 0x372   :  { %v5508_v1 = vadd.f32 1e-05, %v5506_v53  ;;  %v5547_v53 = vld [vmem:[%s11107_s3 + $0x110] sm:$0xff] }
 0x374   :  { %7667 = vrsqrt.f32 %v5508_v1  ;;  %v5545_v1 = vld [vmem:[%s11107_s3 + $0x100] sm:$0xff] }
 0x37e   :  { %v7668_v42 = vpop.eup %7667 }
 0x37f   :  { %v5510_v16 = vmul.f32 %v7668_v42, %v5507_v17  ;;  %v5546_v17 = vld [vmem:[%s11107_s3 + $0x108] sm:$0xff] }
 0x381   :  { %v10328_v48 = vrot.slane %v5510_v16, %v11230_v15  ;;  %v10366_v0 = vmul.f32 %v5511_v11, %v5510_v16  ;;  %v5552_v11 = vld [vmem:[%s11107_s3 + $0x138] sm:$0xff]  ;;  %v5571_v15 = vld [vmem:[%s11107_s3 + $0x1d0] sm:$0xff] }
 0x383   :  { %v10369_v24 = vmul.f32 %v10328_v48, %v5513_v37  ;;  %v10384_v10 = vmul.f32 %v10328_v48, %v5514_v35  ;;  %v10387_v4 = vmul.f32 %v10328_v48, %v5515_v56  ;;  %v10390_v12 = vmul.f32 %v10328_v48, %v5516_v27  ;;  %v5551_v27 = vld [vmem:[%s11107_s3 + $0x130] sm:$0xff]  ;;  %v5549_v35 = vld [vmem:[%s11107_s3 + $0x120] sm:$0xff] }
 0x384   :  { %v10393_v50 = vmul.f32 %v10328_v48, %v5517_v33  ;;  %v10408_v39 = vmul.f32 %v10328_v48, %v5518_v60  ;;  %v10411_v30 = vmul.f32 %v10328_v48, %v5519_v55  ;;  %v10414_v57 = vmul.f32 %v10328_v48, %v5520_v51  ;;  %v5550_v55 = vld [vmem:[%s11107_s3 + $0x128] sm:$0xff] }
 0x385   :  { %v10417_v19 = vmul.f32 %v10328_v48, %v5521_v63  ;;  %v10432_v49 = vmul.f32 %v10328_v48, %v5522_v38  ;;  %v10435_v9 = vmul.f32 %v10328_v48, %v5523_v20  ;;  %v10438_v26 = vmul.f32 %v10328_v48, %v5524_v45  ;;  %v5555_v63 = vld [vmem:[%s11107_s3 + $0x150] sm:$0xff]  ;;  %v5553_v45 = vld [vmem:[%s11107_s3 + $0x140] sm:$0xff]  ;;  %v5556_v38 = vld [vmem:[%s11107_s3 + $0x158] sm:$0xff] }
 0x386   :  { %v10441_v3 = vmul.f32 %v10328_v48, %v5525_v43  ;;  %v10456_v2 = vmul.f32 %v10328_v48, %v5526_v40  ;;  %v10459_v21 = vmul.f32 %v10328_v48, %v5527_v22  ;;  %v10462_v59 = vmul.f32 %v10328_v48, %v5528_v36 }
 0x387   :  { %v10465_v61 = vmul.f32 %v10328_v48, %v5529_v44  ;;  %v10480_v6 = vmul.f32 %v10328_v48, %v5530_v34  ;;  %v10483_v25 = vmul.f32 %v10328_v48, %v5531_v47  ;;  %v10486_v31 = vmul.f32 %v10328_v48, %v5532_v7  ;;  %v5554_v47 = vld [vmem:[%s11107_s3 + $0x148] sm:$0xff]  ;;  %v5559_v44 = vld [vmem:[%s11107_s3 + $0x170] sm:$0xff]  ;;  %v5557_v7 = vld [vmem:[%s11107_s3 + $0x160] sm:$0xff] }
 0x388   :  { %v10489_v32 = vmul.f32 %v10328_v48, %v5533_v41  ;;  %v10504_v42 = vmul.f32 %v10328_v48, %v5534_v8  ;;  %v10507_v16 = vmul.f32 %v10328_v48, %v5535_v29  ;;  %v10510_v56 = vmul.f32 %v10328_v48, %v5536_v46  ;;  %v5560_v8 = vld [vmem:[%s11107_s3 + $0x178] sm:$0xff] }
 0x389   :  { %v10513_v37 = vmul.f32 %v10328_v48, %v5537_v62  ;;  %v10528_v33 = vmul.f32 %v10328_v48, %v5538_v18  ;;  %v10531_v51 = vmul.f32 %v10328_v48, %v5539_v28  ;;  %v10534_v60 = vmul.f32 %v10328_v48, %v5540_v23  ;;  %v5558_v28 = vld [vmem:[%s11107_s3 + $0x168] sm:$0xff]  ;;  %v5563_v62 = vld [vmem:[%s11107_s3 + $0x190] sm:$0xff] }
 0x38a   :  { %v10537_v20 = vmul.f32 %v10328_v48, %v5541_v5  ;;  %v10549_v22 = vmul.f32 %v10328_v48, %v5542_v58  ;;  %v10552_v43 = vmul.f32 %v10328_v48, %v5543_v54  ;;  %v10555_v36 = vmul.f32 %v10328_v48, %v5544_v52  ;;  %v5561_v52 = vld [vmem:[%s11107_s3 + $0x180] sm:$0xff]  ;;  %v5564_v58 = vld [vmem:[%s11107_s3 + $0x198] sm:$0xff] }
 0x38b   :  { %v10558_v40 = vmul.f32 %v10328_v48, %v5545_v1  ;;  %v10570_v34 = vmul.f32 %v10328_v48, %v5546_v17  ;;  %v10573_v29 = vmul.f32 %v10328_v48, %v5547_v53  ;;  %v10576_v41 = vmul.f32 %v10328_v48, %v5548_v13  ;;  %v5562_v53 = vld [vmem:[%s11107_s3 + $0x188] sm:$0xff] }
 0x38c   :  { %v10579_v46 = vmul.f32 %v10328_v48, %v5549_v35  ;;  %v10591_v23 = vmul.f32 %v10328_v48, %v5550_v55  ;;  %v10594_v18 = vmul.f32 %v10328_v48, %v5551_v27  ;;  %v10597_v54 = vmul.f32 %v10328_v48, %v5552_v11  ;;  %v5567_v35 = vld [vmem:[%s11107_s3 + $0x1b0] sm:$0xff]  ;;  %v5565_v11 = vld [vmem:[%s11107_s3 + $0x1a0] sm:$0xff]  ;;  %v5568_v55 = vld [vmem:[%s11107_s3 + $0x1b8] sm:$0xff] }
 0x38d   :  { %v10600_v5 = vmul.f32 %v10328_v48, %v5553_v45  ;;  %v10612_v1 = vmul.f32 %v10328_v48, %v5554_v47  ;;  %v10615_v13 = vmul.f32 %v10328_v48, %v5555_v63  ;;  %v10618_v17 = vmul.f32 %v10328_v48, %v5556_v38 }
 0x38e   :  { %v10621_v27 = vmul.f32 %v10328_v48, %v5557_v7  ;;  %v10633_v63 = vmul.f32 %v10328_v48, %v5558_v28  ;;  %v10636_v45 = vmul.f32 %v10328_v48, %v5559_v44  ;;  %v10639_v38 = vmul.f32 %v10328_v48, %v5560_v8  ;;  %v5566_v7 = vld [vmem:[%s11107_s3 + $0x1a8] sm:$0xff]  ;;  %v5569_v28 = vld [vmem:[%s11107_s3 + $0x1c0] sm:$0xff] }
 0x38f   :  { %v10642_v47 = vmul.f32 %v10328_v48, %v5561_v52  ;;  %v10654_v44 = vmul.f32 %v10328_v48, %v5562_v53  ;;  %v10657_v8 = vmul.f32 %v10328_v48, %v5563_v62  ;;  %v10660_v52 = vmul.f32 %v10328_v48, %v5564_v58  ;;  %v5575_v53 = vld [vmem:[%s11107_s3 + $0x1f0] sm:$0xff] }
 0x390   :  { %11421 = vst [vmem:[#allocation35_spill] sm:$0xff] %v10636_v45  ;;  %11422 = vst [vmem:[#allocation37_spill] sm:$0xff] %v10639_v38  ;;  %v5572_v38 = vld [vmem:[%s11107_s3 + $0x1d8] sm:$0xff]  ;;  %v5570_v45 = vld [vmem:[%s11107_s3 + $0x1c8] sm:$0xff]  ;;  %v10675_v62 = vmul.f32 %v10328_v48, %v5566_v7  ;;  %v10678_v58 = vmul.f32 %v10328_v48, %v5567_v35 }
 0x391   :  { %11423 = vst [vmem:[#allocation41_spill] sm:$0xff] %v10642_v47  ;;  %11424 = vst [vmem:[#allocation42_spill] sm:$0xff] %v10657_v8  ;;  %v10663_v47 = vmul.f32 %v10328_v48, %v5565_v11  ;;  %v10681_v11 = vmul.f32 %v10328_v48, %v5568_v55  ;;  %v5576_v8 = vld [vmem:[%s11107_s3 + $0x1f8] sm:$0xff]  ;;  %v5574_v7 = vld [vmem:[%s11107_s3 + $0x1e8] sm:$0xff]  ;;  %v10696_v35 = vmul.f32 %v10328_v48, %v5570_v45 }
 0x392   :  { %11425 = vst [vmem:[#allocation45_spill] sm:$0xff] %v10660_v52  ;;  %11427 = vst [vmem:[#allocation4_spill] sm:$0xff] %v10675_v62  ;;  %v5573_v52 = vld [vmem:[%s11107_s3 + $0x1e0] sm:$0xff]  ;;  %v10699_v55 = vmul.f32 %v10328_v48, %v5571_v15  ;;  %v10713_v62 = vmul.f32 %v10328_v48, %v5574_v7  ;;  %v10716_v45 = vmul.f32 %v10328_v48, %v5575_v53 }
 0x393   :  { %11426 = vst [vmem:[#allocation59_spill] sm:$0xff] %v10663_v47  ;;  %11428 = vst [vmem:[#allocation5_spill] sm:$0xff] %v10678_v58  ;;  %v10684_v47 = vmul.f32 %v10328_v48, %v5569_v28  ;;  %v10702_v28 = vmul.f32 %v10328_v48, %v5572_v38  ;;  %v10710_v58 = vmul.f32 %v10328_v48, %v5573_v52 }
 0x394   :  { %11429 = vst [vmem:[#allocation6_spill] sm:$0xff] %v10681_v11  ;;  %v10719_v15 = vmul.f32 %v10328_v48, %v5576_v8 }
 0x395   :  { %11430 = vst [vmem:[#allocation7_spill] sm:$0xff] %v10684_v47  ;;  %v11431_v47 = vsub.s32 0, %v10320_v14 }
 0x397   :  { %v10707_v11 = vrot.slane %v10366_v0, %v11431_v47 }
 0x398   :  { %v11435_v8 = vld [vmem:[#allocation42_spill] sm:$0xff] }
 0x399   :  { %v5651_v38 = vadd.f32 %v10707_v11, %v10369_v24  ;;  %v5652_v14 = vadd.f32 %v10707_v11, %v10384_v10  ;;  %v5653_v0 = vadd.f32 %v10707_v11, %v10387_v4  ;;  %v5654_v47 = vadd.f32 %v10707_v11, %v10390_v12 }
 0x39a   :  { %v5655_v52 = vadd.f32 %v10707_v11, %v10393_v50  ;;  %v5656_v53 = vadd.f32 %v10707_v11, %v10408_v39  ;;  %v5657_v48 = vadd.f32 %v10707_v11, %v10411_v30  ;;  %v5658_v24 = vadd.f32 %v10707_v11, %v10414_v57 }
 0x39b   :  { %v5659_v10 = vadd.f32 %v10707_v11, %v10417_v19  ;;  %v5660_v4 = vadd.f32 %v10707_v11, %v10432_v49  ;;  %v5661_v12 = vadd.f32 %v10707_v11, %v10435_v9  ;;  %v5662_v50 = vadd.f32 %v10707_v11, %v10438_v26  ;;  %5715 = vst.msk [vmem:[%s11107_s3] sm:$0xff] %vm5088_vm8, %v5651_v38  ;;  %v11436_v38 = vld [vmem:[#allocation45_spill] sm:$0xff] }
 0x39c   :  { %5716 = vst.msk [vmem:[%s11107_s3 + $0x8] sm:$0xff] %vm5088_vm8, %v5652_v14  ;;  %5717 = vst.msk [vmem:[%s11107_s3 + $0x10] sm:$0xff] %vm5088_vm8, %v5653_v0  ;;  %v5663_v39 = vadd.f32 %v10707_v11, %v10441_v3  ;;  %v5664_v30 = vadd.f32 %v10707_v11, %v10456_v2  ;;  %v5665_v57 = vadd.f32 %v10707_v11, %v10459_v21 }
 0x39d   :  { %5718 = vst.msk [vmem:[%s11107_s3 + $0x18] sm:$0xff] %vm5088_vm8, %v5654_v47  ;;  %v5666_v19 = vadd.f32 %v10707_v11, %v10462_v59  ;;  %5719 = vst.msk [vmem:[%s11107_s3 + $0x20] sm:$0xff] %vm5088_vm8, %v5655_v52  ;;  %v5667_v49 = vadd.f32 %v10707_v11, %v10465_v61  ;;  %v5668_v9 = vadd.f32 %v10707_v11, %v10480_v6  ;;  %v11438_v47 = vld [vmem:[#allocation4_spill] sm:$0xff] }
 0x39e   :  { %5720 = vst.msk [vmem:[%s11107_s3 + $0x28] sm:$0xff] %vm5088_vm8, %v5656_v53  ;;  %5721 = vst.msk [vmem:[%s11107_s3 + $0x30] sm:$0xff] %vm5088_vm8, %v5657_v48  ;;  %v5669_v26 = vadd.f32 %v10707_v11, %v10483_v25  ;;  %v5670_v3 = vadd.f32 %v10707_v11, %v10486_v31  ;;  %v5671_v2 = vadd.f32 %v10707_v11, %v10489_v32  ;;  %v11439_v53 = vld [vmem:[#allocation5_spill] sm:$0xff] }
 0x39f   :  { %5722 = vst.msk [vmem:[%s11107_s3 + $0x38] sm:$0xff] %vm5088_vm8, %v5658_v24  ;;  %5723 = vst.msk [vmem:[%s11107_s3 + $0x40] sm:$0xff] %vm5088_vm8, %v5659_v10  ;;  %v5672_v21 = vadd.f32 %v10707_v11, %v10504_v42  ;;  %v5673_v59 = vadd.f32 %v10707_v11, %v10507_v16  ;;  %v5674_v61 = vadd.f32 %v10707_v11, %v10510_v56  ;;  %v11440_v24 = vld [vmem:[#allocation6_spill] sm:$0xff] }
 0x3a0   :  { %5724 = vst.msk [vmem:[%s11107_s3 + $0x48] sm:$0xff] %vm5088_vm8, %v5660_v4  ;;  %5725 = vst.msk [vmem:[%s11107_s3 + $0x50] sm:$0xff] %vm5088_vm8, %v5661_v12  ;;  %v5675_v6 = vadd.f32 %v10707_v11, %v10513_v37  ;;  %v5676_v25 = vadd.f32 %v10707_v11, %v10528_v33  ;;  %v5677_v31 = vadd.f32 %v10707_v11, %v10531_v51  ;;  %v11441_v4 = vld [vmem:[#allocation7_spill] sm:$0xff] }
 0x3a1   :  { %5726 = vst.msk [vmem:[%s11107_s3 + $0x58] sm:$0xff] %vm5088_vm8, %v5662_v50  ;;  %5727 = vst.msk [vmem:[%s11107_s3 + $0x60] sm:$0xff] %vm5088_vm8, %v5663_v39  ;;  %v5678_v32 = vadd.f32 %v10707_v11, %v10534_v60  ;;  %v5679_v42 = vadd.f32 %v10707_v11, %v10537_v20  ;;  %v5680_v16 = vadd.f32 %v10707_v11, %v10549_v22 }
 0x3a2   :  { %5728 = vst.msk [vmem:[%s11107_s3 + $0x68] sm:$0xff] %vm5088_vm8, %v5664_v30  ;;  %5729 = vst.msk [vmem:[%s11107_s3 + $0x70] sm:$0xff] %vm5088_vm8, %v5665_v57  ;;  %v5681_v56 = vadd.f32 %v10707_v11, %v10552_v43  ;;  %v5682_v37 = vadd.f32 %v10707_v11, %v10555_v36  ;;  %v5683_v33 = vadd.f32 %v10707_v11, %v10558_v40 }
 0x3a3   :  { %5730 = vst.msk [vmem:[%s11107_s3 + $0x78] sm:$0xff] %vm5088_vm8, %v5666_v19  ;;  %5731 = vst.msk [vmem:[%s11107_s3 + $0x80] sm:$0xff] %vm5088_vm8, %v5667_v49  ;;  %v5684_v51 = vadd.f32 %v10707_v11, %v10570_v34  ;;  %v5685_v60 = vadd.f32 %v10707_v11, %v10573_v29  ;;  %v5686_v20 = vadd.f32 %v10707_v11, %v10576_v41 }
 0x3a4   :  { %5732 = vst.msk [vmem:[%s11107_s3 + $0x88] sm:$0xff] %vm5088_vm8, %v5668_v9  ;;  %5733 = vst.msk [vmem:[%s11107_s3 + $0x90] sm:$0xff] %vm5088_vm8, %v5669_v26  ;;  %v5687_v22 = vadd.f32 %v10707_v11, %v10579_v46  ;;  %v5688_v43 = vadd.f32 %v10707_v11, %v10591_v23  ;;  %v5689_v36 = vadd.f32 %v10707_v11, %v10594_v18 }
 0x3a5   :  { %5734 = vst.msk [vmem:[%s11107_s3 + $0x98] sm:$0xff] %vm5088_vm8, %v5670_v3  ;;  %5735 = vst.msk [vmem:[%s11107_s3 + $0xa0] sm:$0xff] %vm5088_vm8, %v5671_v2  ;;  %v5690_v40 = vadd.f32 %v10707_v11, %v10597_v54  ;;  %v5691_v34 = vadd.f32 %v10707_v11, %v10600_v5  ;;  %v5692_v29 = vadd.f32 %v10707_v11, %v10612_v1  ;;  %v11432_v54 = vld [vmem:[#allocation35_spill] sm:$0xff]  ;;  %v11433_v1 = vld [vmem:[#allocation37_spill] sm:$0xff] }
 0x3a6   :  { %5736 = vst.msk [vmem:[%s11107_s3 + $0xa8] sm:$0xff] %vm5088_vm8, %v5672_v21  ;;  %5737 = vst.msk [vmem:[%s11107_s3 + $0xb0] sm:$0xff] %vm5088_vm8, %v5673_v59  ;;  %v5693_v41 = vadd.f32 %v10707_v11, %v10615_v13  ;;  %v5694_v46 = vadd.f32 %v10707_v11, %v10618_v17  ;;  %v5695_v23 = vadd.f32 %v10707_v11, %v10621_v27  ;;  %v11434_v17 = vld [vmem:[#allocation41_spill] sm:$0xff] }
 0x3a7   :  { %5738 = vst.msk [vmem:[%s11107_s3 + $0xb8] sm:$0xff] %vm5088_vm8, %v5674_v61  ;;  %5739 = vst.msk [vmem:[%s11107_s3 + $0xc0] sm:$0xff] %vm5088_vm8, %v5675_v6  ;;  %v5696_v18 = vadd.f32 %v10707_v11, %v10633_v63  ;;  %v5697_v5 = vadd.f32 %v10707_v11, %v11432_v54  ;;  %v5698_v13 = vadd.f32 %v10707_v11, %v11433_v1 }
 0x3a8   :  { %5740 = vst.msk [vmem:[%s11107_s3 + $0xc8] sm:$0xff] %vm5088_vm8, %v5676_v25  ;;  %5741 = vst.msk [vmem:[%s11107_s3 + $0xd0] sm:$0xff] %vm5088_vm8, %v5677_v31  ;;  %v5699_v27 = vadd.f32 %v10707_v11, %v11434_v17  ;;  %v5700_v63 = vadd.f32 %v10707_v11, %v10654_v44  ;;  %v5701_v7 = vadd.f32 %v10707_v11, %v11435_v8  ;;  %v11437_v44 = vld [vmem:[#allocation59_spill] sm:$0xff] }
 0x3a9   :  { %5742 = vst.msk [vmem:[%s11107_s3 + $0xd8] sm:$0xff] %vm5088_vm8, %v5678_v32  ;;  %5743 = vst.msk [vmem:[%s11107_s3 + $0xe0] sm:$0xff] %vm5088_vm8, %v5679_v42  ;;  %v5702_v14 = vadd.f32 %v10707_v11, %v11436_v38  ;;  %v5703_v0 = vadd.f32 %v10707_v11, %v11437_v44  ;;  %v5704_v52 = vadd.f32 %v10707_v11, %v11438_v47 }
 0x3aa   :  { %5744 = vst.msk [vmem:[%s11107_s3 + $0xe8] sm:$0xff] %vm5088_vm8, %v5680_v16  ;;  %5745 = vst.msk [vmem:[%s11107_s3 + $0xf0] sm:$0xff] %vm5088_vm8, %v5681_v56  ;;  %v5705_v48 = vadd.f32 %v10707_v11, %v11439_v53  ;;  %v5706_v10 = vadd.f32 %v10707_v11, %v11440_v24  ;;  %v5707_v12 = vadd.f32 %v10707_v11, %v11441_v4 }
 0x3ab   :  { %5746 = vst.msk [vmem:[%s11107_s3 + $0xf8] sm:$0xff] %vm5088_vm8, %v5682_v37  ;;  %5747 = vst.msk [vmem:[%s11107_s3 + $0x100] sm:$0xff] %vm5088_vm8, %v5683_v33  ;;  %v5708_v50 = vadd.f32 %v10707_v11, %v10696_v35  ;;  %v5709_v39 = vadd.f32 %v10707_v11, %v10699_v55  ;;  %v5710_v30 = vadd.f32 %v10707_v11, %v10702_v28 }
 0x3ac   :  { %5748 = vst.msk [vmem:[%s11107_s3 + $0x108] sm:$0xff] %vm5088_vm8, %v5684_v51  ;;  %5749 = vst.msk [vmem:[%s11107_s3 + $0x110] sm:$0xff] %vm5088_vm8, %v5685_v60  ;;  %v5711_v35 = vadd.f32 %v10707_v11, %v10710_v58  ;;  %v5712_v55 = vadd.f32 %v10707_v11, %v10713_v62  ;;  %v5713_v28 = vadd.f32 %v10707_v11, %v10716_v45 }
 0x3ad   :  { %5750 = vst.msk [vmem:[%s11107_s3 + $0x118] sm:$0xff] %vm5088_vm8, %v5686_v20  ;;  %5751 = vst.msk [vmem:[%s11107_s3 + $0x120] sm:$0xff] %vm5088_vm8, %v5687_v22  ;;  %v5714_v57 = vadd.f32 %v10707_v11, %v10719_v15 }
 0x3ae   :  { %5752 = vst.msk [vmem:[%s11107_s3 + $0x128] sm:$0xff] %vm5088_vm8, %v5688_v43  ;;  %5753 = vst.msk [vmem:[%s11107_s3 + $0x130] sm:$0xff] %vm5088_vm8, %v5689_v36 }
 0x3af   :  { %5754 = vst.msk [vmem:[%s11107_s3 + $0x138] sm:$0xff] %vm5088_vm8, %v5690_v40  ;;  %5755 = vst.msk [vmem:[%s11107_s3 + $0x140] sm:$0xff] %vm5088_vm8, %v5691_v34 }
 0x3b0   :  { %5756 = vst.msk [vmem:[%s11107_s3 + $0x148] sm:$0xff] %vm5088_vm8, %v5692_v29  ;;  %5757 = vst.msk [vmem:[%s11107_s3 + $0x150] sm:$0xff] %vm5088_vm8, %v5693_v41 }
 0x3b1   :  { %5758 = vst.msk [vmem:[%s11107_s3 + $0x158] sm:$0xff] %vm5088_vm8, %v5694_v46  ;;  %5759 = vst.msk [vmem:[%s11107_s3 + $0x160] sm:$0xff] %vm5088_vm8, %v5695_v23 }
 0x3b2   :  { %5760 = vst.msk [vmem:[%s11107_s3 + $0x168] sm:$0xff] %vm5088_vm8, %v5696_v18  ;;  %5761 = vst.msk [vmem:[%s11107_s3 + $0x170] sm:$0xff] %vm5088_vm8, %v5697_v5 }
 0x3b3   :  { %5762 = vst.msk [vmem:[%s11107_s3 + $0x178] sm:$0xff] %vm5088_vm8, %v5698_v13  ;;  %5763 = vst.msk [vmem:[%s11107_s3 + $0x180] sm:$0xff] %vm5088_vm8, %v5699_v27 }
 0x3b4   :  { %5764 = vst.msk [vmem:[%s11107_s3 + $0x188] sm:$0xff] %vm5088_vm8, %v5700_v63  ;;  %5765 = vst.msk [vmem:[%s11107_s3 + $0x190] sm:$0xff] %vm5088_vm8, %v5701_v7 }
 0x3b5   :  { %5766 = vst.msk [vmem:[%s11107_s3 + $0x198] sm:$0xff] %vm5088_vm8, %v5702_v14  ;;  %5767 = vst.msk [vmem:[%s11107_s3 + $0x1a0] sm:$0xff] %vm5088_vm8, %v5703_v0 }
 0x3b6   :  { %5768 = vst.msk [vmem:[%s11107_s3 + $0x1a8] sm:$0xff] %vm5088_vm8, %v5704_v52  ;;  %5769 = vst.msk [vmem:[%s11107_s3 + $0x1b0] sm:$0xff] %vm5088_vm8, %v5705_v48 }
 0x3b7   :  { %5770 = vst.msk [vmem:[%s11107_s3 + $0x1b8] sm:$0xff] %vm5088_vm8, %v5706_v10  ;;  %5771 = vst.msk [vmem:[%s11107_s3 + $0x1c0] sm:$0xff] %vm5088_vm8, %v5707_v12 }
 0x3b8   :  { %5772 = vst.msk [vmem:[%s11107_s3 + $0x1c8] sm:$0xff] %vm5088_vm8, %v5708_v50  ;;  %5773 = vst.msk [vmem:[%s11107_s3 + $0x1d0] sm:$0xff] %vm5088_vm8, %v5709_v39 }
 0x3b9   :  { %5774 = vst.msk [vmem:[%s11107_s3 + $0x1d8] sm:$0xff] %vm5088_vm8, %v5710_v30  ;;  %5775 = vst.msk [vmem:[%s11107_s3 + $0x1e0] sm:$0xff] %vm5088_vm8, %v5711_v35 }
 0x3ba   :  { %5776 = vst.msk [vmem:[%s11107_s3 + $0x1e8] sm:$0xff] %vm5088_vm8, %v5712_v55  ;;  %5777 = vst.msk [vmem:[%s11107_s3 + $0x1f0] sm:$0xff] %vm5088_vm8, %v5713_v28 }
 0x3bb   :  { %5778 = vst.msk [vmem:[%s11107_s3 + $0x1f8] sm:$0xff] %vm5088_vm8, %v5714_v57 }

</bundles_post_ra>
